<compile_context>
chip_gen: v7x
topology: tpu7x:2x2x1
jax: 0.10.0
libtpu: 0.0.40
codegen_flags: <defaults>
</compile_context>

<pallas_src>
import functools
import math

import jax
import jax.numpy as jnp
from jax.experimental import pallas as pl
from jax.experimental.pallas import tpu as pltpu

_NEG = -1e30      # score for padded V positions -> exp underflows to exactly 0
_LANE = 128
_SUBLANE = 8


def _round_up(n, m):
    return ((n + m - 1) // m) * m


# ----------------------------------------------------------------------------
# Kernel: one batch-tile per grid step.  All weights are VMEM-resident.
# ----------------------------------------------------------------------------
def diffusion_kernel(pe_ref, query_ref, tgt_ref, x_ref,
                     wte1_ref, bte1_ref, wte2_ref, bte2_ref,
                     wqk_ref, wvp_ref, bp_ref,
                     wd1n_ref, wd1t_ref, bd1_ref, wd2_ref, bd2_ref,
                     out_ref, *, exact_softmax):
    f32 = jnp.float32
    TB, Vp, Dp = tgt_ref.shape
    cdt = wqk_ref.dtype                      # MXU compute dtype (bf16 or f32)

    # --- TimestepEmbedder: Linear -> SiLU -> Linear (once per batch row) ---
    pe = pe_ref[...]
    h = jnp.dot(pe.astype(cdt), wte1_ref[...], preferred_element_type=f32) + bte1_ref[...]
    h = h * (1.0 / (1.0 + jnp.exp(-h)))      # SiLU in f32 (EUP exp + VPU)
    cond = jnp.dot(h.astype(cdt), wte2_ref[...], preferred_element_type=f32) + bte2_ref[...]

    # --- attention scores via associativity: qk = (query+cond) @ (Wq @ Wk^T) ---
    qc = query_ref[...].astype(f32) + cond
    qk = jnp.dot(qc.astype(cdt), wqk_ref[...], preferred_element_type=f32)   # (TB, Dp)

    tgt = tgt_ref[...].astype(f32)                                            # (TB, Vp, Dp)
    scores = jnp.sum(tgt * qk[:, None, :], axis=-1)                           # (TB, Vp)
    scores = scores + jnp.sum(cond * qk, axis=-1, keepdims=True) + x_ref[...]

    # --- numerically-stable softmax over V (padded cols carry -1e30 -> 0) ---
    m = jnp.max(scores, axis=-1, keepdims=True)
    e = jnp.exp(scores - m)
    denom = jnp.sum(e, axis=-1, keepdims=True)
    if exact_softmax:
        weight = e / denom
    else:
        weight = e * pl.reciprocal(denom, approx=True)

    # --- new_emb via associativity: (sum_v w*tgt_c) @ (Wv @ Wp) + bp ---
    sumw = jnp.sum(weight, axis=-1, keepdims=True)        # == 1 (exact) / ~1 (approx)
    s = jnp.sum(weight[:, :, None] * tgt, axis=1) + sumw * cond               # (TB, Dp)
    new_emb = jnp.dot(s.astype(cdt), wvp_ref[...], preferred_element_type=f32) + bp_ref[...]

    # --- decoder MLP; concat([new_emb, tgt]) eliminated by splitting W_d1 ---
    hid_new = jnp.dot(new_emb.astype(cdt), wd1n_ref[...],
                      preferred_element_type=f32) + bd1_ref[...]              # (TB, Hp)
    hid_tgt = jnp.dot(tgt_ref[...].reshape(TB * Vp, Dp), wd1t_ref[...],
                      preferred_element_type=f32)                             # (TB*Vp, Hp)
    Hp = hid_new.shape[-1]
    hid = jnp.maximum(hid_tgt.reshape(TB, Vp, Hp) + hid_new[:, None, :], 0.0)

    # final Linear(2D -> 1): multiply + lane reduce (avoids an N=1 matmul)
    p = jnp.sum(hid * wd2_ref[...][None, :, :], axis=-1) + bd2_ref[0, 0]      # (TB, Vp)

    out_ref[...] = p + weight


# ----------------------------------------------------------------------------
# Wrapper: PE gather, host-side weight folding, padding, pallas_call
# ----------------------------------------------------------------------------
def positional_encoding_rows(timesteps, d_model):
    """Rows pe[timesteps, 0, :] of PositionalEncoding, computed directly."""
    pos = timesteps.astype(jnp.float32)[:, None]
    div = jnp.exp(jnp.arange(0, d_model, 2, dtype=jnp.float32)
                  * (-math.log(10000.0) / d_model))
    sin = jnp.sin(pos * div)
    cos = jnp.cos(pos * div)
    return jnp.stack([sin, cos], axis=-1).reshape(timesteps.shape[0], d_model)


def diffusion_forward(x, timesteps, query_emb, target_emb, params, *,
                      compute_dtype=jnp.bfloat16, batch_tile=None):
    """compute_dtype feeds both the activation DMA and the MXU (bf16 recommended
    on v6e/v7x, f32 for exact parity); accumulation / softmax / elementwise math
    stay in f32 inside the kernel."""
    (wte1, bte1, wte2, bte2, wq, wk, wv, wp, bp, wd1, bd1, wd2, bd2) = params
    f32 = jnp.float32
    cdt = jnp.dtype(compute_dtype)
    abytes = cdt.itemsize
    cbytes = cdt.itemsize

    B, V = x.shape
    D = query_emb.shape[-1]
    Vp = _round_up(V, _SUBLANE)     # sublane-only padding for the target axis
    Dp = _round_up(D, _LANE)        # feature dims padded so every vreg lane is full
    Hp = _round_up(2 * D, _LANE)    # decoder hidden dim

    # --- generation-aware VMEM budget (~96 MiB v5e/v6e, ~48 MiB v7x) ---
    try:
        info = pltpu.get_tpu_info()
        vmem_cap = int(getattr(info, "vmem_capacity_bytes", 0)
                       or getattr(info, "vmem_size_bytes", 0) or (64 << 20))
    except Exception:
        vmem_cap = 64 << 20
    vmem_limit = int(0.75 * vmem_cap)

    def vmem_estimate(tb):
        w = (4 * Dp * Dp + 2 * Dp * Hp) * cbytes + (3 * Dp + 2 * Hp) * 4 * 2
        acts = 2 * tb * Vp * Dp * abytes          # tgt tile (double-buffered)
        acts += 2 * 2 * tb * Dp * abytes          # pe + query
        acts += 2 * tb * Vp * 4 * 2               # x in + out (f32)
        tmp = tb * Vp * (2 * Dp + 2 * Hp) * 4     # f32 temporaries (tgt/prod, hid)
        tmp += tb * (6 * Dp + 2 * Hp) * 4
        return w + acts + tmp

    # --- batch tile: big enough to fill the MXU M dim, small enough for VMEM ---
    sub = 16 if abytes == 2 else _SUBLANE         # bf16 sublane packing is 16-deep
    tb_cap = _round_up(B, sub)
    if batch_tile is not None:
        TB = max(sub, _round_up(int(batch_tile), sub))
    else:
        TB = sub
        for t in (256, 128, 64, 32, 16, 8):
            if t % sub or t > max(tb_cap, sub):
                continue
            if vmem_estimate(t) <= int(0.8 * vmem_limit):
                TB = t
                break
        # prefer >=2 grid steps so v7x megacore gets work on both TensorCores
        if _round_up(B, TB) // TB < 2 and B > TB // 2 >= sub:
            TB = max(sub, _round_up((B + 1) // 2, sub))
    Bp = _round_up(B, TB)

    # --- padding helpers ---
    def pad_to(a, shape, dtype, fill=0.0):
        out = jnp.full(shape, fill, dtype)
        return out.at[tuple(slice(0, s) for s in a.shape)].set(a.astype(dtype))

    pe_p = pad_to(positional_encoding_rows(timesteps, D), (Bp, Dp), cdt)
    query_p = pad_to(query_emb, (Bp, Dp), cdt)
    tgt_p = pad_to(target_emb, (Bp, Vp, Dp), cdt)           # bf16 DMA by default
    x_p = pad_to(x, (Bp, Vp), f32, fill=_NEG)                # padded V cols -> -1e30

    # host-side weight folding (associativity): Wqk = Wq @ Wk^T, Wvp = Wv @ Wp
    wqk = jnp.dot(wq.astype(f32), wk.astype(f32).T)
    wvp = jnp.dot(wv.astype(f32), wp.astype(f32))
    wd1n = wd1[:D, :]        # multiplies broadcast new_emb (concat removed)
    wd1t = wd1[D:, :]        # multiplies target_emb

    operands = (
        pe_p, query_p, tgt_p, x_p,
        pad_to(wte1, (Dp, Dp), cdt), pad_to(bte1, (1, Dp), f32),
        pad_to(wte2, (Dp, Dp), cdt), pad_to(bte2, (1, Dp), f32),
        pad_to(wqk, (Dp, Dp), cdt),
        pad_to(wvp, (Dp, Dp), cdt), pad_to(bp, (1, Dp), f32),
        pad_to(wd1n, (Dp, Hp), cdt), pad_to(wd1t, (Dp, Hp), cdt),
        pad_to(bd1, (1, Hp), f32),
        pad_to(wd2.reshape(1, 2 * D), (1, Hp), f32),
        bd2.reshape(1, 1).astype(f32),
    )

    flops = (2 * Bp * (4 * Dp * Dp + Dp * Hp)          # per-row matmuls
             + 2 * Bp * Vp * Dp * Hp                   # decoder tgt matmul
             + 6 * Bp * Vp * Dp + 2 * Bp * Vp * Hp)    # VPU contractions
    bytes_accessed = sum(int(o.size) * o.dtype.itemsize for o in operands) + Bp * Vp * 4

    def build(single_buffer_weights):
        def resident(*shape):      # weights: same block every grid step -> DMA'd once
            n = len(shape)
            idx = lambda i, _n=n: (0,) * _n
            if single_buffer_weights:
                return pl.BlockSpec(shape, idx, pipeline_mode=pl.Buffered(1))
            return pl.BlockSpec(shape, idx)

        in_specs = [
            pl.BlockSpec((TB, Dp), lambda i: (i, 0)),            # pe rows
            pl.BlockSpec((TB, Dp), lambda i: (i, 0)),            # query_emb
            pl.BlockSpec((TB, Vp, Dp), lambda i: (i, 0, 0)),     # target_emb
            pl.BlockSpec((TB, Vp), lambda i: (i, 0)),            # x (attention bias)
            resident(Dp, Dp), resident(1, Dp),                   # wte1, bte1
            resident(Dp, Dp), resident(1, Dp),                   # wte2, bte2
            resident(Dp, Dp),                                    # wqk = Wq @ Wk^T
            resident(Dp, Dp), resident(1, Dp),                   # wvp = Wv @ Wp, bp
            resident(Dp, Hp), resident(Dp, Hp), resident(1, Hp), # wd1n, wd1t, bd1
            resident(1, Hp),                                     # wd2 (row vector)
            pl.BlockSpec(memory_space=pltpu.MemorySpace.SMEM),   # bd2 scalar
        ]
        out_spec = pl.BlockSpec((TB, Vp), lambda i: (i, 0))

        return pl.pallas_call(
            functools.partial(diffusion_kernel,
                              exact_softmax=(cdt == jnp.dtype(jnp.float32))),
            out_shape=jax.ShapeDtypeStruct((Bp, Vp), f32),
            grid_spec=pltpu.PrefetchScalarGridSpec(
                num_scalar_prefetch=0,
                grid=(Bp // TB,),
                in_specs=in_specs,
                out_specs=out_spec,
            ),
            compiler_params=pltpu.CompilerParams(
                dimension_semantics=("parallel",),       # v7x megacore splits the batch grid
                vmem_limit_bytes=vmem_limit,
            ),
            cost_estimate=pl.CostEstimate(flops=int(flops),
                                          transcendentals=int(Bp * (Dp + Vp)),
                                          bytes_accessed=int(bytes_accessed)),
        )

    def run(single_buffer_weights):
        return jax.block_until_ready(build(single_buffer_weights)(*operands))

    try:
        out = run(True)
    except Exception:        # fallback for jax versions rejecting Buffered(1) weights
        out = run(False)
    return out[:B, :V]


# ----------------------------------------------------------------------------
# Deterministic parameter init (shapes follow the nn.Module __init__)
# ----------------------------------------------------------------------------
def init_params(key, width):
    D = width

    def lin(k, fan_in, fan_out):
        bound = 1.0 / math.sqrt(fan_in)
        kw, kb = jax.random.split(k)
        w = jax.random.uniform(kw, (fan_in, fan_out), jnp.float32, -bound, bound)  # (in, out)
        b = jax.random.uniform(kb, (1, fan_out), jnp.float32, -bound, bound)
        return w, b

    keys = jax.random.split(key, 8)
    wte1, bte1 = lin(keys[0], D, D)          # time_embed[0]
    wte2, bte2 = lin(keys[1], D, D)          # time_embed[2]
    wq, _ = lin(keys[2], D, D)               # q_proj (bias=False)
    wk, _ = lin(keys[3], D, D)               # k_proj (bias=False)
    wv, _ = lin(keys[4], D, D)               # v_proj (bias=False)
    wp, bp = lin(keys[5], D, D)              # proj
    wd1, bd1 = lin(keys[6], 2 * D, 2 * D)    # decoder[0]
    wd2, bd2 = lin(keys[7], 2 * D, 1)        # decoder[2]
    return (wte1, bte1, wte2, bte2, wq, wk, wv, wp, bp, wd1, bd1, wd2, bd2)


# ----------------------------------------------------------------------------
# Pure-JAX f32 reference in the original (PyTorch) computation order.
# ----------------------------------------------------------------------------
def diffusion_reference(x, timesteps, query_emb, target_emb, params):
    (wte1, bte1, wte2, bte2, wq, wk, wv, wp, bp, wd1, bd1, wd2, bd2) = params
    B, V = x.shape
    D = query_emb.shape[-1]

    pe_t = positional_encoding_rows(timesteps, D)
    h = pe_t @ wte1 + bte1
    h = h * jax.nn.sigmoid(h)
    cond = h @ wte2 + bte2

    q = (query_emb + cond) @ wq
    tgt_c = target_emb + cond[:, None, :]
    k = jnp.einsum('bvd,de->bve', tgt_c, wk)
    v = jnp.einsum('bvd,de->bve', tgt_c, wv)

    weight = jnp.einsum('bd,bvd->bv', q, k) + x
    weight = jax.nn.softmax(weight, axis=-1)

    new_emb = jnp.einsum('bv,bvd->bd', weight, v) @ wp + bp
    emb = jnp.concatenate(
        [jnp.broadcast_to(new_emb[:, None, :], (B, V, D)), target_emb], axis=-1)
    hid = jnp.maximum(jnp.einsum('bvh,he->bve', emb, wd1) + bd1, 0.0)
    p = (jnp.einsum('bvh,ho->bvo', hid, wd2) + bd2)[..., 0]
    return p + weight


if __name__ == "__main__":
    B, V, D = 2, 8, 32          # batch, #targets, width

    key = jax.random.PRNGKey(0)
    k_x, k_t, k_q, k_tgt, k_p = jax.random.split(key, 5)

    x = jax.random.normal(k_x, (B, V), jnp.float32)
    timesteps = jax.random.randint(k_t, (B,), 0, 100, jnp.int32)
    query_emb = jax.random.normal(k_q, (B, D), jnp.float32)
    target_emb = jax.random.normal(k_tgt, (B, V, D), jnp.float32)
    params = init_params(k_p, D)

    ref = diffusion_reference(x, timesteps, query_emb, target_emb, params)

    # f32 path (exact softmax divide; parity check of the restructured math)
    out_f32 = jax.block_until_ready(
        diffusion_forward(x, timesteps, query_emb, target_emb, params,
                          compute_dtype=jnp.float32))
    assert out_f32.shape == (B, V)
    err32 = float(jnp.max(jnp.abs(out_f32 - ref)))
    assert jnp.allclose(out_f32, ref, atol=2e-2, rtol=2e-2), \
        f"f32 mismatch vs reference (max abs err {err32})"

    # default path: bf16 activations + bf16 MXU inputs, f32 accumulation
    out_bf16 = jax.block_until_ready(
        diffusion_forward(x, timesteps, query_emb, target_emb, params))
    assert out_bf16.shape == (B, V)
    err16 = float(jnp.max(jnp.abs(out_bf16 - ref)))
    assert jnp.allclose(out_bf16, ref, atol=1.5e-1, rtol=1.5e-1), \
        f"bf16 mismatch vs f32 reference (max abs err {err16})"

    print("KERNEL_OK")
</pallas_src>

<mosaic_0001>
module attributes {stable_mosaic.version = 11 : i64} {
  func.func @diffusion_kernel(%arg0: i32, %arg1: memref<8x128xf32, #tpu.memory_space<vmem>>, %arg2: memref<8x128xf32, #tpu.memory_space<vmem>>, %arg3: memref<8x8x128xf32, #tpu.memory_space<vmem>>, %arg4: memref<8x8xf32, #tpu.memory_space<vmem>>, %arg5: memref<128x128xf32, #tpu.memory_space<vmem>>, %arg6: memref<1x128xf32, #tpu.memory_space<vmem>>, %arg7: memref<128x128xf32, #tpu.memory_space<vmem>>, %arg8: memref<1x128xf32, #tpu.memory_space<vmem>>, %arg9: memref<128x128xf32, #tpu.memory_space<vmem>>, %arg10: memref<128x128xf32, #tpu.memory_space<vmem>>, %arg11: memref<1x128xf32, #tpu.memory_space<vmem>>, %arg12: memref<128x128xf32, #tpu.memory_space<vmem>>, %arg13: memref<128x128xf32, #tpu.memory_space<vmem>>, %arg14: memref<1x128xf32, #tpu.memory_space<vmem>>, %arg15: memref<1x128xf32, #tpu.memory_space<vmem>>, %arg16: memref<1x1xf32, #tpu.memory_space<smem>>, %arg17: memref<8x8xf32, #tpu.memory_space<vmem>>) attributes {dimension_semantics = [#tpu.dimension_semantics<parallel>], iteration_bounds = array<i64: 1>, scalar_prefetch = 0 : i64, scratch_operands = 0 : i64, tpu.core_type = #tpu.core_type<tc>, window_params = [{transform_indices = @transform_0, window_bounds = array<i64: 8, 128>}, {transform_indices = @transform_1, window_bounds = array<i64: 8, 128>}, {transform_indices = @transform_2, window_bounds = array<i64: 8, 8, 128>}, {transform_indices = @transform_3, window_bounds = array<i64: 8, 8>}, {pipeline_mode = #tpu.pipeline_mode<synchronous>, transform_indices = @transform_4, window_bounds = array<i64: 128, 128>}, {pipeline_mode = #tpu.pipeline_mode<synchronous>, transform_indices = @transform_5, window_bounds = array<i64: 1, 128>}, {pipeline_mode = #tpu.pipeline_mode<synchronous>, transform_indices = @transform_6, window_bounds = array<i64: 128, 128>}, {pipeline_mode = #tpu.pipeline_mode<synchronous>, transform_indices = @transform_7, window_bounds = array<i64: 1, 128>}, {pipeline_mode = #tpu.pipeline_mode<synchronous>, transform_indices = @transform_8, window_bounds = array<i64: 128, 128>}, {pipeline_mode = #tpu.pipeline_mode<synchronous>, transform_indices = @transform_9, window_bounds = array<i64: 128, 128>}, {pipeline_mode = #tpu.pipeline_mode<synchronous>, transform_indices = @transform_10, window_bounds = array<i64: 1, 128>}, {pipeline_mode = #tpu.pipeline_mode<synchronous>, transform_indices = @transform_11, window_bounds = array<i64: 128, 128>}, {pipeline_mode = #tpu.pipeline_mode<synchronous>, transform_indices = @transform_12, window_bounds = array<i64: 128, 128>}, {pipeline_mode = #tpu.pipeline_mode<synchronous>, transform_indices = @transform_13, window_bounds = array<i64: 1, 128>}, {pipeline_mode = #tpu.pipeline_mode<synchronous>, transform_indices = @transform_14, window_bounds = array<i64: 1, 128>}, {transform_indices = @transform_15, window_bounds = array<i64: 1, 1>}, {transform_indices = @transform_16, window_bounds = array<i64: 8, 8>}]} {
    %c0 = arith.constant 0 : index
    %c0_0 = arith.constant 0 : index
    %0 = vector.load %arg1[%c0, %c0_0] : memref<8x128xf32, #tpu.memory_space<vmem>>, vector<8x128xf32>
    %c0_1 = arith.constant 0 : index
    %c0_2 = arith.constant 0 : index
    %1 = vector.load %arg5[%c0_1, %c0_2] : memref<128x128xf32, #tpu.memory_space<vmem>>, vector<128x128xf32>
    %cst = arith.constant dense<0.000000e+00> : vector<8x128xf32>
    %2 = tpu.matmul %0, %1, %cst {dimension_numbers = #tpu.dot_dimension_numbers<[1], [0], [0], [1], [0, 0, 1, 1], [], []>} : vector<8x128xf32>, vector<128x128xf32>, vector<8x128xf32> -> vector<8x128xf32>
    %c0_3 = arith.constant 0 : index
    %c0_4 = arith.constant 0 : index
    %3 = vector.load %arg6[%c0_3, %c0_4] : memref<1x128xf32, #tpu.memory_space<vmem>>, vector<1x128xf32>
    %4 = vector.broadcast %3 : vector<1x128xf32> to vector<8x128xf32>
    %5 = arith.addf %2, %4 : vector<8x128xf32>
    %cst_5 = arith.constant 0.000000e+00 : f32
    %6 = vector.broadcast %cst_5 : f32 to vector<8x128xf32>
    %7 = arith.subf %6, %5 : vector<8x128xf32>
    %8 = math.exp %7 : vector<8x128xf32>
    %cst_6 = arith.constant 1.000000e+00 : f32
    %9 = vector.broadcast %cst_6 : f32 to vector<8x128xf32>
    %10 = arith.addf %9, %8 : vector<8x128xf32>
    %cst_7 = arith.constant 1.000000e+00 : f32
    %11 = vector.broadcast %cst_7 : f32 to vector<8x128xf32>
    %12 = arith.divf %11, %10 : vector<8x128xf32>
    %13 = arith.mulf %5, %12 : vector<8x128xf32>
    %c0_8 = arith.constant 0 : index
    %c0_9 = arith.constant 0 : index
    %14 = vector.load %arg7[%c0_8, %c0_9] : memref<128x128xf32, #tpu.memory_space<vmem>>, vector<128x128xf32>
    %cst_10 = arith.constant dense<0.000000e+00> : vector<8x128xf32>
    %15 = tpu.matmul %13, %14, %cst_10 {dimension_numbers = #tpu.dot_dimension_numbers<[1], [0], [0], [1], [0, 0, 1, 1], [], []>} : vector<8x128xf32>, vector<128x128xf32>, vector<8x128xf32> -> vector<8x128xf32>
    %c0_11 = arith.constant 0 : index
    %c0_12 = arith.constant 0 : index
    %16 = vector.load %arg8[%c0_11, %c0_12] : memref<1x128xf32, #tpu.memory_space<vmem>>, vector<1x128xf32>
    %17 = vector.broadcast %16 : vector<1x128xf32> to vector<8x128xf32>
    %18 = arith.addf %15, %17 : vector<8x128xf32>
    %c0_13 = arith.constant 0 : index
    %c0_14 = arith.constant 0 : index
    %19 = vector.load %arg2[%c0_13, %c0_14] : memref<8x128xf32, #tpu.memory_space<vmem>>, vector<8x128xf32>
    %20 = arith.addf %19, %18 : vector<8x128xf32>
    %c0_15 = arith.constant 0 : index
    %c0_16 = arith.constant 0 : index
    %21 = vector.load %arg9[%c0_15, %c0_16] : memref<128x128xf32, #tpu.memory_space<vmem>>, vector<128x128xf32>
    %cst_17 = arith.constant dense<0.000000e+00> : vector<8x128xf32>
    %22 = tpu.matmul %20, %21, %cst_17 {dimension_numbers = #tpu.dot_dimension_numbers<[1], [0], [0], [1], [0, 0, 1, 1], [], []>} : vector<8x128xf32>, vector<128x128xf32>, vector<8x128xf32> -> vector<8x128xf32>
    %c0_18 = arith.constant 0 : index
    %c0_19 = arith.constant 0 : index
    %c0_20 = arith.constant 0 : index
    %23 = vector.load %arg3[%c0_18, %c0_19, %c0_20] : memref<8x8x128xf32, #tpu.memory_space<vmem>>, vector<8x8x128xf32>
    %24 = vector.shape_cast %22 : vector<8x128xf32> to vector<8x1x128xf32>
    %25 = vector.broadcast %24 : vector<8x1x128xf32> to vector<8x8x128xf32>
    %26 = arith.mulf %23, %25 : vector<8x8x128xf32>
    %cst_21 = arith.constant dense<0.000000e+00> : vector<8x8xf32>
    %27 = vector.multi_reduction <add>, %26, %cst_21 [2] : vector<8x8x128xf32> to vector<8x8xf32>
    %28 = arith.mulf %18, %22 : vector<8x128xf32>
    %cst_22 = arith.constant dense<0.000000e+00> : vector<8xf32>
    %29 = vector.multi_reduction <add>, %28, %cst_22 [1] : vector<8x128xf32> to vector<8xf32>
    %30 = vector.shape_cast %29 : vector<8xf32> to vector<8x1xf32>
    %31 = vector.broadcast %30 : vector<8x1xf32> to vector<8x8xf32>
    %32 = arith.addf %27, %31 : vector<8x8xf32>
    %c0_23 = arith.constant 0 : index
    %c0_24 = arith.constant 0 : index
    %33 = vector.load %arg4[%c0_23, %c0_24] : memref<8x8xf32, #tpu.memory_space<vmem>>, vector<8x8xf32>
    %34 = arith.addf %32, %33 : vector<8x8xf32>
    %cst_25 = arith.constant dense<0xFF800000> : vector<8xf32>
    %35 = vector.multi_reduction <maximumf>, %34, %cst_25 [1] : vector<8x8xf32> to vector<8xf32>
    %36 = vector.shape_cast %35 : vector<8xf32> to vector<8x1xf32>
    %37 = vector.broadcast %36 : vector<8x1xf32> to vector<8x8xf32>
    %38 = arith.subf %34, %37 : vector<8x8xf32>
    %39 = math.exp %38 : vector<8x8xf32>
    %cst_26 = arith.constant dense<0.000000e+00> : vector<8xf32>
    %40 = vector.multi_reduction <add>, %39, %cst_26 [1] : vector<8x8xf32> to vector<8xf32>
    %41 = vector.shape_cast %40 : vector<8xf32> to vector<8x1xf32>
    %42 = vector.broadcast %41 : vector<8x1xf32> to vector<8x8xf32>
    %43 = arith.divf %39, %42 : vector<8x8xf32>
    %cst_27 = arith.constant dense<0.000000e+00> : vector<8xf32>
    %44 = vector.multi_reduction <add>, %43, %cst_27 [1] : vector<8x8xf32> to vector<8xf32>
    %45 = vector.shape_cast %44 : vector<8xf32> to vector<8x1xf32>
    %46 = vector.shape_cast %43 : vector<8x8xf32> to vector<8x8x1xf32>
    %47 = vector.broadcast %46 : vector<8x8x1xf32> to vector<8x8x128xf32>
    %48 = arith.mulf %47, %23 : vector<8x8x128xf32>
    %cst_28 = arith.constant dense<0.000000e+00> : vector<8x128xf32>
    %49 = vector.multi_reduction <add>, %48, %cst_28 [1] : vector<8x8x128xf32> to vector<8x128xf32>
    %50 = vector.broadcast %45 : vector<8x1xf32> to vector<8x128xf32>
    %51 = arith.mulf %50, %18 : vector<8x128xf32>
    %52 = arith.addf %49, %51 : vector<8x128xf32>
    %c0_29 = arith.constant 0 : index
    %c0_30 = arith.constant 0 : index
    %53 = vector.load %arg10[%c0_29, %c0_30] : memref<128x128xf32, #tpu.memory_space<vmem>>, vector<128x128xf32>
    %cst_31 = arith.constant dense<0.000000e+00> : vector<8x128xf32>
    %54 = tpu.matmul %52, %53, %cst_31 {dimension_numbers = #tpu.dot_dimension_numbers<[1], [0], [0], [1], [0, 0, 1, 1], [], []>} : vector<8x128xf32>, vector<128x128xf32>, vector<8x128xf32> -> vector<8x128xf32>
    %c0_32 = arith.constant 0 : index
    %c0_33 = arith.constant 0 : index
    %55 = vector.load %arg11[%c0_32, %c0_33] : memref<1x128xf32, #tpu.memory_space<vmem>>, vector<1x128xf32>
    %56 = vector.broadcast %55 : vector<1x128xf32> to vector<8x128xf32>
    %57 = arith.addf %54, %56 : vector<8x128xf32>
    %c0_34 = arith.constant 0 : index
    %c0_35 = arith.constant 0 : index
    %58 = vector.load %arg12[%c0_34, %c0_35] : memref<128x128xf32, #tpu.memory_space<vmem>>, vector<128x128xf32>
    %cst_36 = arith.constant dense<0.000000e+00> : vector<8x128xf32>
    %59 = tpu.matmul %57, %58, %cst_36 {dimension_numbers = #tpu.dot_dimension_numbers<[1], [0], [0], [1], [0, 0, 1, 1], [], []>} : vector<8x128xf32>, vector<128x128xf32>, vector<8x128xf32> -> vector<8x128xf32>
    %c0_37 = arith.constant 0 : index
    %c0_38 = arith.constant 0 : index
    %60 = vector.load %arg14[%c0_37, %c0_38] : memref<1x128xf32, #tpu.memory_space<vmem>>, vector<1x128xf32>
    %61 = vector.broadcast %60 : vector<1x128xf32> to vector<8x128xf32>
    %62 = arith.addf %59, %61 : vector<8x128xf32>
    %c0_39 = arith.constant 0 : index
    %c0_40 = arith.constant 0 : index
    %c0_41 = arith.constant 0 : index
    %63 = vector.load %arg3[%c0_39, %c0_40, %c0_41] : memref<8x8x128xf32, #tpu.memory_space<vmem>>, vector<8x8x128xf32>
    %64 = vector.shape_cast %63 : vector<8x8x128xf32> to vector<64x128xf32>
    %c0_42 = arith.constant 0 : index
    %c0_43 = arith.constant 0 : index
    %65 = vector.load %arg13[%c0_42, %c0_43] : memref<128x128xf32, #tpu.memory_space<vmem>>, vector<128x128xf32>
    %cst_44 = arith.constant dense<0.000000e+00> : vector<64x128xf32>
    %66 = tpu.matmul %64, %65, %cst_44 {dimension_numbers = #tpu.dot_dimension_numbers<[1], [0], [0], [1], [0, 0, 1, 1], [], []>} : vector<64x128xf32>, vector<128x128xf32>, vector<64x128xf32> -> vector<64x128xf32>
    %67 = vector.shape_cast %66 : vector<64x128xf32> to vector<8x8x128xf32>
    %68 = vector.shape_cast %62 : vector<8x128xf32> to vector<8x1x128xf32>
    %69 = vector.broadcast %68 : vector<8x1x128xf32> to vector<8x8x128xf32>
    %70 = arith.addf %67, %69 : vector<8x8x128xf32>
    %cst_45 = arith.constant 0.000000e+00 : f32
    %71 = vector.broadcast %cst_45 : f32 to vector<8x8x128xf32>
    %72 = arith.maximumf %70, %71 : vector<8x8x128xf32>
    %c0_46 = arith.constant 0 : index
    %c0_47 = arith.constant 0 : index
    %73 = vector.load %arg15[%c0_46, %c0_47] : memref<1x128xf32, #tpu.memory_space<vmem>>, vector<1x128xf32>
    %74 = vector.shape_cast %73 : vector<1x128xf32> to vector<1x1x128xf32>
    %75 = vector.broadcast %74 : vector<1x1x128xf32> to vector<8x8x128xf32>
    %76 = arith.mulf %72, %75 : vector<8x8x128xf32>
    %cst_48 = arith.constant dense<0.000000e+00> : vector<8x8xf32>
    %77 = vector.multi_reduction <add>, %76, %cst_48 [2] : vector<8x8x128xf32> to vector<8x8xf32>
    %c0_49 = arith.constant 0 : index
    %c0_50 = arith.constant 0 : index
    %78 = memref.load %arg16[%c0_49, %c0_50] : memref<1x1xf32, #tpu.memory_space<smem>>
    %79 = vector.broadcast %78 : f32 to vector<8x8xf32>
    %80 = arith.addf %77, %79 : vector<8x8xf32>
    %81 = arith.addf %80, %43 : vector<8x8xf32>
    %c0_51 = arith.constant 0 : index
    %c0_52 = arith.constant 0 : index
    %82 = vector.load %arg17[%c0_51, %c0_52] : memref<8x8xf32, #tpu.memory_space<vmem>>, vector<8x8xf32>
    tpu.vector_store %arg17[%c0_51, %c0_52], %81 {strides = array<i32>} : memref<8x8xf32, #tpu.memory_space<vmem>>, vector<8x8xf32>,
    return
  }
  func.func @transform_0(%arg0: i32) -> (i32, i32) {
    %c0_i32 = arith.constant 0 : i32
    %c0_i32_0 = arith.constant 0 : i32
    return %arg0, %c0_i32 : i32, i32
  }
  func.func @transform_1(%arg0: i32) -> (i32, i32) {
    %c0_i32 = arith.constant 0 : i32
    %c0_i32_0 = arith.constant 0 : i32
    return %arg0, %c0_i32 : i32, i32
  }
  func.func @transform_2(%arg0: i32) -> (i32, i32, i32) {
    %c0_i32 = arith.constant 0 : i32
    %c0_i32_0 = arith.constant 0 : i32
    %c0_i32_1 = arith.constant 0 : i32
    return %arg0, %c0_i32, %c0_i32_0 : i32, i32, i32
  }
  func.func @transform_3(%arg0: i32) -> (i32, i32) {
    %c0_i32 = arith.constant 0 : i32
    %c0_i32_0 = arith.constant 0 : i32
    return %arg0, %c0_i32 : i32, i32
  }
  func.func @transform_4(%arg0: i32) -> (i32, i32) {
    %c0_i32 = arith.constant 0 : i32
    %c0_i32_0 = arith.constant 0 : i32
    %c0_i32_1 = arith.constant 0 : i32
    return %c0_i32, %c0_i32_0 : i32, i32
  }
  func.func @transform_5(%arg0: i32) -> (i32, i32) {
    %c0_i32 = arith.constant 0 : i32
    %c0_i32_0 = arith.constant 0 : i32
    %c0_i32_1 = arith.constant 0 : i32
    return %c0_i32, %c0_i32_0 : i32, i32
  }
  func.func @transform_6(%arg0: i32) -> (i32, i32) {
    %c0_i32 = arith.constant 0 : i32
    %c0_i32_0 = arith.constant 0 : i32
    %c0_i32_1 = arith.constant 0 : i32
    return %c0_i32, %c0_i32_0 : i32, i32
  }
  func.func @transform_7(%arg0: i32) -> (i32, i32) {
    %c0_i32 = arith.constant 0 : i32
    %c0_i32_0 = arith.constant 0 : i32
    %c0_i32_1 = arith.constant 0 : i32
    return %c0_i32, %c0_i32_0 : i32, i32
  }
  func.func @transform_8(%arg0: i32) -> (i32, i32) {
    %c0_i32 = arith.constant 0 : i32
    %c0_i32_0 = arith.constant 0 : i32
    %c0_i32_1 = arith.constant 0 : i32
    return %c0_i32, %c0_i32_0 : i32, i32
  }
  func.func @transform_9(%arg0: i32) -> (i32, i32) {
    %c0_i32 = arith.constant 0 : i32
    %c0_i32_0 = arith.constant 0 : i32
    %c0_i32_1 = arith.constant 0 : i32
    return %c0_i32, %c0_i32_0 : i32, i32
  }
  func.func @transform_10(%arg0: i32) -> (i32, i32) {
    %c0_i32 = arith.constant 0 : i32
    %c0_i32_0 = arith.constant 0 : i32
    %c0_i32_1 = arith.constant 0 : i32
    return %c0_i32, %c0_i32_0 : i32, i32
  }
  func.func @transform_11(%arg0: i32) -> (i32, i32) {
    %c0_i32 = arith.constant 0 : i32
    %c0_i32_0 = arith.constant 0 : i32
    %c0_i32_1 = arith.constant 0 : i32
    return %c0_i32, %c0_i32_0 : i32, i32
  }
  func.func @transform_12(%arg0: i32) -> (i32, i32) {
    %c0_i32 = arith.constant 0 : i32
    %c0_i32_0 = arith.constant 0 : i32
    %c0_i32_1 = arith.constant 0 : i32
    return %c0_i32, %c0_i32_0 : i32, i32
  }
  func.func @transform_13(%arg0: i32) -> (i32, i32) {
    %c0_i32 = arith.constant 0 : i32
    %c0_i32_0 = arith.constant 0 : i32
    %c0_i32_1 = arith.constant 0 : i32
    return %c0_i32, %c0_i32_0 : i32, i32
  }
  func.func @transform_14(%arg0: i32) -> (i32, i32) {
    %c0_i32 = arith.constant 0 : i32
    %c0_i32_0 = arith.constant 0 : i32
    %c0_i32_1 = arith.constant 0 : i32
    return %c0_i32, %c0_i32_0 : i32, i32
  }
  func.func @transform_15(%arg0: i32) -> (i32, i32) {
    %c0_i32 = arith.constant 0 : i32
    %c0_i32_0 = arith.constant 0 : i32
    %c0_i32_1 = arith.constant 0 : i32
    return %c0_i32, %c0_i32_0 : i32, i32
  }
  func.func @transform_16(%arg0: i32) -> (i32, i32) {
    %c0_i32 = arith.constant 0 : i32
    %c0_i32_0 = arith.constant 0 : i32
    return %arg0, %c0_i32 : i32, i32
  }
}

module attributes {stable_mosaic.version = 11 : i64} {
  func.func @diffusion_kernel(%arg0: i32, %arg1: memref<8x128xf32, #tpu.memory_space<vmem>>, %arg2: memref<8x128xf32, #tpu.memory_space<vmem>>, %arg3: memref<8x8x128xf32, #tpu.memory_space<vmem>>, %arg4: memref<8x8xf32, #tpu.memory_space<vmem>>, %arg5: memref<128x128xf32, #tpu.memory_space<vmem>>, %arg6: memref<1x128xf32, #tpu.memory_space<vmem>>, %arg7: memref<128x128xf32, #tpu.memory_space<vmem>>, %arg8: memref<1x128xf32, #tpu.memory_space<vmem>>, %arg9: memref<128x128xf32, #tpu.memory_space<vmem>>, %arg10: memref<128x128xf32, #tpu.memory_space<vmem>>, %arg11: memref<1x128xf32, #tpu.memory_space<vmem>>, %arg12: memref<128x128xf32, #tpu.memory_space<vmem>>, %arg13: memref<128x128xf32, #tpu.memory_space<vmem>>, %arg14: memref<1x128xf32, #tpu.memory_space<vmem>>, %arg15: memref<1x128xf32, #tpu.memory_space<vmem>>, %arg16: memref<1x1xf32, #tpu.memory_space<smem>>, %arg17: memref<8x8xf32, #tpu.memory_space<vmem>>) attributes {dimension_semantics = [#tpu.dimension_semantics<parallel>], iteration_bounds = array<i64: 1>, scalar_prefetch = 0 : i64, scratch_operands = 0 : i64, tpu.core_type = #tpu.core_type<tc>, window_params = [{transform_indices = @transform_0, window_bounds = array<i64: 8, 128>}, {transform_indices = @transform_1, window_bounds = array<i64: 8, 128>}, {transform_indices = @transform_2, window_bounds = array<i64: 8, 8, 128>}, {transform_indices = @transform_3, window_bounds = array<i64: 8, 8>}, {pipeline_mode = #tpu.pipeline_mode<synchronous>, transform_indices = @transform_4, window_bounds = array<i64: 128, 128>}, {pipeline_mode = #tpu.pipeline_mode<synchronous>, transform_indices = @transform_5, window_bounds = array<i64: 1, 128>}, {pipeline_mode = #tpu.pipeline_mode<synchronous>, transform_indices = @transform_6, window_bounds = array<i64: 128, 128>}, {pipeline_mode = #tpu.pipeline_mode<synchronous>, transform_indices = @transform_7, window_bounds = array<i64: 1, 128>}, {pipeline_mode = #tpu.pipeline_mode<synchronous>, transform_indices = @transform_8, window_bounds = array<i64: 128, 128>}, {pipeline_mode = #tpu.pipeline_mode<synchronous>, transform_indices = @transform_9, window_bounds = array<i64: 128, 128>}, {pipeline_mode = #tpu.pipeline_mode<synchronous>, transform_indices = @transform_10, window_bounds = array<i64: 1, 128>}, {pipeline_mode = #tpu.pipeline_mode<synchronous>, transform_indices = @transform_11, window_bounds = array<i64: 128, 128>}, {pipeline_mode = #tpu.pipeline_mode<synchronous>, transform_indices = @transform_12, window_bounds = array<i64: 128, 128>}, {pipeline_mode = #tpu.pipeline_mode<synchronous>, transform_indices = @transform_13, window_bounds = array<i64: 1, 128>}, {pipeline_mode = #tpu.pipeline_mode<synchronous>, transform_indices = @transform_14, window_bounds = array<i64: 1, 128>}, {transform_indices = @transform_15, window_bounds = array<i64: 1, 1>}, {transform_indices = @transform_16, window_bounds = array<i64: 8, 8>}]} {
    %c0 = arith.constant 0 : index
    %c0_0 = arith.constant 0 : index
    %0 = vector.load %arg1[%c0, %c0_0] : memref<8x128xf32, #tpu.memory_space<vmem>>, vector<8x128xf32>
    %c0_1 = arith.constant 0 : index
    %c0_2 = arith.constant 0 : index
    %1 = vector.load %arg5[%c0_1, %c0_2] : memref<128x128xf32, #tpu.memory_space<vmem>>, vector<128x128xf32>
    %cst = arith.constant dense<0.000000e+00> : vector<8x128xf32>
    %2 = tpu.matmul %0, %1, %cst {dimension_numbers = #tpu.dot_dimension_numbers<[1], [0], [0], [1], [0, 0, 1, 1], [], []>} : vector<8x128xf32>, vector<128x128xf32>, vector<8x128xf32> -> vector<8x128xf32>
    %c0_3 = arith.constant 0 : index
    %c0_4 = arith.constant 0 : index
    %3 = vector.load %arg6[%c0_3, %c0_4] : memref<1x128xf32, #tpu.memory_space<vmem>>, vector<1x128xf32>
    %4 = vector.broadcast %3 : vector<1x128xf32> to vector<8x128xf32>
    %5 = arith.addf %2, %4 : vector<8x128xf32>
    %cst_5 = arith.constant 0.000000e+00 : f32
    %6 = vector.broadcast %cst_5 : f32 to vector<8x128xf32>
    %7 = arith.subf %6, %5 : vector<8x128xf32>
    %8 = math.exp %7 : vector<8x128xf32>
    %cst_6 = arith.constant 1.000000e+00 : f32
    %9 = vector.broadcast %cst_6 : f32 to vector<8x128xf32>
    %10 = arith.addf %9, %8 : vector<8x128xf32>
    %cst_7 = arith.constant 1.000000e+00 : f32
    %11 = vector.broadcast %cst_7 : f32 to vector<8x128xf32>
    %12 = arith.divf %11, %10 : vector<8x128xf32>
    %13 = arith.mulf %5, %12 : vector<8x128xf32>
    %c0_8 = arith.constant 0 : index
    %c0_9 = arith.constant 0 : index
    %14 = vector.load %arg7[%c0_8, %c0_9] : memref<128x128xf32, #tpu.memory_space<vmem>>, vector<128x128xf32>
    %cst_10 = arith.constant dense<0.000000e+00> : vector<8x128xf32>
    %15 = tpu.matmul %13, %14, %cst_10 {dimension_numbers = #tpu.dot_dimension_numbers<[1], [0], [0], [1], [0, 0, 1, 1], [], []>} : vector<8x128xf32>, vector<128x128xf32>, vector<8x128xf32> -> vector<8x128xf32>
    %c0_11 = arith.constant 0 : index
    %c0_12 = arith.constant 0 : index
    %16 = vector.load %arg8[%c0_11, %c0_12] : memref<1x128xf32, #tpu.memory_space<vmem>>, vector<1x128xf32>
    %17 = vector.broadcast %16 : vector<1x128xf32> to vector<8x128xf32>
    %18 = arith.addf %15, %17 : vector<8x128xf32>
    %c0_13 = arith.constant 0 : index
    %c0_14 = arith.constant 0 : index
    %19 = vector.load %arg2[%c0_13, %c0_14] : memref<8x128xf32, #tpu.memory_space<vmem>>, vector<8x128xf32>
    %20 = arith.addf %19, %18 : vector<8x128xf32>
    %c0_15 = arith.constant 0 : index
    %c0_16 = arith.constant 0 : index
    %21 = vector.load %arg9[%c0_15, %c0_16] : memref<128x128xf32, #tpu.memory_space<vmem>>, vector<128x128xf32>
    %cst_17 = arith.constant dense<0.000000e+00> : vector<8x128xf32>
    %22 = tpu.matmul %20, %21, %cst_17 {dimension_numbers = #tpu.dot_dimension_numbers<[1], [0], [0], [1], [0, 0, 1, 1], [], []>} : vector<8x128xf32>, vector<128x128xf32>, vector<8x128xf32> -> vector<8x128xf32>
    %c0_18 = arith.constant 0 : index
    %c0_19 = arith.constant 0 : index
    %c0_20 = arith.constant 0 : index
    %23 = vector.load %arg3[%c0_18, %c0_19, %c0_20] : memref<8x8x128xf32, #tpu.memory_space<vmem>>, vector<8x8x128xf32>
    %24 = vector.shape_cast %22 : vector<8x128xf32> to vector<8x1x128xf32>
    %25 = vector.broadcast %24 : vector<8x1x128xf32> to vector<8x8x128xf32>
    %26 = arith.mulf %23, %25 : vector<8x8x128xf32>
    %cst_21 = arith.constant dense<0.000000e+00> : vector<8x8xf32>
    %27 = vector.multi_reduction <add>, %26, %cst_21 [2] : vector<8x8x128xf32> to vector<8x8xf32>
    %28 = arith.mulf %18, %22 : vector<8x128xf32>
    %cst_22 = arith.constant dense<0.000000e+00> : vector<8xf32>
    %29 = vector.multi_reduction <add>, %28, %cst_22 [1] : vector<8x128xf32> to vector<8xf32>
    %30 = vector.shape_cast %29 : vector<8xf32> to vector<8x1xf32>
    %31 = vector.broadcast %30 : vector<8x1xf32> to vector<8x8xf32>
    %32 = arith.addf %27, %31 : vector<8x8xf32>
    %c0_23 = arith.constant 0 : index
    %c0_24 = arith.constant 0 : index
    %33 = vector.load %arg4[%c0_23, %c0_24] : memref<8x8xf32, #tpu.memory_space<vmem>>, vector<8x8xf32>
    %34 = arith.addf %32, %33 : vector<8x8xf32>
    %cst_25 = arith.constant dense<0xFF800000> : vector<8xf32>
    %35 = vector.multi_reduction <maximumf>, %34, %cst_25 [1] : vector<8x8xf32> to vector<8xf32>
    %36 = vector.shape_cast %35 : vector<8xf32> to vector<8x1xf32>
    %37 = vector.broadcast %36 : vector<8x1xf32> to vector<8x8xf32>
    %38 = arith.subf %34, %37 : vector<8x8xf32>
    %39 = math.exp %38 : vector<8x8xf32>
    %cst_26 = arith.constant dense<0.000000e+00> : vector<8xf32>
    %40 = vector.multi_reduction <add>, %39, %cst_26 [1] : vector<8x8xf32> to vector<8xf32>
    %41 = vector.shape_cast %40 : vector<8xf32> to vector<8x1xf32>
    %42 = vector.broadcast %41 : vector<8x1xf32> to vector<8x8xf32>
    %43 = arith.divf %39, %42 : vector<8x8xf32>
    %cst_27 = arith.constant dense<0.000000e+00> : vector<8xf32>
    %44 = vector.multi_reduction <add>, %43, %cst_27 [1] : vector<8x8xf32> to vector<8xf32>
    %45 = vector.shape_cast %44 : vector<8xf32> to vector<8x1xf32>
    %46 = vector.shape_cast %43 : vector<8x8xf32> to vector<8x8x1xf32>
    %47 = vector.broadcast %46 : vector<8x8x1xf32> to vector<8x8x128xf32>
    %48 = arith.mulf %47, %23 : vector<8x8x128xf32>
    %cst_28 = arith.constant dense<0.000000e+00> : vector<8x128xf32>
    %49 = vector.multi_reduction <add>, %48, %cst_28 [1] : vector<8x8x128xf32> to vector<8x128xf32>
    %50 = vector.broadcast %45 : vector<8x1xf32> to vector<8x128xf32>
    %51 = arith.mulf %50, %18 : vector<8x128xf32>
    %52 = arith.addf %49, %51 : vector<8x128xf32>
    %c0_29 = arith.constant 0 : index
    %c0_30 = arith.constant 0 : index
    %53 = vector.load %arg10[%c0_29, %c0_30] : memref<128x128xf32, #tpu.memory_space<vmem>>, vector<128x128xf32>
    %cst_31 = arith.constant dense<0.000000e+00> : vector<8x128xf32>
    %54 = tpu.matmul %52, %53, %cst_31 {dimension_numbers = #tpu.dot_dimension_numbers<[1], [0], [0], [1], [0, 0, 1, 1], [], []>} : vector<8x128xf32>, vector<128x128xf32>, vector<8x128xf32> -> vector<8x128xf32>
    %c0_32 = arith.constant 0 : index
    %c0_33 = arith.constant 0 : index
    %55 = vector.load %arg11[%c0_32, %c0_33] : memref<1x128xf32, #tpu.memory_space<vmem>>, vector<1x128xf32>
    %56 = vector.broadcast %55 : vector<1x128xf32> to vector<8x128xf32>
    %57 = arith.addf %54, %56 : vector<8x128xf32>
    %c0_34 = arith.constant 0 : index
    %c0_35 = arith.constant 0 : index
    %58 = vector.load %arg12[%c0_34, %c0_35] : memref<128x128xf32, #tpu.memory_space<vmem>>, vector<128x128xf32>
    %cst_36 = arith.constant dense<0.000000e+00> : vector<8x128xf32>
    %59 = tpu.matmul %57, %58, %cst_36 {dimension_numbers = #tpu.dot_dimension_numbers<[1], [0], [0], [1], [0, 0, 1, 1], [], []>} : vector<8x128xf32>, vector<128x128xf32>, vector<8x128xf32> -> vector<8x128xf32>
    %c0_37 = arith.constant 0 : index
    %c0_38 = arith.constant 0 : index
    %60 = vector.load %arg14[%c0_37, %c0_38] : memref<1x128xf32, #tpu.memory_space<vmem>>, vector<1x128xf32>
    %61 = vector.broadcast %60 : vector<1x128xf32> to vector<8x128xf32>
    %62 = arith.addf %59, %61 : vector<8x128xf32>
    %c0_39 = arith.constant 0 : index
    %c0_40 = arith.constant 0 : index
    %c0_41 = arith.constant 0 : index
    %63 = vector.load %arg3[%c0_39, %c0_40, %c0_41] : memref<8x8x128xf32, #tpu.memory_space<vmem>>, vector<8x8x128xf32>
    %64 = vector.shape_cast %63 : vector<8x8x128xf32> to vector<64x128xf32>
    %c0_42 = arith.constant 0 : index
    %c0_43 = arith.constant 0 : index
    %65 = vector.load %arg13[%c0_42, %c0_43] : memref<128x128xf32, #tpu.memory_space<vmem>>, vector<128x128xf32>
    %cst_44 = arith.constant dense<0.000000e+00> : vector<64x128xf32>
    %66 = tpu.matmul %64, %65, %cst_44 {dimension_numbers = #tpu.dot_dimension_numbers<[1], [0], [0], [1], [0, 0, 1, 1], [], []>} : vector<64x128xf32>, vector<128x128xf32>, vector<64x128xf32> -> vector<64x128xf32>
    %67 = vector.shape_cast %66 : vector<64x128xf32> to vector<8x8x128xf32>
    %68 = vector.shape_cast %62 : vector<8x128xf32> to vector<8x1x128xf32>
    %69 = vector.broadcast %68 : vector<8x1x128xf32> to vector<8x8x128xf32>
    %70 = arith.addf %67, %69 : vector<8x8x128xf32>
    %cst_45 = arith.constant 0.000000e+00 : f32
    %71 = vector.broadcast %cst_45 : f32 to vector<8x8x128xf32>
    %72 = arith.maximumf %70, %71 : vector<8x8x128xf32>
    %c0_46 = arith.constant 0 : index
    %c0_47 = arith.constant 0 : index
    %73 = vector.load %arg15[%c0_46, %c0_47] : memref<1x128xf32, #tpu.memory_space<vmem>>, vector<1x128xf32>
    %74 = vector.shape_cast %73 : vector<1x128xf32> to vector<1x1x128xf32>
    %75 = vector.broadcast %74 : vector<1x1x128xf32> to vector<8x8x128xf32>
    %76 = arith.mulf %72, %75 : vector<8x8x128xf32>
    %cst_48 = arith.constant dense<0.000000e+00> : vector<8x8xf32>
    %77 = vector.multi_reduction <add>, %76, %cst_48 [2] : vector<8x8x128xf32> to vector<8x8xf32>
    %c0_49 = arith.constant 0 : index
    %c0_50 = arith.constant 0 : index
    %78 = memref.load %arg16[%c0_49, %c0_50] : memref<1x1xf32, #tpu.memory_space<smem>>
    %79 = vector.broadcast %78 : f32 to vector<8x8xf32>
    %80 = arith.addf %77, %79 : vector<8x8xf32>
    %81 = arith.addf %80, %43 : vector<8x8xf32>
    %c0_51 = arith.constant 0 : index
    %c0_52 = arith.constant 0 : index
    %82 = vector.load %arg17[%c0_51, %c0_52] : memref<8x8xf32, #tpu.memory_space<vmem>>, vector<8x8xf32>
    tpu.vector_store %arg17[%c0_51, %c0_52], %81 {strides = array<i32>} : memref<8x8xf32, #tpu.memory_space<vmem>>, vector<8x8xf32>,
    return
  }
  func.func @transform_0(%arg0: i32) -> (i32, i32) {
    %c0_i32 = arith.constant 0 : i32
    %c0_i32_0 = arith.constant 0 : i32
    return %arg0, %c0_i32 : i32, i32
  }
  func.func @transform_1(%arg0: i32) -> (i32, i32) {
    %c0_i32 = arith.constant 0 : i32
    %c0_i32_0 = arith.constant 0 : i32
    return %arg0, %c0_i32 : i32, i32
  }
  func.func @transform_2(%arg0: i32) -> (i32, i32, i32) {
    %c0_i32 = arith.constant 0 : i32
    %c0_i32_0 = arith.constant 0 : i32
    %c0_i32_1 = arith.constant 0 : i32
    return %arg0, %c0_i32, %c0_i32_0 : i32, i32, i32
  }
  func.func @transform_3(%arg0: i32) -> (i32, i32) {
    %c0_i32 = arith.constant 0 : i32
    %c0_i32_0 = arith.constant 0 : i32
    return %arg0, %c0_i32 : i32, i32
  }
  func.func @transform_4(%arg0: i32) -> (i32, i32) {
    %c0_i32 = arith.constant 0 : i32
    %c0_i32_0 = arith.constant 0 : i32
    %c0_i32_1 = arith.constant 0 : i32
    return %c0_i32, %c0_i32_0 : i32, i32
  }
  func.func @transform_5(%arg0: i32) -> (i32, i32) {
    %c0_i32 = arith.constant 0 : i32
    %c0_i32_0 = arith.constant 0 : i32
    %c0_i32_1 = arith.constant 0 : i32
    return %c0_i32, %c0_i32_0 : i32, i32
  }
  func.func @transform_6(%arg0: i32) -> (i32, i32) {
    %c0_i32 = arith.constant 0 : i32
    %c0_i32_0 = arith.constant 0 : i32
    %c0_i32_1 = arith.constant 0 : i32
    return %c0_i32, %c0_i32_0 : i32, i32
  }
  func.func @transform_7(%arg0: i32) -> (i32, i32) {
    %c0_i32 = arith.constant 0 : i32
    %c0_i32_0 = arith.constant 0 : i32
    %c0_i32_1 = arith.constant 0 : i32
    return %c0_i32, %c0_i32_0 : i32, i32
  }
  func.func @transform_8(%arg0: i32) -> (i32, i32) {
    %c0_i32 = arith.constant 0 : i32
    %c0_i32_0 = arith.constant 0 : i32
    %c0_i32_1 = arith.constant 0 : i32
    return %c0_i32, %c0_i32_0 : i32, i32
  }
  func.func @transform_9(%arg0: i32) -> (i32, i32) {
    %c0_i32 = arith.constant 0 : i32
    %c0_i32_0 = arith.constant 0 : i32
    %c0_i32_1 = arith.constant 0 : i32
    return %c0_i32, %c0_i32_0 : i32, i32
  }
  func.func @transform_10(%arg0: i32) -> (i32, i32) {
    %c0_i32 = arith.constant 0 : i32
    %c0_i32_0 = arith.constant 0 : i32
    %c0_i32_1 = arith.constant 0 : i32
    return %c0_i32, %c0_i32_0 : i32, i32
  }
  func.func @transform_11(%arg0: i32) -> (i32, i32) {
    %c0_i32 = arith.constant 0 : i32
    %c0_i32_0 = arith.constant 0 : i32
    %c0_i32_1 = arith.constant 0 : i32
    return %c0_i32, %c0_i32_0 : i32, i32
  }
  func.func @transform_12(%arg0: i32) -> (i32, i32) {
    %c0_i32 = arith.constant 0 : i32
    %c0_i32_0 = arith.constant 0 : i32
    %c0_i32_1 = arith.constant 0 : i32
    return %c0_i32, %c0_i32_0 : i32, i32
  }
  func.func @transform_13(%arg0: i32) -> (i32, i32) {
    %c0_i32 = arith.constant 0 : i32
    %c0_i32_0 = arith.constant 0 : i32
    %c0_i32_1 = arith.constant 0 : i32
    return %c0_i32, %c0_i32_0 : i32, i32
  }
  func.func @transform_14(%arg0: i32) -> (i32, i32) {
    %c0_i32 = arith.constant 0 : i32
    %c0_i32_0 = arith.constant 0 : i32
    %c0_i32_1 = arith.constant 0 : i32
    return %c0_i32, %c0_i32_0 : i32, i32
  }
  func.func @transform_15(%arg0: i32) -> (i32, i32) {
    %c0_i32 = arith.constant 0 : i32
    %c0_i32_0 = arith.constant 0 : i32
    %c0_i32_1 = arith.constant 0 : i32
    return %c0_i32, %c0_i32_0 : i32, i32
  }
  func.func @transform_16(%arg0: i32) -> (i32, i32) {
    %c0_i32 = arith.constant 0 : i32
    %c0_i32_0 = arith.constant 0 : i32
    return %arg0, %c0_i32 : i32, i32
  }
}

</mosaic_0001>

<bundles_post_ra>
// kernel: tpu_custom_call.1
= control target key start
LH: loop header
LB: loop body
LE: loop exit
PB: predicated region body
PF: predicated region fallthrough
CT: control target
= control target key end

     0   :  { %s3152_s0 = inlined_call_operand.hbm [shape: f32[8,128], index: 0, kind: input, shape index: {}]   ;;  %s3153_s1 = inlined_call_operand.hbm [shape: f32[8,128], index: 1, kind: input, shape index: {}]   ;;  %s3154_s2 = inlined_call_operand.hbm [shape: f32[8,8,128], index: 2, kind: input, shape index: {}]   ;;  %s3155_s3 = inlined_call_operand.vmem [shape: f32[8,8], index: 3, kind: input, shape index: {}]   ;;  %s3156_s4 = inlined_call_operand.hbm [shape: f32[128,128], index: 4, kind: input, shape index: {}]   ;;  %s3157_s5 = inlined_call_operand.vmem [shape: f32[1,128], index: 5, kind: input, shape index: {}]   ;;  %s3158_s6 = inlined_call_operand.hbm [shape: f32[128,128], index: 6, kind: input, shape index: {}]   ;;  %s3159_s7 = inlined_call_operand.vmem [shape: f32[1,128], index: 7, kind: input, shape index: {}]   ;;  %s3160_s8 = inlined_call_operand.hbm [shape: f32[128,128], index: 8, kind: input, shape index: {}]   ;;  %s3161_s9 = inlined_call_operand.hbm [shape: f32[128,128], index: 9, kind: input, shape index: {}]   ;;  %s3162_s10 = inlined_call_operand.vmem [shape: f32[1,128], index: 10, kind: input, shape index: {}]   ;;  %s3163_s11 = inlined_call_operand.hbm [shape: f32[128,128], index: 11, kind: input, shape index: {}]   ;;  %s3164_s12 = inlined_call_operand.hbm [shape: f32[128,128], index: 12, kind: input, shape index: {}]   ;;  %s3165_s13 = inlined_call_operand.vmem [shape: f32[1,128], index: 13, kind: input, shape index: {}]   ;;  %s3166_s14 = inlined_call_operand.vmem [shape: f32[1,128], index: 14, kind: input, shape index: {}]   ;;  %s3167_s15 = inlined_call_operand.<no memory space> [shape: f32[1,1], index: 15, kind: input, shape index: {}]   ;;  %s3168_s16 = inlined_call_operand.hbm [shape: f32[8,8], index: 16, kind: output, shape index: {}]  }
   0x1   :  { %3170 = sst [smem:[#allocation25_spill]] %s3152_s0 }
   0x2   :  { %22 = vsyncpa [#allocation4], 0 }
   0x3   :  { %23 = vsyncpa [#allocation7], 0 }
   0x4   :  { %24 = vsyncpa [#allocation10], 0 }
   0x5   :  { %25 = vsyncpa [#allocation13], 0 }
   0x6   :  { %26 = vsyncpa [#allocation16], 0 }
   0x7   :  { %27 = vsyncpa [#allocation5], 0  ;;  %s2498_s21 = smov [#allocation6]   ;;  %s2266_s25 = scalar_lea.hbm %s3153_s1, 128 }
   0x8   :  { %s44_s22 = sshll.u32 %s2498_s21, 4  ;;  %p2267_p0 = scmp.ne.s32.totalorder %s3153_s1, %s2266_s25  ;;  %s45_s22 = int_to_ptr.vmem [resolvable:$true] %s44_s22 }
   0x9   :  { %p2270_p1 = scmp.lt.u32.totalorder %s2266_s25, %s3153_s1 }
   0xb   :  { %p2272_p2 = pnand %p2270_p1, %p2267_p0 }
   0xd   :  { %2275 = shalt.err (!%p2272_p2)
}
   0xe   :  { %s2276_s30 = scalar_lea.vmem %s45_s22, 128  ;;  %p2281_p4 = scmp.lt.s32.totalorder %s45_s22, %s45_s22 }
   0xf   :  { %p2277_p3 = scmp.ne.s32.totalorder %s45_s22, %s2276_s30  ;;  %p2282_p5 = scmp.lt.s32.totalorder %s2276_s30, %s2276_s30 }
  0x11   :  { %p2283_p6 = por %p2282_p5, %p2281_p4 }
  0x13   :  { %p2284_p7 = pnand %p2283_p6, %p2277_p3 }
  0x15   :  { %2287 = shalt.err (!%p2284_p7)
}
  0x16   :  { %47 = dma.hbm_to_vmem [thread:$0]  %s3153_s1, 128, %s45_s22, [#allocation7]  }
  0x17   :  { %s2499_s18 = smov [#allocation9]   ;;  %s2500_s20 = smov [#allocation12]  }
  0x18   :  { %s67_s19 = sshll.u32 %s2499_s18, 4  ;;  %s95_s21 = sshll.u32 %s2500_s20, 4  ;;  %s68_s19 = int_to_ptr.vmem [resolvable:$true] %s67_s19  ;;  %s96_s21 = int_to_ptr.vmem [resolvable:$true] %s95_s21 }
  0x19   :  { %s2288_s25 = scalar_lea.hbm %s3156_s4, 2048 }
  0x1a   :  { %p2289_p8 = scmp.ne.s32.totalorder %s3156_s4, %s2288_s25  ;;  %p2292_p9 = scmp.lt.u32.totalorder %s2288_s25, %s3156_s4 }
  0x1c   :  { %p2294_p10 = pnand %p2292_p9, %p2289_p8 }
  0x1e   :  { %2297 = shalt.err (!%p2294_p10)
}
  0x1f   :  { %s2298_s1 = scalar_lea.vmem %s68_s19, 2048  ;;  %p2303_p12 = scmp.lt.s32.totalorder %s68_s19, %s68_s19 }
  0x20   :  { %p2299_p11 = scmp.ne.s32.totalorder %s68_s19, %s2298_s1  ;;  %p2304_p13 = scmp.lt.s32.totalorder %s2298_s1, %s2298_s1 }
  0x22   :  { %p2305_p0 = por %p2304_p13, %p2303_p12 }
  0x24   :  { %p2306_p1 = pnand %p2305_p0, %p2299_p11 }
  0x26   :  { %2309 = shalt.err (!%p2306_p1)
}
  0x27   :  { %s2501_s22 = smov 128   ;;  %s2502_s30 = smov 8  }
  0x28   :  { %73 = dma.hbm_to_vmem [thread:$0]  %s3156_s4, 2048, %s68_s19, [#allocation10], %s2501_s22, %s2501_s22, %s2502_s30  }
  0x29   :  { %s2310_s23 = scalar_lea.hbm %s3160_s8, 2048 }
  0x2a   :  { %p2311_p2 = scmp.ne.s32.totalorder %s3160_s8, %s2310_s23  ;;  %p2314_p3 = scmp.lt.u32.totalorder %s2310_s23, %s3160_s8 }
  0x2c   :  { %p2316_p4 = pnand %p2314_p3, %p2311_p2 }
  0x2e   :  { %2319 = shalt.err (!%p2316_p4)
}
  0x2f   :  { %s2320_s28 = scalar_lea.vmem %s96_s21, 2048  ;;  %p2325_p6 = scmp.lt.s32.totalorder %s96_s21, %s96_s21 }
  0x30   :  { %p2321_p5 = scmp.ne.s32.totalorder %s96_s21, %s2320_s28  ;;  %p2326_p7 = scmp.lt.s32.totalorder %s2320_s28, %s2320_s28 }
  0x32   :  { %p2327_p8 = por %p2326_p7, %p2325_p6 }
  0x34   :  { %p2328_p9 = pnand %p2327_p8, %p2321_p5 }
  0x36   :  { %2331 = shalt.err (!%p2328_p9)
}
  0x37   :  { %101 = dma.hbm_to_vmem [thread:$0]  %s3160_s8, 2048, %s96_s21, [#allocation13], %s2501_s22, %s2501_s22, %s2502_s30  }
  0x38   :  { %s2503_s29 = smov [#allocation15]   ;;  %s2504_s0 = smov [#allocation3]  }
  0x39   :  { %s121_s1 = sshll.u32 %s2503_s29, 4  ;;  %s34_s17 = sshll.u32 %s2504_s0, 4  ;;  %s122_s1 = int_to_ptr.vmem [resolvable:$true] %s121_s1  ;;  %s35_s17 = int_to_ptr.vmem [resolvable:$true] %s34_s17 }
  0x3a   :  { %s2332_s23 = scalar_lea.hbm %s3163_s11, 2048 }
  0x3b   :  { %p2333_p10 = scmp.ne.s32.totalorder %s3163_s11, %s2332_s23  ;;  %p2336_p11 = scmp.lt.u32.totalorder %s2332_s23, %s3163_s11 }
  0x3d   :  { %p2338_p12 = pnand %p2336_p11, %p2333_p10 }
  0x3f   :  { %2341 = shalt.err (!%p2338_p12)
}
  0x40   :  { %s2342_s8 = scalar_lea.vmem %s122_s1, 2048  ;;  %p2347_p0 = scmp.lt.s32.totalorder %s122_s1, %s122_s1 }
  0x41   :  { %p2343_p13 = scmp.ne.s32.totalorder %s122_s1, %s2342_s8  ;;  %p2348_p1 = scmp.lt.s32.totalorder %s2342_s8, %s2342_s8 }
  0x43   :  { %p2349_p2 = por %p2348_p1, %p2347_p0 }
  0x45   :  { %p2350_p3 = pnand %p2349_p2, %p2343_p13 }
  0x47   :  { %2353 = shalt.err (!%p2350_p3)
}
  0x48   :  { %127 = dma.hbm_to_vmem [thread:$0]  %s3163_s11, 2048, %s122_s1, [#allocation16], %s2501_s22, %s2501_s22, %s2502_s30  }
  0x49   :  { %s3171_s29 = sld [smem:[#allocation25_spill]] }
  0x4f   :  { %s2354_s0 = scalar_lea.hbm %s3171_s29, 128 }
  0x50   :  { %p2355_p4 = scmp.ne.s32.totalorder %s3171_s29, %s2354_s0  ;;  %p2358_p5 = scmp.lt.u32.totalorder %s2354_s0, %s3171_s29 }
  0x52   :  { %p2360_p6 = pnand %p2358_p5, %p2355_p4 }
  0x54   :  { %2363 = shalt.err (!%p2360_p6)
}
  0x55   :  { %s2364_s25 = scalar_lea.vmem %s35_s17, 128  ;;  %p2369_p8 = scmp.lt.s32.totalorder %s35_s17, %s35_s17 }
  0x56   :  { %p2365_p7 = scmp.ne.s32.totalorder %s35_s17, %s2364_s25  ;;  %p2370_p9 = scmp.lt.s32.totalorder %s2364_s25, %s2364_s25 }
  0x58   :  { %p2371_p10 = por %p2370_p9, %p2369_p8 }
  0x5a   :  { %p2372_p11 = pnand %p2371_p10, %p2365_p7 }
  0x5c   :  { %2375 = shalt.err (!%p2372_p11)
}
  0x5d   :  { %37 = dma.hbm_to_vmem [thread:$0]  %s3171_s29, 128, %s35_s17, [#allocation4]  }
  0x5e   :  { %s2505_s26 = smov [#allocation8]   ;;  %s2506_s8 = smov [#allocation11]  }
  0x5f   :  { %s53_s27 = sshll.u32 %s2505_s26, 4  ;;  %s81_s21 = sshll.u32 %s2506_s8, 4  ;;  %s54_s27 = int_to_ptr.vmem [resolvable:$true] %s53_s27  ;;  %s82_s21 = int_to_ptr.vmem [resolvable:$true] %s81_s21 }
  0x60   :  { %s2376_s19 = scalar_lea.hbm %s3154_s2, 1024 }
  0x61   :  { %p2377_p12 = scmp.ne.s32.totalorder %s3154_s2, %s2376_s19  ;;  %p2380_p13 = scmp.lt.u32.totalorder %s2376_s19, %s3154_s2 }
  0x63   :  { %p2382_p0 = pnand %p2380_p13, %p2377_p12 }
  0x65   :  { %2385 = shalt.err (!%p2382_p0)
}
  0x66   :  { %s2386_s17 = scalar_lea.vmem %s54_s27, 1024  ;;  %p2391_p2 = scmp.lt.s32.totalorder %s54_s27, %s54_s27 }
  0x67   :  { %p2387_p1 = scmp.ne.s32.totalorder %s54_s27, %s2386_s17  ;;  %p2392_p3 = scmp.lt.s32.totalorder %s2386_s17, %s2386_s17 }
  0x69   :  { %p2393_p4 = por %p2392_p3, %p2391_p2 }
  0x6b   :  { %p2394_p5 = pnand %p2393_p4, %p2387_p1 }
  0x6d   :  { %2397 = shalt.err (!%p2394_p5)
}
  0x6e   :  { %59 = dma.hbm_to_vmem [thread:$0]  %s3154_s2, 1024, %s54_s27, [#allocation7], %s2501_s22, %s2501_s22, %s2502_s30  }
  0x6f   :  { %s2398_s1 = scalar_lea.hbm %s3158_s6, 2048 }
  0x70   :  { %p2399_p6 = scmp.ne.s32.totalorder %s3158_s6, %s2398_s1  ;;  %p2402_p7 = scmp.lt.u32.totalorder %s2398_s1, %s3158_s6 }
  0x72   :  { %p2404_p8 = pnand %p2402_p7, %p2399_p6 }
  0x74   :  { %2407 = shalt.err (!%p2404_p8)
}
  0x75   :  { %s2408_s19 = scalar_lea.vmem %s82_s21, 2048  ;;  %p2413_p10 = scmp.lt.s32.totalorder %s82_s21, %s82_s21 }
  0x76   :  { %p2409_p9 = scmp.ne.s32.totalorder %s82_s21, %s2408_s19  ;;  %p2414_p11 = scmp.lt.s32.totalorder %s2408_s19, %s2408_s19 }
  0x78   :  { %p2415_p12 = por %p2414_p11, %p2413_p10 }
  0x7a   :  { %p2416_p13 = pnand %p2415_p12, %p2409_p9 }
  0x7c   :  { %2419 = shalt.err (!%p2416_p13)
}
  0x7d   :  { %87 = dma.hbm_to_vmem [thread:$0]  %s3158_s6, 2048, %s82_s21, [#allocation10], %s2501_s22, %s2501_s22, %s2502_s30  }
  0x7e   :  { %s2507_s0 = smov [#allocation14]   ;;  %s2508_s20 = smov [#allocation17]  }
  0x7f   :  { %s107_s18 = sshll.u32 %s2507_s0, 4  ;;  %s133_s23 = sshll.u32 %s2508_s20, 4  ;;  %s108_s18 = int_to_ptr.vmem [resolvable:$true] %s107_s18  ;;  %s134_s23 = int_to_ptr.vmem [resolvable:$true] %s133_s23 }
  0x80   :  { %s2420_s24 = scalar_lea.hbm %s3161_s9, 2048 }
  0x81   :  { %p2421_p0 = scmp.ne.s32.totalorder %s3161_s9, %s2420_s24  ;;  %p2424_p1 = scmp.lt.u32.totalorder %s2420_s24, %s3161_s9 }
  0x83   :  { %p2426_p2 = pnand %p2424_p1, %p2421_p0 }
  0x85   :  { %2429 = shalt.err (!%p2426_p2)
}
  0x86   :  { %s2430_s6 = scalar_lea.vmem %s108_s18, 2048  ;;  %p2435_p4 = scmp.lt.s32.totalorder %s108_s18, %s108_s18 }
  0x87   :  { %p2431_p3 = scmp.ne.s32.totalorder %s108_s18, %s2430_s6  ;;  %p2436_p5 = scmp.lt.s32.totalorder %s2430_s6, %s2430_s6 }
  0x89   :  { %p2437_p6 = por %p2436_p5, %p2435_p4 }
  0x8b   :  { %p2438_p7 = pnand %p2437_p6, %p2431_p3 }
  0x8d   :  { %2441 = shalt.err (!%p2438_p7)
}
  0x8e   :  { %113 = dma.hbm_to_vmem [thread:$0]  %s3161_s9, 2048, %s108_s18, [#allocation13], %s2501_s22, %s2501_s22, %s2502_s30  }
  0x8f   :  { %s2442_s19 = scalar_lea.hbm %s3164_s12, 2048 }
  0x90   :  { %p2443_p8 = scmp.ne.s32.totalorder %s3164_s12, %s2442_s19  ;;  %p2446_p9 = scmp.lt.u32.totalorder %s2442_s19, %s3164_s12 }
  0x92   :  { %p2448_p10 = pnand %p2446_p9, %p2443_p8 }
  0x94   :  { %2451 = shalt.err (!%p2448_p10)
}
  0x95   :  { %s2452_s17 = scalar_lea.vmem %s134_s23, 2048  ;;  %p2457_p12 = scmp.lt.s32.totalorder %s134_s23, %s134_s23 }
  0x96   :  { %p2453_p11 = scmp.ne.s32.totalorder %s134_s23, %s2452_s17  ;;  %p2458_p13 = scmp.lt.s32.totalorder %s2452_s17, %s2452_s17 }
  0x98   :  { %p2459_p0 = por %p2458_p13, %p2457_p12 }
  0x9a   :  { %p2460_p1 = pnand %p2459_p0, %p2453_p11 }
  0x9c   :  { %2463 = shalt.err (!%p2460_p1)
}
  0x9d   :  { %139 = dma.hbm_to_vmem [thread:$0]  %s3164_s12, 2048, %s134_s23, [#allocation16], %s2501_s22, %s2501_s22, %s2502_s30  }
  0x9e   :  { %2486 = dma.done.wait [#allocation4], 128  }
  0x9f   :  { %2487 = vsyncadd [#allocation4], 4294967168 }
  0xa0   :  { %2488 = dma.done.wait [#allocation7], 1152  }
  0xa1   :  { %2489 = vsyncadd [#allocation7], 4294966144 }
  0xa2   :  { %2490 = dma.done.wait [#allocation10], 4096  }
  0xa3   :  { %2491 = vsyncadd [#allocation10], 4294963200 }
  0xa4   :  { %2492 = dma.done.wait [#allocation13], 4096  }
  0xa5   :  { %2493 = vsyncadd [#allocation13], 4294963200 }
  0xa6   :  { %2494 = dma.done.wait [#allocation16], 4096  }
  0xa7   :  { %2495 = vsyncadd [#allocation16], 4294963200  ;;  %v2509_v0 = vmov 0.0|0.0   ;;  %vm2510_vm0 = vmmov 0   ;;  %v2511_v1 = vmov 0.0   ;;  %v174_v2 = vld [vmem:[#allocation9] sm:$0xff] }
  0xa8   :  { %2059 = vmatprep.subr.bf16.mxu0 %v2509_v0  ;;  %1872 = vmatprep.mubr.msk.f32.mxu0 %vm2510_vm0, %v2511_v1  ;;  %v175_v3 = vld [vmem:[#allocation9 + $0x8] sm:$0xff]  ;;  %v176_v4 = vld [vmem:[#allocation9 + $0x10] sm:$0xff]  ;;  %v177_v6 = vld [vmem:[#allocation9 + $0x18] sm:$0xff]  ;;  %vm769_vm1 = vcmask 1041409   ;;  %vm771_vm2 = vcmask 1042434   ;;  %vm773_vm3 = vcmask 1043459  }
  0xa9   :  { %2083 = vmatprep.subr.bf16.mxu1 %v2509_v0  ;;  %1907 = vmatprep.mubr.msk.f32.mxu1 %vm2510_vm0, %v2511_v1  ;;  %v2060_v5 = vpack.c.bf16 %v175_v3, %v174_v2  ;;  %v2063_v7 = vpack.c.bf16 %v177_v6, %v176_v4  ;;  %v178_v8 = vld [vmem:[#allocation9 + $0x20] sm:$0xff]  ;;  %v179_v9 = vld [vmem:[#allocation9 + $0x28] sm:$0xff]  ;;  %v180_v11 = vld [vmem:[#allocation9 + $0x30] sm:$0xff]  ;;  %vm775_vm4 = vcmask 1044484   ;;  %vm777_vm5 = vcmask 1045509  }
  0xaa   :  { %v2066_v10 = vpack.c.bf16 %v179_v9, %v178_v8  ;;  %v181_v12 = vld [vmem:[#allocation9 + $0x38] sm:$0xff]  ;;  %v182_v14 = vld [vmem:[#allocation9 + $0x40] sm:$0xff]  ;;  %v183_v15 = vld [vmem:[#allocation9 + $0x48] sm:$0xff]  ;;  %vm779_vm6 = vcmask 1046534   ;;  %vm781_vm7 = vcmask 1047559   ;;  %vm784_vm8 = vcmask 64512  }
  0xab   :  { %2061 = vmatpush3.bf16.msra.mxu0 %v2060_v5  ;;  %v2069_v13 = vpack.c.bf16 %v181_v12, %v180_v11  ;;  %v2072_v16 = vpack.c.bf16 %v183_v15, %v182_v14  ;;  %v184_v17 = vld [vmem:[#allocation9 + $0x50] sm:$0xff]  ;;  %v185_v18 = vld [vmem:[#allocation9 + $0x58] sm:$0xff]  ;;  %v186_v20 = vld [vmem:[#allocation9 + $0x60] sm:$0xff] }
  0xac   :  { %2062 = vmatprep.subr.bf16.mxu0 %v2509_v0  ;;  %v2075_v19 = vpack.c.bf16 %v185_v18, %v184_v17  ;;  %v187_v21 = vld [vmem:[#allocation9 + $0x68] sm:$0xff]  ;;  %v188_v23 = vld [vmem:[#allocation9 + $0x70] sm:$0xff]  ;;  %v189_v24 = vld [vmem:[#allocation9 + $0x78] sm:$0xff] }
  0xad   :  { %v2078_v22 = vpack.c.bf16 %v187_v21, %v186_v20  ;;  %v2081_v25 = vpack.c.bf16 %v189_v24, %v188_v23  ;;  %v173_v26 = vld [vmem:[#allocation3] sm:$0xff]  ;;  %v274_v27 = vld [vmem:[#allocation11] sm:$0xff]  ;;  %v275_v28 = vld [vmem:[#allocation11 + $0x8] sm:$0xff]  ;;  %v468_v23 = vlaneseq }
  0xae   :  { %v2084_v29 = vpack.c.bf16 %v275_v28, %v274_v27  ;;  %v276_v30 = vld [vmem:[#allocation11 + $0x10] sm:$0xff]  ;;  %v277_v31 = vld [vmem:[#allocation11 + $0x18] sm:$0xff]  ;;  %v278_v33 = vld [vmem:[#allocation11 + $0x20] sm:$0xff] }
  0xaf   :  { %2064 = vmatpush3.bf16.msra.mxu0 %v2063_v7  ;;  %v2087_v32 = vpack.c.bf16 %v277_v31, %v276_v30  ;;  %v279_v34 = vld [vmem:[#allocation11 + $0x28] sm:$0xff]  ;;  %v280_v36 = vld [vmem:[#allocation11 + $0x30] sm:$0xff]  ;;  %v281_v37 = vld [vmem:[#allocation11 + $0x38] sm:$0xff]  ;;  %v2767_v24 = vshrl.u32 %v468_v23, 7 }
  0xb0   :  { %2065 = vmatprep.subr.bf16.mxu0 %v2509_v0  ;;  %2085 = vmatpush3.bf16.msra.mxu1 %v2084_v29  ;;  %v2090_v35 = vpack.c.bf16 %v279_v34, %v278_v33  ;;  %v2093_v38 = vpack.c.bf16 %v281_v37, %v280_v36  ;;  %v282_v39 = vld [vmem:[#allocation11 + $0x40] sm:$0xff]  ;;  %v283_v40 = vld [vmem:[#allocation11 + $0x48] sm:$0xff]  ;;  %v284_v42 = vld [vmem:[#allocation11 + $0x50] sm:$0xff] }
  0xb1   :  { %2086 = vmatprep.subr.bf16.mxu1 %v2509_v0  ;;  %v2096_v41 = vpack.c.bf16 %v283_v40, %v282_v39  ;;  %v285_v43 = vld [vmem:[#allocation11 + $0x58] sm:$0xff]  ;;  %v286_v45 = vld [vmem:[#allocation11 + $0x60] sm:$0xff]  ;;  %v287_v46 = vld [vmem:[#allocation11 + $0x68] sm:$0xff]  ;;  %v2778_v27 = vsub.s32 2, %v2767_v24  ;;  %v2781_v28 = vsub.s32 1, %v2767_v24  ;;  %v2784_v29 = vsub.s32 5, %v2767_v24 }
  0xb2   :  { %v2099_v44 = vpack.c.bf16 %v285_v43, %v284_v42  ;;  %v2102_v47 = vpack.c.bf16 %v287_v46, %v286_v45  ;;  %v288_v48 = vld [vmem:[#allocation11 + $0x70] sm:$0xff]  ;;  %v289_v49 = vld [vmem:[#allocation11 + $0x78] sm:$0xff]  ;;  %v369_v51 = vld [vmem:[#allocation12] sm:$0xff]  ;;  %v2793_v33 = vsub.s32 3, %v2767_v24  ;;  %v2800_v36 = vsub.s32 4, %v2767_v24 }
  0xb3   :  { %2067 = vmatpush3.bf16.msra.mxu0 %v2066_v10  ;;  %v2105_v50 = vpack.c.bf16 %v289_v49, %v288_v48  ;;  %v370_v52 = vld [vmem:[#allocation12 + $0x8] sm:$0xff]  ;;  %v371_v53 = vld [vmem:[#allocation12 + $0x10] sm:$0xff]  ;;  %v372_v55 = vld [vmem:[#allocation12 + $0x18] sm:$0xff] }
  0xb4   :  { %2068 = vmatprep.subr.bf16.mxu0 %v2509_v0  ;;  %2088 = vmatpush3.bf16.msra.mxu1 %v2087_v32  ;;  %v2108_v54 = vpack.c.bf16 %v370_v52, %v369_v51  ;;  %v2111_v56 = vpack.c.bf16 %v372_v55, %v371_v53  ;;  %v373_v57 = vld [vmem:[#allocation12 + $0x20] sm:$0xff]  ;;  %v374_v58 = vld [vmem:[#allocation12 + $0x28] sm:$0xff]  ;;  %v375_v60 = vld [vmem:[#allocation12 + $0x30] sm:$0xff] }
  0xb5   :  { %2089 = vmatprep.subr.bf16.mxu1 %v2509_v0  ;;  %v2114_v59 = vpack.c.bf16 %v374_v58, %v373_v57  ;;  %v376_v61 = vld [vmem:[#allocation12 + $0x38] sm:$0xff]  ;;  %v377_v63 = vld [vmem:[#allocation12 + $0x40] sm:$0xff]  ;;  %v378_v2 = vld [vmem:[#allocation12 + $0x48] sm:$0xff] }
  0xb6   :  { %v2117_v62 = vpack.c.bf16 %v376_v61, %v375_v60  ;;  %v2120_v3 = vpack.c.bf16 %v378_v2, %v377_v63  ;;  %v379_v4 = vld [vmem:[#allocation12 + $0x50] sm:$0xff]  ;;  %v380_v5 = vld [vmem:[#allocation12 + $0x58] sm:$0xff]  ;;  %v381_v7 = vld [vmem:[#allocation12 + $0x60] sm:$0xff] }
  0xb7   :  { %2070 = vmatpush3.bf16.msra.mxu0 %v2069_v13  ;;  %v2123_v6 = vpack.c.bf16 %v380_v5, %v379_v4  ;;  %v382_v8 = vld [vmem:[#allocation12 + $0x68] sm:$0xff]  ;;  %v1726_v10 = vld [vmem:[%s3157_s5] ss:$0 sm:$0xff]  ;;  %v384_v21 = vld [vmem:[#allocation12 + $0x78] sm:$0xff] }
  0xb8   :  { %2071 = vmatprep.subr.bf16.mxu0 %v2509_v0  ;;  %2091 = vmatpush3.bf16.msra.mxu1 %v2090_v35  ;;  %v2126_v9 = vpack.c.bf16 %v382_v8, %v381_v7  ;;  %v383_v20 = vld [vmem:[#allocation12 + $0x70] sm:$0xff]  ;;  %v367_v40 = vld [vmem:[#allocation6] sm:$0xff]  ;;  %v2823_v60 = vld [vmem:[#allocation8 + $0x8] sm:$0xff] }
  0xb9   :  { %2092 = vmatprep.subr.bf16.mxu1 %v2509_v0  ;;  %v2827_v2 = vld [vmem:[#allocation8 + $0x18] sm:$0xff]  ;;  %v2834_v8 = vld [vmem:[#allocation8 + $0x10] sm:$0xff] }
  0xbb   :  { %2073 = vmatpush3.bf16.msra.mxu0 %v2072_v16 }
  0xbc   :  { %2074 = vmatprep.subr.bf16.mxu0 %v2509_v0  ;;  %2094 = vmatpush3.bf16.msra.mxu1 %v2093_v38  ;;  %v1727_v38 = vld [vmem:[%s3159_s7] ss:$0 sm:$0xff] }
  0xbd   :  { %2095 = vmatprep.subr.bf16.mxu1 %v2509_v0 }
  0xbf   :  { %2076 = vmatpush3.bf16.msra.mxu0 %v2075_v19 }
  0xc0   :  { %2077 = vmatprep.subr.bf16.mxu0 %v2509_v0  ;;  %2097 = vmatpush3.bf16.msra.mxu1 %v2096_v41 }
  0xc1   :  { %2098 = vmatprep.subr.bf16.mxu1 %v2509_v0 }
  0xc3   :  { %2079 = vmatpush3.bf16.msra.mxu0 %v2078_v22  ;;  %v2129_v22 = vpack.c.bf16 %v384_v21, %v383_v20 }
  0xc4   :  { %2080 = vmatprep.subr.bf16.mxu0 %v2509_v0  ;;  %2100 = vmatpush3.bf16.msra.mxu1 %v2099_v44  ;;  %v2512_v44 = vmov 1966171168  }
  0xc5   :  { %2101 = vmatprep.subr.bf16.mxu1 %v2509_v0  ;;  %v466_v45 = vunpack.c.l.s4 %v2512_v44 }
  0xc7   :  { %2082 = vmatpush3.bf16.msra.mxu0 %v2081_v25  ;;  %v2772_v25 = vld [vmem:[%s3155_s3] sm:$0xff]  ;;  %v467_v46 = vunpack.c.0.s8 %v466_v45 }
  0xc8   :  { %2107 = vmatprep.subr.bf16.mxu0 %v2509_v0  ;;  %2103 = vmatpush3.bf16.msra.mxu1 %v2102_v47  ;;  %v641_v31 = vrot.slane %v2772_v25, %v2781_v28  ;;  %v648_v32 = vrot.slane %v2772_v25, %v2778_v27  ;;  %v669_v34 = vrot.slane %v2772_v25, %v2784_v29 }
  0xc9   :  { %2104 = vmatprep.subr.bf16.mxu1 %v2509_v0  ;;  %v655_v35 = vrot.slane %v2772_v25, %v2793_v33  ;;  %v662_v37 = vrot.slane %v2772_v25, %v2800_v36  ;;  %v2813_v47 = vsub.s32 %v467_v46, %v2767_v24 }
  0xca   :  { %1873 = vmatmul.mubr.f32.vlgmr.msra.gmra.mrb[0].mxu0 %v173_v26  ;;  %v2775_v26 = vsub.s32 0, %v2767_v24  ;;  %643 = vbcast.lane.b32.xlu0 %v641_v31, 256 }
  0xcb   :  { %1942 = vmatprep.mubr.msk.f32.mxu0 %vm2510_vm0, %v2511_v1  ;;  %2109 = vmatpush3.bf16.msra.mxu0 %v2108_v54 }
  0xcc   :  { %2106 = vmatpush3.bf16.msra.mxu1 %v2105_v50  ;;  %2110 = vmatprep.subr.bf16.mxu0 %v2509_v0  ;;  %v634_v30 = vrot.slane %v2772_v25, %v2775_v26 }
  0xcd   :  { %2131 = vmatprep.subr.bf16.mxu1 %v2509_v0 }
  0xce   :  { %636 = vbcast.lane.b32.xlu1 %v634_v30, 256  ;;  %671 = vbcast.lane.b32.xlu0 %v669_v34, 256  ;;  %v2855_v34 = vsub.s32 6, %v2767_v24 }
  0xcf   :  { %2112 = vmatpush3.bf16.msra.mxu0 %v2111_v56 }
  0xd0   :  { %2113 = vmatprep.subr.bf16.mxu0 %v2509_v0 }
  0xd2   :  { %650 = vbcast.lane.b32.xlu1 %v648_v32, 256  ;;  %v2513_v32 = vmov 0  }
  0xd3   :  { %2115 = vmatpush3.bf16.msra.mxu0 %v2114_v59  ;;  %2228 = vset.pattern.permute.xlu1 %v2513_v32 }
  0xd4   :  { %2116 = vmatprep.subr.bf16.mxu0 %v2509_v0  ;;  %2229 = vset.pattern.permute.xlu0 %v2513_v32 }
  0xd6   :  { %657 = vbcast.lane.b32.xlu1 %v655_v35, 256  ;;  %v2858_v35 = vsub.s32 7, %v2767_v24 }
  0xd7   :  { %2118 = vmatpush3.bf16.msra.mxu0 %v2117_v62 }
  0xd8   :  { %2119 = vmatprep.subr.bf16.mxu0 %v2509_v0 }
  0xda   :  { %664 = vbcast.lane.b32.xlu1 %v662_v37, 256  ;;  %v676_v37 = vrot.slane %v2772_v25, %v2855_v34 }
  0xdb   :  { %2121 = vmatpush3.bf16.msra.mxu0 %v2120_v3 }
  0xdc   :  { %2122 = vmatprep.subr.bf16.mxu0 %v2509_v0 }
  0xdf   :  { %2124 = vmatpush3.bf16.msra.mxu0 %v2123_v6 }
  0xe0   :  { %2125 = vmatprep.subr.bf16.mxu0 %v2509_v0 }
  0xe3   :  { %2127 = vmatpush3.bf16.msra.mxu0 %v2126_v9 }
  0xe4   :  { %2128 = vmatprep.subr.bf16.mxu0 %v2509_v0 }
  0xe7   :  { %2130 = vmatpush3.bf16.msra.mxu0 %v2129_v22  ;;  %v2850_v22 = vld [vmem:[#allocation8 + $0x30] sm:$0xff] }
  0xe8   :  { %2155 = vmatprep.subr.bf16.mxu0 %v2509_v0 }
 0x19d   :  { %v263_v11 = vpop.f32.mrb[0].mxu0 }
 0x19e   :  { %v264_v12 = vadd.f32 %v1726_v10, %v263_v11  ;;  %v1874_v13 = vpop.f32.mrb[1].mxu0 }
 0x1a0   :  { %v267_v14 = vsub.f32 0.0, %v264_v12 }
 0x1a2   :  { %v268_v15 = vmul.f32 1.442695, %v267_v14 }
 0x1a4   :  { %2230 = vpow2.f32 %v268_v15 }
 0x1ae   :  { %v2231_v16 = vpop.eup %2230 }
 0x1af   :  { %v270_v17 = vadd.f32 1.0, %v2231_v16  ;;  %v2842_v16 = vld [vmem:[#allocation8 + $0x20] sm:$0xff] }
 0x1b1   :  { %2232 = vrcp.f32 %v270_v17 }
 0x1bb   :  { %v2233_v18 = vpop.eup %2232 }
 0x1bc   :  { %v273_v19 = vmul.f32 %v2233_v18, %v264_v12  ;;  %v2838_v12 = vld [vmem:[#allocation8 + $0x28] sm:$0xff] }
 0x1be   :  { %1908 = vmatmul.mubr.f32.vlgmr.msra.gmra.mrb[0].mxu1 %v273_v19  ;;  %v2846_v19 = vld [vmem:[#allocation8 + $0x38] sm:$0xff] }
 0x1bf   :  { %1977 = vmatprep.mubr.msk.f32.mxu1 %vm2510_vm0, %v2511_v1 }
 0x291   :  { %v363_v39 = vpop.f32.mrb[0].mxu1 }
 0x292   :  { %v2807_v41 = vadd.f32 %v1727_v38, %v363_v39  ;;  %v1909_v42 = vpop.f32.mrb[1].mxu1  ;;  %v683_v38 = vrot.slane %v2772_v25, %v2858_v35  ;;  %v637_v39 = vpop.permute.xlu1 %636 }
 0x293   :  { %v644_v42 = vpop.permute.xlu0 %643 }
 0x294   :  { %v368_v43 = vadd.f32 %v367_v40, %v2807_v41 }
 0x296   :  { %1943 = vmatmul.mubr.f32.vlgmr.msra.gmra.mrb[2].mxu0 %v368_v43  ;;  %v651_v40 = vpop.permute.xlu1 %650 }
 0x297   :  { %2012 = vmatprep.mubr.msk.f32.mxu0 %vm2510_vm0, %v2511_v1  ;;  %v2819_v1 = vld [vmem:[#allocation8] sm:$0xff]  ;;  %v672_v44 = vpop.permute.xlu0 %671 }
 0x29a   :  { %v658_v43 = vpop.permute.xlu1 %657 }
 0x29e   :  { %v665_v46 = vpop.permute.xlu1 %664 }
 0x369   :  { %v451_v48 = vpop.f32.mrb[2].mxu0 }
 0x36a   :  { %v464_v49 = vcombine.high %v451_v48, %v451_v48  ;;  %v471_v50 = vrot.slane %v451_v48, %v2813_v47  ;;  %v1944_v51 = vpop.f32.mrb[3].mxu0  ;;  %v577_v52 = vmul.f32 %v451_v48, %v2807_v41 }
 0x36c   :  { %v478_v53 = vrot.slane %v464_v49, %v2813_v47  ;;  %v479_v54 = vcombine.high %v471_v50, %v471_v50  ;;  %578 = vadd.xlane.f32.xlu0 %v577_v52  ;;  %v487_v55 = vrot.slane %v471_v50, %v2813_v47 }
 0x36e   :  { %v516_v56 = vrot.slane %v487_v55, %v2775_v26  ;;  %v501_v57 = vrot.slane %v479_v54, %v2813_v47  ;;  %v509_v58 = vcombine.high %v487_v55, %v487_v55  ;;  %v480_v59 = vcombine.high %v478_v53, %v478_v53 }
 0x36f   :  { %v494_v7 = vrot.slane %v478_v53, %v2813_v47 }
 0x370   :  { %v553_v61 = vmul.f32 %v516_v56, %v2819_v1  ;;  %v520_v62 = vrot.slane %v501_v57, %v2775_v26  ;;  %v511_v63 = vcombine.high %v501_v57, %v501_v57  ;;  %v508_v3 = vrot.slane %v480_v59, %v2813_v47 }
 0x371   :  { %v524_v6 = vrot.slane %v509_v58, %v2775_v26  ;;  %v532_v14 = vrot.slane %v494_v7, %v2775_v26  ;;  %v510_v15 = vcombine.high %v494_v7, %v494_v7 }
 0x372   :  { %561 = vadd.xlane.f32.xlu0 %v553_v61  ;;  %v554_v4 = vmul.f32 %v520_v62, %v2823_v60  ;;  %v528_v5 = vrot.slane %v511_v63, %v2775_v26  ;;  %v536_v10 = vrot.slane %v508_v3, %v2775_v26  ;;  %v512_v11 = vcombine.high %v508_v3, %v508_v3 }
 0x373   :  { %v555_v13 = vmul.f32 %v524_v6, %v2834_v8  ;;  %v557_v20 = vmul.f32 %v532_v14, %v2842_v16  ;;  %v540_v21 = vrot.slane %v510_v15, %v2775_v26 }
 0x374   :  { %563 = vadd.xlane.f32.xlu1 %v554_v4  ;;  %v556_v9 = vmul.f32 %v528_v5, %v2827_v2  ;;  %v558_v17 = vmul.f32 %v536_v10, %v2838_v12  ;;  %v544_v18 = vrot.slane %v512_v11, %v2775_v26 }
 0x375   :  { %v559_v31 = vmul.f32 %v540_v21, %v2850_v22 }
 0x376   :  { %567 = vadd.xlane.f32.xlu0 %v556_v9  ;;  %v560_v30 = vmul.f32 %v544_v18, %v2846_v19 }
 0x378   :  { %565 = vadd.xlane.f32.xlu1 %v555_v13 }
 0x37a   :  { %571 = vadd.xlane.f32.xlu0 %v558_v17 }
 0x37c   :  { %569 = vadd.xlane.f32.xlu1 %v557_v20 }
 0x37e   :  { %575 = vadd.xlane.f32.xlu0 %v560_v30 }
 0x380   :  { %573 = vadd.xlane.f32.xlu1 %v559_v31 }
 0x391   :  { %678 = vbcast.lane.b32.xlu1 %v676_v37, 256  ;;  %v736_v37 = vand.u32 127, %v468_v23 }
 0x394   :  { %685 = vbcast.lane.b32.xlu0 %v683_v38, 256 }
 0x3f9   :  { %v579_v45 = vpop.xlane.xlu0 %578 }
 0x3fa   :  { %v584_v48 = vrot.slane %v579_v45, %v2775_v26  ;;  %v588_v51 = vrot.slane %v579_v45, %v2781_v28  ;;  %v592_v56 = vrot.slane %v579_v45, %v2778_v27  ;;  %v596_v58 = vrot.slane %v579_v45, %v2793_v33 }
 0x3fb   :  { %v600_v3 = vrot.slane %v579_v45, %v2800_v36  ;;  %v604_v5 = vrot.slane %v579_v45, %v2784_v29  ;;  %v608_v14 = vrot.slane %v579_v45, %v2855_v34  ;;  %v612_v17 = vrot.slane %v579_v45, %v2858_v35 }
 0x3ff   :  { %v562_v49 = vpop.xlane.xlu0 %561 }
 0x400   :  { %v621_v50 = vadd.f32 %v584_v48, %v562_v49 }
 0x401   :  { %v564_v52 = vpop.xlane.xlu1 %563 }
 0x402   :  { %v2866_v53 = vadd.f32 %v637_v39, %v621_v50  ;;  %v622_v54 = vadd.f32 %v588_v51, %v564_v52 }
 0x403   :  { %v568_v25 = vpop.xlane.xlu0 %567 }
 0x404   :  { %v2868_v55 = vadd.f32 %v644_v42, %v622_v54  ;;  %712 = vperm.xlu1 %2228, %v2866_v53   ;;  %v624_v62 = vadd.f32 %v596_v58, %v568_v25 }
 0x405   :  { %v566_v57 = vpop.xlane.xlu1 %565 }
 0x406   :  { %v623_v59 = vadd.f32 %v592_v56, %v566_v57  ;;  %715 = vperm.xlu0 %2229, %v2868_v55   ;;  %v2879_v9 = vadd.f32 %v658_v43, %v624_v62 }
 0x407   :  { %v572_v61 = vpop.xlane.xlu0 %571 }
 0x408   :  { %v2874_v63 = vadd.f32 %v651_v40, %v623_v59  ;;  %v626_v10 = vadd.f32 %v604_v5, %v572_v61  ;;  %v2895_v40 = vsub.s32 %v736_v37, %v2767_v24 }
 0x409   :  { %v570_v4 = vpop.xlane.xlu1 %569 }
 0x40a   :  { %v625_v6 = vadd.f32 %v600_v3, %v570_v4  ;;  %718 = vperm.xlu1 %2228, %v2874_v63   ;;  %v2886_v15 = vadd.f32 %v672_v44, %v626_v10 }
 0x40b   :  { %v576_v7 = vpop.xlane.xlu0 %575 }
 0x40c   :  { %v2881_v11 = vadd.f32 %v665_v46, %v625_v6  ;;  %v628_v30 = vadd.f32 %v612_v17, %v576_v7 }
 0x40d   :  { %v574_v13 = vpop.xlane.xlu1 %573 }
 0x40e   :  { %721 = vperm.xlu1 %2228, %v2879_v9   ;;  %724 = vperm.xlu0 %2229, %v2881_v11   ;;  %v627_v18 = vadd.f32 %v608_v14, %v574_v13 }
 0x40f   :  { %v686_v20 = vpop.permute.xlu0 %685 }
 0x410   :  { %v702_v32 = vadd.f32 %v686_v20, %v628_v30 }
 0x411   :  { %v679_v21 = vpop.permute.xlu1 %678 }
 0x412   :  { %v2889_v31 = vadd.f32 %v679_v21, %v627_v18  ;;  %727 = vperm.xlu1 %2228, %v2886_v15  }
 0x414   :  { %730 = vperm.xlu0 %2229, %v2889_v31  }
 0x416   :  { %733 = vperm.xlu1 %2228, %v702_v32  }
 0x483   :  { %v713_v38 = vpop.permute.xlu1 %712 }
 0x484   :  { %v740_v45 = vrot.slane %v713_v38, %v2895_v40 }
 0x485   :  { %v716_v39 = vpop.permute.xlu0 %715 }
 0x486   :  { %v744_v43 = vrot.slane %v716_v39, %v2895_v40 }
 0x488   :  { %v770_v49 = vsel %vm769_vm1, %v744_v43, %v740_v45 }
 0x489   :  { %v719_v42 = vpop.permute.xlu1 %718 }
 0x48a   :  { %v748_v44 = vrot.slane %v719_v42, %v2895_v40 }
 0x48c   :  { %v772_v50 = vsel %vm771_vm2, %v748_v44, %v770_v49 }
 0x48d   :  { %v722_v46 = vpop.permute.xlu1 %721  ;;  %v725_v48 = vpop.permute.xlu0 %724 }
 0x48e   :  { %v752_v23 = vrot.slane %v722_v46, %v2895_v40  ;;  %v756_v24 = vrot.slane %v725_v48, %v2895_v40 }
 0x490   :  { %v774_v51 = vsel %vm773_vm3, %v752_v23, %v772_v50 }
 0x491   :  { %v728_v52 = vpop.permute.xlu1 %727  ;;  %v776_v25 = vsel %vm775_vm4, %v756_v24, %v774_v51 }
 0x492   :  { %v760_v54 = vrot.slane %v728_v52, %v2895_v40 }
 0x493   :  { %v731_v56 = vpop.permute.xlu0 %730 }
 0x494   :  { %v778_v57 = vsel %vm777_vm5, %v760_v54, %v776_v25  ;;  %v764_v58 = vrot.slane %v731_v56, %v2895_v40 }
 0x495   :  { %v734_v59 = vpop.permute.xlu1 %733 }
 0x496   :  { %v768_v61 = vrot.slane %v734_v59, %v2895_v40  ;;  %v780_v62 = vsel %vm779_vm6, %v764_v58, %v778_v57 }
 0x498   :  { %v782_v3 = vsel %vm781_vm7, %v768_v61, %v780_v62 }
 0x499   :  { %v785_v4 = vsel %vm784_vm8, %v782_v3, -inf }
 0x49a   :  { %786 = vmax.xlane.f32.xlu0 %v785_v4 }
 0x527   :  { %v787_v5 = vpop.xlane.xlu0 %786 }
 0x528   :  { %v792_v6 = vrot.slane %v787_v5, %v2775_v26  ;;  %v796_v7 = vrot.slane %v787_v5, %v2781_v28  ;;  %v820_v10 = vrot.slane %v787_v5, %v2858_v35  ;;  %v800_v13 = vrot.slane %v787_v5, %v2778_v27 }
 0x529   :  { %v804_v21 = vrot.slane %v787_v5, %v2793_v33  ;;  %v808_v39 = vrot.slane %v787_v5, %v2800_v36 }
 0x52a   :  { %v829_v14 = vsub.f32 %v2866_v53, %v792_v6  ;;  %v830_v17 = vsub.f32 %v2868_v55, %v796_v7  ;;  %v836_v20 = vsub.f32 %v702_v32, %v820_v10  ;;  %v831_v30 = vsub.f32 %v2874_v63, %v800_v13 }
 0x52b   :  { %v832_v42 = vsub.f32 %v2879_v9, %v804_v21  ;;  %v812_v53 = vrot.slane %v787_v5, %v2784_v29  ;;  %v833_v55 = vsub.f32 %v2881_v11, %v808_v39  ;;  %v816_v63 = vrot.slane %v787_v5, %v2855_v34 }
 0x52c   :  { %v837_v18 = vmul.f32 1.442695, %v829_v14  ;;  %v839_v37 = vmul.f32 1.442695, %v830_v17  ;;  %v851_v38 = vmul.f32 1.442695, %v836_v20 }
 0x52d   :  { %v841_v43 = vmul.f32 1.442695, %v831_v30  ;;  %v843_v32 = vmul.f32 1.442695, %v832_v42  ;;  %v834_v45 = vsub.f32 %v2886_v15, %v812_v53  ;;  %v845_v46 = vmul.f32 1.442695, %v833_v55 }
 0x52e   :  { %2234 = vpow2.f32 %v837_v18  ;;  %v835_v48 = vsub.f32 %v2889_v31, %v816_v63 }
 0x52f   :  { %2236 = vpow2.f32 %v839_v37  ;;  %v847_v11 = vmul.f32 1.442695, %v834_v45 }
 0x530   :  { %2238 = vpow2.f32 %v851_v38  ;;  %v849_v15 = vmul.f32 1.442695, %v835_v48 }
 0x531   :  { %2240 = vpow2.f32 %v841_v43 }
 0x532   :  { %2242 = vpow2.f32 %v843_v32 }
 0x533   :  { %2244 = vpow2.f32 %v845_v46 }
 0x534   :  { %2246 = vpow2.f32 %v847_v11 }
 0x535   :  { %2248 = vpow2.f32 %v849_v15 }
 0x538   :  { %v2925_v44 = vpop.eup %2234 }
 0x539   :  { %862 = vperm.xlu1 %2228, %v2925_v44   ;;  %v2930_v9 = vpop.eup %2236 }
 0x53a   :  { %v2934_v49 = vpop.eup %2238 }
 0x53b   :  { %v2936_v23 = vpop.eup %2240  ;;  %883 = vperm.xlu0 %2229, %v2934_v49  }
 0x53c   :  { %v2940_v50 = vpop.eup %2242 }
 0x53d   :  { %865 = vperm.xlu1 %2228, %v2930_v9   ;;  %v2245_v24 = vpop.eup %2244 }
 0x53e   :  { %v2247_v31 = vpop.eup %2246 }
 0x53f   :  { %v2943_v51 = vpop.eup %2248 }
 0x541   :  { %868 = vperm.xlu1 %2228, %v2936_v23  }
 0x545   :  { %871 = vperm.xlu1 %2228, %v2940_v50  }
 0x549   :  { %874 = vperm.xlu1 %2228, %v2245_v24  }
 0x54d   :  { %877 = vperm.xlu1 %2228, %v2247_v31  }
 0x551   :  { %880 = vperm.xlu1 %2228, %v2943_v51  }
 0x5b8   :  { %v863_v52 = vpop.permute.xlu1 %862 }
 0x5b9   :  { %v888_v61 = vrot.slane %v863_v52, %v2895_v40 }
 0x5ba   :  { %v884_v7 = vpop.permute.xlu0 %883 }
 0x5bb   :  { %v916_v20 = vrot.slane %v884_v7, %v2895_v40 }
 0x5bc   :  { %v866_v54 = vpop.permute.xlu1 %865 }
 0x5bd   :  { %v892_v58 = vrot.slane %v866_v54, %v2895_v40 }
 0x5bf   :  { %v917_v5 = vsel %vm769_vm1, %v892_v58, %v888_v61 }
 0x5c0   :  { %v869_v25 = vpop.permute.xlu1 %868 }
 0x5c1   :  { %v896_v59 = vrot.slane %v869_v25, %v2895_v40  ;;  %v1150_v25 = vld [vmem:[#allocation14 + $0x8] sm:$0xff] }
 0x5c3   :  { %v918_v10 = vsel %vm771_vm2, %v896_v59, %v917_v5  ;;  %v1153_v59 = vld [vmem:[#allocation14 + $0x20] sm:$0xff] }
 0x5c4   :  { %v872_v56 = vpop.permute.xlu1 %871 }
 0x5c5   :  { %v900_v62 = vrot.slane %v872_v56, %v2895_v40  ;;  %v1151_v56 = vld [vmem:[#allocation14 + $0x10] sm:$0xff] }
 0x5c7   :  { %v919_v13 = vsel %vm773_vm3, %v900_v62, %v918_v10  ;;  %v1155_v62 = vld [vmem:[#allocation14 + $0x30] sm:$0xff] }
 0x5c8   :  { %v875_v57 = vpop.permute.xlu1 %874 }
 0x5c9   :  { %v904_v4 = vrot.slane %v875_v57, %v2895_v40 }
 0x5cb   :  { %v920_v17 = vsel %vm775_vm4, %v904_v4, %v919_v13 }
 0x5cc   :  { %v878_v3 = vpop.permute.xlu1 %877 }
 0x5cd   :  { %v908_v6 = vrot.slane %v878_v3, %v2895_v40 }
 0x5cf   :  { %v921_v21 = vsel %vm777_vm5, %v908_v6, %v920_v17 }
 0x5d0   :  { %v881_v14 = vpop.permute.xlu1 %880 }
 0x5d1   :  { %v912_v18 = vrot.slane %v881_v14, %v2895_v40 }
 0x5d3   :  { %v922_v30 = vsel %vm779_vm6, %v912_v18, %v921_v21 }
 0x5d4   :  { %v923_v37 = vsel %vm781_vm7, %v916_v20, %v922_v30 }
 0x5d5   :  { %v925_v38 = vsel %vm784_vm8, %v923_v37, 0.0 }
 0x5d6   :  { %926 = vadd.xlane.f32.xlu1 %v925_v38 }
 0x663   :  { %v927_v39 = vpop.xlane.xlu1 %926 }
 0x664   :  { %v948_v42 = vrot.slane %v927_v39, %v2800_v36  ;;  %v932_v43 = vrot.slane %v927_v39, %v2775_v26  ;;  %v936_v53 = vrot.slane %v927_v39, %v2781_v28  ;;  %v940_v55 = vrot.slane %v927_v39, %v2778_v27 }
 0x665   :  { %v944_v32 = vrot.slane %v927_v39, %v2793_v33  ;;  %v952_v48 = vrot.slane %v927_v39, %v2784_v29  ;;  %v956_v27 = vrot.slane %v927_v39, %v2855_v34  ;;  %v960_v29 = vrot.slane %v927_v39, %v2858_v35 }
 0x666   :  { %2250 = vrcp.f32 %v948_v42 }
 0x667   :  { %2252 = vrcp.f32 %v932_v43 }
 0x668   :  { %2254 = vrcp.f32 %v936_v53 }
 0x669   :  { %2256 = vrcp.f32 %v940_v55 }
 0x66a   :  { %2258 = vrcp.f32 %v944_v32 }
 0x66b   :  { %2260 = vrcp.f32 %v952_v48 }
 0x66c   :  { %2262 = vrcp.f32 %v956_v27  ;;  %v1157_v27 = vld [vmem:[#allocation14 + $0x40] sm:$0xff] }
 0x66d   :  { %2264 = vrcp.f32 %v960_v29  ;;  %v1159_v29 = vld [vmem:[#allocation14 + $0x50] sm:$0xff] }
 0x670   :  { %v2251_v63 = vpop.eup %2250 }
 0x671   :  { %v2253_v45 = vpop.eup %2252  ;;  %v2967_v46 = vmul.f32 %v2251_v63, %v2245_v24 }
 0x672   :  { %v2971_v36 = vmul.f32 %v2253_v45, %v2925_v44  ;;  %v2255_v11 = vpop.eup %2254 }
 0x673   :  { %1006 = vperm.xlu1 %2228, %v2967_v46   ;;  %v2977_v28 = vmul.f32 %v2255_v11, %v2930_v9  ;;  %v2257_v33 = vpop.eup %2256 }
 0x674   :  { %994 = vperm.xlu0 %2229, %v2971_v36   ;;  %v2982_v44 = vmul.f32 %v2257_v33, %v2936_v23  ;;  %v2259_v15 = vpop.eup %2258  ;;  %v1158_v33 = vld [vmem:[#allocation14 + $0x48] sm:$0xff] }
 0x675   :  { %v2986_v24 = vmul.f32 %v2259_v15, %v2940_v50  ;;  %v2261_v34 = vpop.eup %2260  ;;  %v1149_v50 = vld [vmem:[#allocation14] sm:$0xff]  ;;  %v2144_v15 = vpack.c.bf16 %v1158_v33, %v1157_v27 }
 0x676   :  { %v2989_v9 = vmul.f32 %v2261_v34, %v2247_v31  ;;  %v2263_v52 = vpop.eup %2262  ;;  %v2132_v57 = vpack.c.bf16 %v1150_v25, %v1149_v50  ;;  %v1152_v31 = vld [vmem:[#allocation14 + $0x18] sm:$0xff]  ;;  %v1162_v50 = vld [vmem:[#allocation14 + $0x68] sm:$0xff] }
 0x677   :  { %v2993_v35 = vmul.f32 %v2263_v52, %v2943_v51  ;;  %v2265_v23 = vpop.eup %2264  ;;  %v2135_v58 = vpack.c.bf16 %v1152_v31, %v1151_v56  ;;  %v1154_v51 = vld [vmem:[#allocation14 + $0x28] sm:$0xff]  ;;  %v1160_v34 = vld [vmem:[#allocation14 + $0x58] sm:$0xff]  ;;  %v1163_v56 = vld [vmem:[#allocation14 + $0x70] sm:$0xff] }
 0x678   :  { %997 = vperm.xlu0 %2229, %v2977_v28   ;;  %v2997_v54 = vmul.f32 %v2265_v23, %v2934_v49  ;;  %2133 = vmatpush3.bf16.msra.mxu1 %v2132_v57  ;;  %v2138_v61 = vpack.c.bf16 %v1154_v51, %v1153_v59  ;;  %v1156_v49 = vld [vmem:[#allocation14 + $0x38] sm:$0xff]  ;;  %v2147_v52 = vpack.c.bf16 %v1160_v34, %v1159_v29  ;;  %v1161_v23 = vld [vmem:[#allocation14 + $0x60] sm:$0xff]  ;;  %v1359_v59 = vld [vmem:[#allocation17 + $0x8] sm:$0xff] }
 0x679   :  { %2134 = vmatprep.subr.bf16.mxu1 %v2509_v0  ;;  %v2141_v3 = vpack.c.bf16 %v1156_v49, %v1155_v62  ;;  %v2150_v25 = vpack.c.bf16 %v1162_v50, %v1161_v23  ;;  %v1164_v57 = vld [vmem:[#allocation14 + $0x78] sm:$0xff]  ;;  %v1266_v62 = vld [vmem:[#allocation15 + $0x8] sm:$0xff] }
 0x67a   :  { %v2153_v31 = vpack.c.bf16 %v1164_v57, %v1163_v56 }
 0x67c   :  { %1000 = vperm.xlu0 %2229, %v2982_v44   ;;  %2136 = vmatpush3.bf16.msra.mxu1 %v2135_v58  ;;  %v1358_v58 = vld [vmem:[#allocation17] sm:$0xff] }
 0x67d   :  { %2137 = vmatprep.subr.bf16.mxu1 %v2509_v0  ;;  %v3047_v51 = vpack.c.bf16 %v1359_v59, %v1358_v58 }
 0x680   :  { %1003 = vperm.xlu0 %2229, %v2986_v24   ;;  %2139 = vmatpush3.bf16.msra.mxu1 %v2138_v61  ;;  %v1265_v61 = vld [vmem:[#allocation15] sm:$0xff] }
 0x681   :  { %2140 = vmatprep.subr.bf16.mxu1 %v2509_v0  ;;  %v2156_v49 = vpack.c.bf16 %v1266_v62, %v1265_v61 }
 0x683   :  { %2157 = vmatpush3.bf16.msra.mxu0 %v2156_v49 }
 0x684   :  { %1009 = vperm.xlu0 %2229, %v2989_v9   ;;  %2142 = vmatpush3.bf16.msra.mxu1 %v2141_v3  ;;  %v1267_v3 = vld [vmem:[#allocation15 + $0x10] sm:$0xff] }
 0x685   :  { %2143 = vmatprep.subr.bf16.mxu1 %v2509_v0  ;;  %2158 = vmatprep.subr.bf16.mxu0 %v2509_v0 }
 0x688   :  { %1012 = vperm.xlu0 %2229, %v2993_v35   ;;  %2145 = vmatpush3.bf16.msra.mxu1 %v2144_v15 }
 0x689   :  { %2146 = vmatprep.subr.bf16.mxu1 %v2509_v0 }
 0x68c   :  { %1015 = vperm.xlu0 %2229, %v2997_v54   ;;  %2148 = vmatpush3.bf16.msra.mxu1 %v2147_v52 }
 0x68d   :  { %2149 = vmatprep.subr.bf16.mxu1 %v2509_v0 }
 0x690   :  { %2151 = vmatpush3.bf16.msra.mxu1 %v2150_v25 }
 0x691   :  { %2152 = vmatprep.subr.bf16.mxu1 %v2509_v0 }
 0x694   :  { %2154 = vmatpush3.bf16.msra.mxu1 %v2153_v31 }
 0x695   :  { %2180 = vmatprep.subr.bf16.mxu1 %v3047_v51 }
 0x6f2   :  { %v3022_v20 = vpop.permute.xlu1 %1006 }
 0x6f3   :  { %v3004_v4 = vpop.permute.xlu0 %994  ;;  %v1036_v42 = vrot.slane %v3022_v20, %v2895_v40  ;;  %v1072_v33 = vmul.f32 %v3022_v20, %v2842_v16 }
 0x6f4   :  { %v1020_v17 = vrot.slane %v3004_v4, %v2895_v40  ;;  %v1068_v52 = vmul.f32 %v3004_v4, %v2819_v1 }
 0x6f5   :  { %v1100_v50 = vrot.slane %v1072_v33, 4 }
 0x6f7   :  { %v3006_v5 = vpop.permute.xlu0 %997  ;;  %v1101_v31 = vadd.f32 %v1100_v50, %v1072_v33 }
 0x6f8   :  { %v1024_v10 = vrot.slane %v3006_v5, %v2895_v40  ;;  %v1069_v29 = vmul.f32 %v3006_v5, %v2823_v60 }
 0x6f9   :  { %v1102_v49 = vrot.slane %v1101_v31, 2 }
 0x6fa   :  { %v1049_v21 = vsel %vm769_vm1, %v1024_v10, %v1020_v17  ;;  %v1268_v10 = vld [vmem:[#allocation15 + $0x18] sm:$0xff]  ;;  %v1269_v17 = vld [vmem:[#allocation15 + $0x20] sm:$0xff] }
 0x6fb   :  { %v3008_v6 = vpop.permute.xlu0 %1000 }
 0x6fc   :  { %v1028_v13 = vrot.slane %v3008_v6, %v2895_v40  ;;  %v1070_v15 = vmul.f32 %v3008_v6, %v2834_v8  ;;  %v1076_v6 = vrot.slane %v1068_v52, 4 }
 0x6fe   :  { %v1050_v30 = vsel %vm771_vm2, %v1028_v13, %v1049_v21  ;;  %v2159_v13 = vpack.c.bf16 %v1268_v10, %v1267_v3  ;;  %v1088_v25 = vrot.slane %v1070_v15, 4  ;;  %v1077_v62 = vadd.f32 %v1076_v6, %v1068_v52 }
 0x6ff   :  { %v3010_v7 = vpop.permute.xlu0 %1003 }
 0x700   :  { %v1032_v18 = vrot.slane %v3010_v7, %v2895_v40  ;;  %2160 = vmatpush3.bf16.msra.mxu0 %v2159_v13  ;;  %v1071_v34 = vmul.f32 %v3010_v7, %v2827_v2  ;;  %v1089_v58 = vadd.f32 %v1088_v25, %v1070_v15 }
 0x701   :  { %2161 = vmatprep.subr.bf16.mxu0 %v2509_v0 }
 0x702   :  { %v1051_v38 = vsel %vm773_vm3, %v1032_v18, %v1050_v30  ;;  %v1270_v18 = vld [vmem:[#allocation15 + $0x28] sm:$0xff]  ;;  %v1271_v30 = vld [vmem:[#allocation15 + $0x30] sm:$0xff]  ;;  %v1094_v56 = vrot.slane %v1071_v34, 4  ;;  %v1090_v10 = vrot.slane %v1089_v58, 2 }
 0x703   :  { %v3016_v14 = vpop.permute.xlu0 %1009  ;;  %v1052_v55 = vsel %vm775_vm4, %v1036_v42, %v1051_v38  ;;  %v2162_v21 = vpack.c.bf16 %v1270_v18, %v1269_v17  ;;  %v1272_v38 = vld [vmem:[#allocation15 + $0x38] sm:$0xff]  ;;  %v1273_v42 = vld [vmem:[#allocation15 + $0x40] sm:$0xff] }
 0x704   :  { %v1040_v39 = vrot.slane %v3016_v14, %v2895_v40  ;;  %v1073_v23 = vmul.f32 %v3016_v14, %v2838_v12  ;;  %v1095_v59 = vadd.f32 %v1094_v56, %v1071_v34 }
 0x705   :  { %2163 = vmatpush3.bf16.msra.mxu0 %v2162_v21 }
 0x706   :  { %v1053_v63 = vsel %vm777_vm5, %v1040_v39, %v1052_v55  ;;  %2164 = vmatprep.subr.bf16.mxu0 %v2509_v0  ;;  %v2165_v39 = vpack.c.bf16 %v1272_v38, %v1271_v30  ;;  %v1106_v57 = vrot.slane %v1073_v23, 4  ;;  %v1096_v13 = vrot.slane %v1095_v59, 2 }
 0x707   :  { %v3026_v37 = vpop.permute.xlu0 %1012  ;;  %v1103_v30 = vadd.f32 %v1102_v49, %v1101_v31  ;;  %v1091_v38 = vadd.f32 %v1090_v10, %v1089_v58 }
 0x708   :  { %v1044_v43 = vrot.slane %v3026_v37, %v2895_v40  ;;  %v1074_v20 = vmul.f32 %v3026_v37, %v2850_v22  ;;  %v1107_v14 = vadd.f32 %v1106_v57, %v1073_v23  ;;  %v1078_v37 = vrot.slane %v1077_v62, 2 }
 0x709   :  { %2166 = vmatpush3.bf16.msra.mxu0 %v2165_v39  ;;  %v1097_v39 = vadd.f32 %v1096_v13, %v1095_v59 }
 0x70a   :  { %v1054_v45 = vsel %vm779_vm6, %v1044_v43, %v1053_v63  ;;  %2167 = vmatprep.subr.bf16.mxu0 %v2509_v0  ;;  %v1274_v43 = vld [vmem:[#allocation15 + $0x48] sm:$0xff]  ;;  %v1276_v63 = vld [vmem:[#allocation15 + $0x58] sm:$0xff]  ;;  %v1112_v4 = vrot.slane %v1074_v20, 4  ;;  %v1108_v21 = vrot.slane %v1107_v14, 2 }
 0x70b   :  { %v3035_v53 = vpop.permute.xlu0 %1015  ;;  %v2168_v55 = vpack.c.bf16 %v1274_v43, %v1273_v42 }
 0x70c   :  { %v1048_v32 = vrot.slane %v3035_v53, %v2895_v40  ;;  %v1075_v5 = vmul.f32 %v3035_v53, %v2846_v19  ;;  %v1113_v17 = vadd.f32 %v1112_v4, %v1074_v20 }
 0x70d   :  { %2169 = vmatpush3.bf16.msra.mxu0 %v2168_v55  ;;  %v1079_v55 = vadd.f32 %v1078_v37, %v1077_v62 }
 0x70e   :  { %v1055_v48 = vsel %vm781_vm7, %v1048_v32, %v1054_v45  ;;  %2170 = vmatprep.subr.bf16.mxu0 %v2509_v0  ;;  %v1275_v32 = vld [vmem:[#allocation15 + $0x50] sm:$0xff]  ;;  %v1118_v61 = vrot.slane %v1075_v5, 4  ;;  %v1114_v42 = vrot.slane %v1113_v17, 2 }
 0x70f   :  { %v1057_v11 = vsel %vm784_vm8, %v1055_v48, 0.0  ;;  %v2171_v45 = vpack.c.bf16 %v1276_v63, %v1275_v32  ;;  %v1277_v48 = vld [vmem:[#allocation15 + $0x60] sm:$0xff]  ;;  %v1109_v32 = vadd.f32 %v1108_v21, %v1107_v14  ;;  %v1104_v63 = vrot.slane %v1103_v30, 1 }
 0x710   :  { %1058 = vadd.xlane.f32.xlu0 %v1057_v11  ;;  %v1278_v11 = vld [vmem:[#allocation15 + $0x68] sm:$0xff]  ;;  %v1119_v18 = vadd.f32 %v1118_v61, %v1075_v5 }
 0x711   :  { %2172 = vmatpush3.bf16.msra.mxu0 %v2171_v45  ;;  %v2174_v27 = vpack.c.bf16 %v1278_v11, %v1277_v48  ;;  %v1092_v48 = vrot.slane %v1091_v38, 1  ;;  %v1098_v11 = vrot.slane %v1097_v39, 1  ;;  %v1110_v15 = vrot.slane %v1109_v32, 1 }
 0x712   :  { %2173 = vmatprep.subr.bf16.mxu0 %v2509_v0  ;;  %v1120_v43 = vrot.slane %v1119_v18, 2  ;;  %v1105_v52 = vadd.f32 %v1104_v63, %v1103_v30  ;;  %v1361_v63 = vld [vmem:[#allocation17 + $0x18] sm:$0xff] }
 0x713   :  { %v1099_v25 = vadd.f32 %v1098_v11, %v1097_v39  ;;  %v1111_v58 = vadd.f32 %v1110_v15, %v1109_v32  ;;  %v1360_v32 = vld [vmem:[#allocation17 + $0x10] sm:$0xff] }
 0x714   :  { %v1121_v33 = vadd.f32 %v1120_v43, %v1119_v18 }
 0x715   :  { %2175 = vmatpush3.bf16.msra.mxu0 %v2174_v27  ;;  %v1115_v27 = vadd.f32 %v1114_v42, %v1113_v17 }
 0x716   :  { %2176 = vmatprep.subr.bf16.mxu0 %v2509_v0  ;;  %v1082_v0 = vrot.slane %v1069_v29, 4  ;;  %v1122_v20 = vrot.slane %v1121_v33, 1 }
 0x717   :  { %v1116_v56 = vrot.slane %v1115_v27, 1 }
 0x718   :  { %v1083_v7 = vadd.f32 %v1082_v0, %v1069_v29  ;;  %v1080_v29 = vrot.slane %v1079_v55, 1  ;;  %v1093_v0 = vadd.f32 %v1092_v48, %v1091_v38  ;;  %v1123_v10 = vadd.f32 %v1122_v20, %v1121_v33  ;;  %v1367_v20 = vld [vmem:[#allocation17 + $0x48] sm:$0xff] }
 0x71a   :  { %v1084_v3 = vrot.slane %v1083_v7, 2 }
 0x71c   :  { %v1085_v53 = vadd.f32 %v1084_v3, %v1083_v7  ;;  %v1081_v7 = vadd.f32 %v1080_v29, %v1079_v55  ;;  %v1117_v3 = vadd.f32 %v1116_v56, %v1115_v27  ;;  %v2183_v29 = vpack.c.bf16 %v1361_v63, %v1360_v32  ;;  %v1366_v56 = vld [vmem:[#allocation17 + $0x40] sm:$0xff] }
 0x71e   :  { %v1086_v45 = vrot.slane %v1085_v53, 1 }
 0x720   :  { %v1087_v23 = vadd.f32 %v1086_v45, %v1085_v53 }
 0x79d   :  { %v1059_v34 = vpop.xlane.xlu0 %1058 }
 0x79e   :  { %v1124_v50 = vmul.f32 %v1059_v34, %v2807_v41  ;;  %v1362_v34 = vld [vmem:[#allocation17 + $0x20] sm:$0xff] }
 0x7a0   :  { %v1126_v5 = vrot.slane %v1124_v50, 1  ;;  %v1127_v6 = vrot.slane %v1124_v50, 2  ;;  %v1128_v57 = vrot.slane %v1124_v50, 3  ;;  %v1129_v31 = vrot.slane %v1124_v50, 4 }
 0x7a1   :  { %v1130_v59 = vrot.slane %v1124_v50, 5  ;;  %v1131_v4 = vrot.slane %v1124_v50, 6  ;;  %v1132_v61 = vrot.slane %v1124_v50, 7  ;;  %v1141_v41 = vadd.f32 %v1124_v50, %v1081_v7  ;;  %v1364_v50 = vld [vmem:[#allocation17 + $0x30] sm:$0xff]  ;;  %v1371_v7 = vld [vmem:[#allocation17 + $0x68] sm:$0xff] }
 0x7a2   :  { %v1142_v62 = vadd.f32 %v1126_v5, %v1087_v23  ;;  %v1143_v14 = vadd.f32 %v1127_v6, %v1093_v0  ;;  %v1144_v49 = vadd.f32 %v1128_v57, %v1099_v25  ;;  %v1145_v13 = vadd.f32 %v1129_v31, %v1105_v52  ;;  %v1363_v52 = vld [vmem:[#allocation17 + $0x28] sm:$0xff]  ;;  %v1365_v0 = vld [vmem:[#allocation17 + $0x38] sm:$0xff]  ;;  %v1368_v6 = vld [vmem:[#allocation17 + $0x50] sm:$0xff] }
 0x7a3   :  { %v1146_v17 = vadd.f32 %v1130_v59, %v1111_v58  ;;  %v1147_v21 = vadd.f32 %v1131_v4, %v1117_v3  ;;  %v1148_v30 = vadd.f32 %v1132_v61, %v1123_v10  ;;  %v2187_v23 = vpack.c.bf16 %v1363_v52, %v1362_v34  ;;  %v1369_v57 = vld [vmem:[#allocation17 + $0x58] sm:$0xff]  ;;  %v1372_v58 = vld [vmem:[#allocation17 + $0x70] sm:$0xff] }
 0x7a4   :  { %v1180_v18 = vrot.slane %v1142_v62, 7  ;;  %v1182_v37 = vrot.slane %v1143_v14, 6  ;;  %v1184_v38 = vrot.slane %v1144_v49, 5  ;;  %v1186_v42 = vrot.slane %v1145_v13, 4  ;;  %v1373_v59 = vld [vmem:[#allocation17 + $0x78] sm:$0xff]  ;;  %v1279_v61 = vld [vmem:[#allocation15 + $0x70] sm:$0xff] }
 0x7a5   :  { %v1188_v55 = vrot.slane %v1146_v17, 3  ;;  %v1190_v48 = vrot.slane %v1147_v21, 2  ;;  %v1192_v27 = vrot.slane %v1148_v30, 1  ;;  %v2191_v25 = vpack.c.bf16 %v1365_v0, %v1364_v50  ;;  %v1280_v62 = vld [vmem:[#allocation15 + $0x78] sm:$0xff]  ;;  %v1729_v17 = vld [vmem:[%s3165_s13] ss:$0 sm:$0xff] }
 0x7a6   :  { %v1181_v53 = vsel %vm769_vm1, %v1180_v18, %v1141_v41  ;;  %v2195_v5 = vpack.c.bf16 %v1367_v20, %v1366_v56  ;;  %v2199_v31 = vpack.c.bf16 %v1369_v57, %v1368_v6  ;;  %v2207_v4 = vpack.c.bf16 %v1373_v59, %v1372_v58  ;;  %v1730_v52 = vld [vmem:[%s3166_s14] ss:$0 sm:$0xff] }
 0x7a7   :  { %v1183_v39 = vsel %vm771_vm2, %v1182_v37, %v1181_v53  ;;  %v2177_v14 = vpack.c.bf16 %v1280_v62, %v1279_v61 }
 0x7a8   :  { %v1185_v43 = vsel %vm773_vm3, %v1184_v38, %v1183_v39 }
 0x7a9   :  { %v1187_v45 = vsel %vm775_vm4, %v1186_v42, %v1185_v43  ;;  %2178 = vmatpush3.bf16.msra.mxu0 %v2177_v14 }
 0x7aa   :  { %v1189_v11 = vsel %vm777_vm5, %v1188_v55, %v1187_v45 }
 0x7ab   :  { %v1191_v33 = vsel %vm779_vm6, %v1190_v48, %v1189_v11 }
 0x7ac   :  { %v1193_v15 = vsel %vm781_vm7, %v1192_v27, %v1191_v33 }
 0x7ad   :  { %1978 = vmatmul.mubr.f32.vlgmr.msra.gmra.mrb[2].mxu1 %v1193_v15 }
 0x7ae   :  { %2182 = vmatpush3.bf16.msra.mxu1 %v3047_v51  ;;  %2047 = vmatprep.mubr.f32.mxu1 %v2819_v1  ;;  %v1370_v51 = vld [vmem:[#allocation17 + $0x60] sm:$0xff] }
 0x7af   :  { %2184 = vmatprep.subr.bf16.mxu1 %v2183_v29  ;;  %v2203_v1 = vpack.c.bf16 %v1371_v7, %v1370_v51 }
 0x7b2   :  { %2186 = vmatpush3.bf16.msra.mxu1 %v2183_v29 }
 0x7b3   :  { %2188 = vmatprep.subr.bf16.mxu1 %v2187_v23 }
 0x7b6   :  { %2190 = vmatpush3.bf16.msra.mxu1 %v2187_v23 }
 0x7b7   :  { %2192 = vmatprep.subr.bf16.mxu1 %v2191_v25 }
 0x7ba   :  { %2194 = vmatpush3.bf16.msra.mxu1 %v2191_v25 }
 0x7bb   :  { %2196 = vmatprep.subr.bf16.mxu1 %v2195_v5 }
 0x7be   :  { %2198 = vmatpush3.bf16.msra.mxu1 %v2195_v5 }
 0x7bf   :  { %2200 = vmatprep.subr.bf16.mxu1 %v2199_v31 }
 0x7c2   :  { %2202 = vmatpush3.bf16.msra.mxu1 %v2199_v31 }
 0x7c3   :  { %2204 = vmatprep.subr.bf16.mxu1 %v2203_v1 }
 0x7c6   :  { %2206 = vmatpush3.bf16.msra.mxu1 %v2203_v1 }
 0x7c7   :  { %2208 = vmatprep.subr.bf16.mxu1 %v2207_v4 }
 0x7ca   :  { %2210 = vmatpush3.bf16.msra.mxu1 %v2207_v4 }
 0x7cd   :  { %2048 = vmatmul.mubr.f32.vlgmr.msra.gmra.mrb[4].mxu1 %v2823_v60  ;;  %v1728_v60 = vld [vmem:[%s3162_s10] ss:$0 sm:$0xff] }
 0x7ce   :  { %2050 = vmatprep.mubr.f32.mxu1 %v2834_v8 }
 0x7d1   :  { %2051 = vmatmul.mubr.f32.gmra.mrb[6].mxu1 %v2827_v2 }
 0x7d2   :  { %2053 = vmatprep.mubr.f32.mxu1 %v2842_v16 }
 0x7d5   :  { %2054 = vmatmul.mubr.f32.gmra.mrb[8].mxu1 %v2838_v12 }
 0x7d6   :  { %2056 = vmatprep.mubr.f32.mxu1 %v2850_v22 }
 0x7d9   :  { %2057 = vmatmul.mubr.f32.gmra.mrb[10].mxu1 %v2846_v19 }
 0x880   :  { %v1261_v49 = vpop.f32.mrb[2].mxu1 }
 0x881   :  { %v1262_v8 = vadd.f32 %v1728_v60, %v1261_v49  ;;  %v1979_v3 = vpop.f32.mrb[3].mxu1 }
 0x883   :  { %2013 = vmatmul.mubr.f32.vlgmr.msra.gmra.mrb[4].mxu0 %v1262_v8 }
 0x8a0   :  { %v2049_v2 = vpop.f32.mrb[4].mxu1 }
 0x8a1   :  { %v1440_v16 = vpop.f32.mrb[5].mxu1 }
 0x8a4   :  { %v2052_v10 = vpop.f32.mrb[6].mxu1 }
 0x8a5   :  { %v1450_v12 = vpop.f32.mrb[7].mxu1 }
 0x8a8   :  { %v2055_v13 = vpop.f32.mrb[8].mxu1 }
 0x8a9   :  { %v1460_v22 = vpop.f32.mrb[9].mxu1 }
 0x8ac   :  { %v2058_v41 = vpop.f32.mrb[10].mxu1 }
 0x8ad   :  { %v1470_v19 = vpop.f32.mrb[11].mxu1 }
 0x956   :  { %v1354_v18 = vpop.f32.mrb[4].mxu0 }
 0x957   :  { %v1355_v37 = vadd.f32 %v1729_v17, %v1354_v18  ;;  %v2014_v21 = vpop.f32.mrb[5].mxu0 }
 0x959   :  { %v1480_v30 = vcombine.high %v1355_v37, %v1355_v37  ;;  %v1487_v53 = vrot.slane %v1355_v37, %v2813_v47 }
 0x95b   :  { %v1494_v38 = vrot.slane %v1480_v30, %v2813_v47  ;;  %v1495_v39 = vcombine.high %v1487_v53, %v1487_v53  ;;  %v1503_v42 = vrot.slane %v1487_v53, %v2813_v47 }
 0x95d   :  { %v1517_v43 = vrot.slane %v1495_v39, %v2813_v47  ;;  %v1532_v55 = vrot.slane %v1503_v42, %v2775_v26  ;;  %v1525_v32 = vcombine.high %v1503_v42, %v1503_v42  ;;  %v1496_v63 = vcombine.high %v1494_v38, %v1494_v38 }
 0x95e   :  { %v1510_v45 = vrot.slane %v1494_v38, %v2813_v47 }
 0x95f   :  { %v1536_v48 = vrot.slane %v1517_v43, %v2775_v26  ;;  %v1569_v11 = vadd.f32 %v1532_v55, %v1440_v16  ;;  %v1527_v27 = vcombine.high %v1517_v43, %v1517_v43  ;;  %v1540_v33 = vrot.slane %v1525_v32, %v2775_v26 }
 0x960   :  { %v1524_v29 = vrot.slane %v1496_v63, %v2813_v47  ;;  %v1548_v15 = vrot.slane %v1510_v45, %v2775_v26  ;;  %v1526_v34 = vcombine.high %v1510_v45, %v1510_v45 }
 0x961   :  { %v1570_v23 = vadd.f32 %v2049_v2, %v1536_v48  ;;  %v1577_v50 = vmax.f32 %v1569_v11, 0.0  ;;  %v1544_v0 = vrot.slane %v1527_v27, %v2775_v26  ;;  %v1571_v25 = vadd.f32 %v1540_v33, %v1450_v12 }
 0x962   :  { %v1552_v56 = vrot.slane %v1524_v29, %v2775_v26  ;;  %v1573_v20 = vadd.f32 %v1548_v15, %v1460_v22  ;;  %v1528_v5 = vcombine.high %v1524_v29, %v1524_v29  ;;  %v1556_v6 = vrot.slane %v1526_v34, %v2775_v26 }
 0x963   :  { %v1578_v57 = vmax.f32 %v1570_v23, 0.0  ;;  %v1572_v47 = vadd.f32 %v2052_v10, %v1544_v0  ;;  %v1592_v31 = vmul.f32 %v1730_v52, %v1577_v50  ;;  %v1579_v59 = vmax.f32 %v1571_v25, 0.0 }
 0x964   :  { %v1574_v51 = vadd.f32 %v2055_v13, %v1552_v56  ;;  %v1581_v7 = vmax.f32 %v1573_v20, 0.0  ;;  %v1560_v1 = vrot.slane %v1528_v5, %v2775_v26  ;;  %v1575_v58 = vadd.f32 %v1556_v6, %v1470_v19 }
 0x965   :  { %1600 = vadd.xlane.f32.xlu1 %v1592_v31  ;;  %v1593_v4 = vmul.f32 %v1730_v52, %v1578_v57  ;;  %v1580_v60 = vmax.f32 %v1572_v47, 0.0  ;;  %v1594_v49 = vmul.f32 %v1730_v52, %v1579_v59  ;;  %v1617_v12 = vstv %s3167_s15  ;;  %s2514_s15 = smov [#allocation18]  }
 0x966   :  { %v1576_v61 = vadd.f32 %v2058_v41, %v1560_v1  ;;  %v1583_v62 = vmax.f32 %v1575_v58, 0.0  ;;  %v1596_v14 = vmul.f32 %v1730_v52, %v1581_v7  ;;  %v1582_v3 = vmax.f32 %v1574_v51, 0.0  ;;  %s1713_s1 = sshll.u32 %s2514_s15, 4  ;;  %s1714_s1 = int_to_ptr.vmem [resolvable:$true] %s1713_s1 }
 0x967   :  { %1602 = vadd.xlane.f32.xlu0 %v1593_v4  ;;  %v1595_v2 = vmul.f32 %v1730_v52, %v1580_v60  ;;  %s2464_s26 = scalar_lea.vmem %s1714_s1, 128  ;;  %p2469_p3 = scmp.lt.s32.totalorder %s1714_s1, %s1714_s1 }
 0x968   :  { %v1598_v8 = vmul.f32 %v1730_v52, %v1583_v62  ;;  %v1584_v16 = vmax.f32 %v1576_v61, 0.0  ;;  %v1597_v10 = vmul.f32 %v1730_v52, %v1582_v3  ;;  %p2465_p2 = scmp.ne.s32.totalorder %s1714_s1, %s2464_s26  ;;  %p2470_p4 = scmp.lt.s32.totalorder %s2464_s26, %s2464_s26 }
 0x969   :  { %1608 = vadd.xlane.f32.xlu1 %v1596_v14 }
 0x96a   :  { %v1599_v26 = vmul.f32 %v1730_v52, %v1584_v16  ;;  %p2471_p5 = por %p2470_p4, %p2469_p3 }
 0x96b   :  { %1604 = vadd.xlane.f32.xlu0 %v1594_v49 }
 0x96c   :  { %p2472_p6 = pnand %p2471_p5, %p2465_p2 }
 0x96d   :  { %1612 = vadd.xlane.f32.xlu1 %v1598_v8 }
 0x96f   :  { %1606 = vadd.xlane.f32.xlu0 %v1595_v2 }
 0x973   :  { %1610 = vadd.xlane.f32.xlu0 %v1597_v10 }
 0x977   :  { %1614 = vadd.xlane.f32.xlu0 %v1599_v26 }
 0x9f2   :  { %v1601_v13 = vpop.xlane.xlu1 %1600 }
 0x9f3   :  { %v1618_v22 = vadd.f32 %v1617_v12, %v1601_v13 }
 0x9f4   :  { %v1603_v41 = vpop.xlane.xlu0 %1602 }
 0x9f5   :  { %v1626_v19 = vadd.f32 %v1618_v22, %v2971_v36  ;;  %v1619_v17 = vadd.f32 %v1617_v12, %v1603_v41 }
 0x9f6   :  { %v1609_v37 = vpop.xlane.xlu1 %1608 }
 0x9f7   :  { %v1627_v18 = vadd.f32 %v1619_v17, %v2977_v28  ;;  %1643 = vperm.xlu1 %2228, %v1626_v19   ;;  %v1622_v53 = vadd.f32 %v1617_v12, %v1609_v37 }
 0x9f8   :  { %v1605_v21 = vpop.xlane.xlu0 %1604 }
 0x9f9   :  { %v1620_v30 = vadd.f32 %v1617_v12, %v1605_v21  ;;  %1646 = vperm.xlu0 %2229, %v1627_v18   ;;  %v1630_v42 = vadd.f32 %v1622_v53, %v2967_v46 }
 0x9fa   :  { %v1613_v55 = vpop.xlane.xlu1 %1612 }
 0x9fb   :  { %v1628_v38 = vadd.f32 %v1620_v30, %v2982_v44  ;;  %v1624_v36 = vadd.f32 %v1617_v12, %v1613_v55 }
 0x9fc   :  { %v1607_v39 = vpop.xlane.xlu0 %1606 }
 0x9fd   :  { %1649 = vperm.xlu1 %2228, %v1628_v38   ;;  %v1621_v43 = vadd.f32 %v1617_v12, %v1607_v39  ;;  %v1632_v44 = vadd.f32 %v1624_v36, %v2993_v35 }
 0x9ff   :  { %v1629_v28 = vadd.f32 %v1621_v43, %v2986_v24 }
 0xa00   :  { %v1611_v32 = vpop.xlane.xlu0 %1610 }
 0xa01   :  { %v1623_v63 = vadd.f32 %v1617_v12, %v1611_v32  ;;  %1655 = vperm.xlu1 %2228, %v1630_v42  }
 0xa03   :  { %v1631_v45 = vadd.f32 %v1623_v63, %v2989_v9 }
 0xa04   :  { %v1615_v48 = vpop.xlane.xlu0 %1614 }
 0xa05   :  { %v1625_v11 = vadd.f32 %v1617_v12, %v1615_v48  ;;  %1652 = vperm.xlu1 %2228, %v1629_v28   ;;  %1658 = vperm.xlu0 %2229, %v1631_v45  }
 0xa07   :  { %v1633_v27 = vadd.f32 %v1625_v11, %v2997_v54 }
 0xa09   :  { %1661 = vperm.xlu1 %2228, %v1632_v44   ;;  %1664 = vperm.xlu0 %2229, %v1633_v27  }
 0xa76   :  { %v1644_v46 = vpop.permute.xlu1 %1643 }
 0xa77   :  { %v1669_v9 = vrot.slane %v1644_v46, %v2895_v40 }
 0xa78   :  { %v1647_v29 = vpop.permute.xlu0 %1646 }
 0xa79   :  { %v1673_v34 = vrot.slane %v1647_v29, %v2895_v40 }
 0xa7b   :  { %v1698_v50 = vsel %vm769_vm1, %v1673_v34, %v1669_v9 }
 0xa7c   :  { %v1650_v33 = vpop.permute.xlu1 %1649 }
 0xa7d   :  { %v1677_v24 = vrot.slane %v1650_v33, %v2895_v40 }
 0xa7f   :  { %v1699_v54 = vsel %vm771_vm2, %v1677_v24, %v1698_v50 }
 0xa80   :  { %v1656_v15 = vpop.permute.xlu1 %1655 }
 0xa81   :  { %v1685_v0 = vrot.slane %v1656_v15, %v2895_v40 }
 0xa84   :  { %v1653_v52 = vpop.permute.xlu1 %1652  ;;  %v1659_v23 = vpop.permute.xlu0 %1658 }
 0xa85   :  { %v1681_v35 = vrot.slane %v1653_v52, %v2895_v40  ;;  %v1689_v56 = vrot.slane %v1659_v23, %v2895_v40 }
 0xa87   :  { %v1700_v25 = vsel %vm773_vm3, %v1681_v35, %v1699_v54 }
 0xa88   :  { %v1701_v20 = vsel %vm775_vm4, %v1685_v0, %v1700_v25  ;;  %v1662_v5 = vpop.permute.xlu1 %1661  ;;  %v1665_v6 = vpop.permute.xlu0 %1664 }
 0xa89   :  { %v1702_v57 = vsel %vm777_vm5, %v1689_v56, %v1701_v20  ;;  %v1693_v47 = vrot.slane %v1662_v5, %v2895_v40  ;;  %v1697_v31 = vrot.slane %v1665_v6, %v2895_v40 }
 0xa8b   :  { %v1703_v51 = vsel %vm779_vm6, %v1693_v47, %v1702_v57 }
 0xa8c   :  { %v1704_v7 = vsel %vm781_vm7, %v1697_v31, %v1703_v51 }
 0xa8d   :  { %1706 = vst.msk [vmem:[#allocation18] sm:$0xff] %vm784_vm8, %v1704_v7 }
 0xa8e   :  { %2475 = shalt.err (!%p2472_p6)
}
 0xa8f   :  { %s2476_s8 = scalar_lea.hbm %s3168_s16, 128 }
 0xa90   :  { %p2477_p7 = scmp.ne.s32.totalorder %s3168_s16, %s2476_s8  ;;  %p2480_p8 = scmp.lt.u32.totalorder %s2476_s8, %s3168_s16 }
 0xa92   :  { %p2482_p9 = pnand %p2480_p8, %p2477_p7 }
 0xa94   :  { %2485 = shalt.err (!%p2482_p9)
}
 0xa95   :  { %1716 = dma.vmem_to_hbm [thread:$0]  %s1714_s1, 128, %s3168_s16, [#allocation5]  }
 0xa96   :  { %2496 = dma.done.wait [#allocation5], 128  }
 0xa97   :  { %2497 = vsyncadd [#allocation5], 4294967168 }
 0xa98   :  { %1720 = vsyncpa [#allocation4], 1 }
 0xa99   :  { %1721 = vsyncpa [#allocation7], 1 }
 0xa9a   :  { %1722 = vsyncpa [#allocation10], 1 }
 0xa9b   :  { %1723 = vsyncpa [#allocation13], 1 }
 0xa9c   :  { %1724 = vsyncpa [#allocation16], 1 }
 0xa9d   :  { %1725 = vsyncpa [#allocation5], 1 }

// kernel: tpu_custom_call.1
= control target key start
LH: loop header
LB: loop body
LE: loop exit
PB: predicated region body
PF: predicated region fallthrough
CT: control target
= control target key end

     0   :  { %s3152_s0 = inlined_call_operand.hbm [shape: f32[8,128], index: 0, kind: input, shape index: {}]   ;;  %s3153_s1 = inlined_call_operand.hbm [shape: f32[8,128], index: 1, kind: input, shape index: {}]   ;;  %s3154_s2 = inlined_call_operand.hbm [shape: f32[8,8,128], index: 2, kind: input, shape index: {}]   ;;  %s3155_s3 = inlined_call_operand.vmem [shape: f32[8,8], index: 3, kind: input, shape index: {}]   ;;  %s3156_s4 = inlined_call_operand.hbm [shape: f32[128,128], index: 4, kind: input, shape index: {}]   ;;  %s3157_s5 = inlined_call_operand.vmem [shape: f32[1,128], index: 5, kind: input, shape index: {}]   ;;  %s3158_s6 = inlined_call_operand.hbm [shape: f32[128,128], index: 6, kind: input, shape index: {}]   ;;  %s3159_s7 = inlined_call_operand.vmem [shape: f32[1,128], index: 7, kind: input, shape index: {}]   ;;  %s3160_s8 = inlined_call_operand.hbm [shape: f32[128,128], index: 8, kind: input, shape index: {}]   ;;  %s3161_s9 = inlined_call_operand.hbm [shape: f32[128,128], index: 9, kind: input, shape index: {}]   ;;  %s3162_s10 = inlined_call_operand.vmem [shape: f32[1,128], index: 10, kind: input, shape index: {}]   ;;  %s3163_s11 = inlined_call_operand.hbm [shape: f32[128,128], index: 11, kind: input, shape index: {}]   ;;  %s3164_s12 = inlined_call_operand.hbm [shape: f32[128,128], index: 12, kind: input, shape index: {}]   ;;  %s3165_s13 = inlined_call_operand.vmem [shape: f32[1,128], index: 13, kind: input, shape index: {}]   ;;  %s3166_s14 = inlined_call_operand.vmem [shape: f32[1,128], index: 14, kind: input, shape index: {}]   ;;  %s3167_s15 = inlined_call_operand.<no memory space> [shape: f32[1,1], index: 15, kind: input, shape index: {}]   ;;  %s3168_s16 = inlined_call_operand.hbm [shape: f32[8,8], index: 16, kind: output, shape index: {}]  }
   0x1   :  { %3170 = sst [smem:[#allocation25_spill]] %s3152_s0 }
   0x2   :  { %22 = vsyncpa [#allocation4], 0 }
   0x3   :  { %23 = vsyncpa [#allocation7], 0 }
   0x4   :  { %24 = vsyncpa [#allocation10], 0 }
   0x5   :  { %25 = vsyncpa [#allocation13], 0 }
   0x6   :  { %26 = vsyncpa [#allocation16], 0 }
   0x7   :  { %27 = vsyncpa [#allocation5], 0  ;;  %s2498_s21 = smov [#allocation6]   ;;  %s2266_s25 = scalar_lea.hbm %s3153_s1, 128 }
   0x8   :  { %s44_s22 = sshll.u32 %s2498_s21, 4  ;;  %p2267_p0 = scmp.ne.s32.totalorder %s3153_s1, %s2266_s25  ;;  %s45_s22 = int_to_ptr.vmem [resolvable:$true] %s44_s22 }
   0x9   :  { %p2270_p1 = scmp.lt.u32.totalorder %s2266_s25, %s3153_s1 }
   0xb   :  { %p2272_p2 = pnand %p2270_p1, %p2267_p0 }
   0xd   :  { %2275 = shalt.err (!%p2272_p2)
}
   0xe   :  { %s2276_s30 = scalar_lea.vmem %s45_s22, 128  ;;  %p2281_p4 = scmp.lt.s32.totalorder %s45_s22, %s45_s22 }
   0xf   :  { %p2277_p3 = scmp.ne.s32.totalorder %s45_s22, %s2276_s30  ;;  %p2282_p5 = scmp.lt.s32.totalorder %s2276_s30, %s2276_s30 }
  0x11   :  { %p2283_p6 = por %p2282_p5, %p2281_p4 }
  0x13   :  { %p2284_p7 = pnand %p2283_p6, %p2277_p3 }
  0x15   :  { %2287 = shalt.err (!%p2284_p7)
}
  0x16   :  { %47 = dma.hbm_to_vmem [thread:$0]  %s3153_s1, 128, %s45_s22, [#allocation7]  }
  0x17   :  { %s2499_s18 = smov [#allocation9]   ;;  %s2500_s20 = smov [#allocation12]  }
  0x18   :  { %s67_s19 = sshll.u32 %s2499_s18, 4  ;;  %s95_s21 = sshll.u32 %s2500_s20, 4  ;;  %s68_s19 = int_to_ptr.vmem [resolvable:$true] %s67_s19  ;;  %s96_s21 = int_to_ptr.vmem [resolvable:$true] %s95_s21 }
  0x19   :  { %s2288_s25 = scalar_lea.hbm %s3156_s4, 2048 }
  0x1a   :  { %p2289_p8 = scmp.ne.s32.totalorder %s3156_s4, %s2288_s25  ;;  %p2292_p9 = scmp.lt.u32.totalorder %s2288_s25, %s3156_s4 }
  0x1c   :  { %p2294_p10 = pnand %p2292_p9, %p2289_p8 }
  0x1e   :  { %2297 = shalt.err (!%p2294_p10)
}
  0x1f   :  { %s2298_s1 = scalar_lea.vmem %s68_s19, 2048  ;;  %p2303_p12 = scmp.lt.s32.totalorder %s68_s19, %s68_s19 }
  0x20   :  { %p2299_p11 = scmp.ne.s32.totalorder %s68_s19, %s2298_s1  ;;  %p2304_p13 = scmp.lt.s32.totalorder %s2298_s1, %s2298_s1 }
  0x22   :  { %p2305_p0 = por %p2304_p13, %p2303_p12 }
  0x24   :  { %p2306_p1 = pnand %p2305_p0, %p2299_p11 }
  0x26   :  { %2309 = shalt.err (!%p2306_p1)
}
  0x27   :  { %s2501_s22 = smov 128   ;;  %s2502_s30 = smov 8  }
  0x28   :  { %73 = dma.hbm_to_vmem [thread:$0]  %s3156_s4, 2048, %s68_s19, [#allocation10], %s2501_s22, %s2501_s22, %s2502_s30  }
  0x29   :  { %s2310_s23 = scalar_lea.hbm %s3160_s8, 2048 }
  0x2a   :  { %p2311_p2 = scmp.ne.s32.totalorder %s3160_s8, %s2310_s23  ;;  %p2314_p3 = scmp.lt.u32.totalorder %s2310_s23, %s3160_s8 }
  0x2c   :  { %p2316_p4 = pnand %p2314_p3, %p2311_p2 }
  0x2e   :  { %2319 = shalt.err (!%p2316_p4)
}
  0x2f   :  { %s2320_s28 = scalar_lea.vmem %s96_s21, 2048  ;;  %p2325_p6 = scmp.lt.s32.totalorder %s96_s21, %s96_s21 }
  0x30   :  { %p2321_p5 = scmp.ne.s32.totalorder %s96_s21, %s2320_s28  ;;  %p2326_p7 = scmp.lt.s32.totalorder %s2320_s28, %s2320_s28 }
  0x32   :  { %p2327_p8 = por %p2326_p7, %p2325_p6 }
  0x34   :  { %p2328_p9 = pnand %p2327_p8, %p2321_p5 }
  0x36   :  { %2331 = shalt.err (!%p2328_p9)
}
  0x37   :  { %101 = dma.hbm_to_vmem [thread:$0]  %s3160_s8, 2048, %s96_s21, [#allocation13], %s2501_s22, %s2501_s22, %s2502_s30  }
  0x38   :  { %s2503_s29 = smov [#allocation15]   ;;  %s2504_s0 = smov [#allocation3]  }
  0x39   :  { %s121_s1 = sshll.u32 %s2503_s29, 4  ;;  %s34_s17 = sshll.u32 %s2504_s0, 4  ;;  %s122_s1 = int_to_ptr.vmem [resolvable:$true] %s121_s1  ;;  %s35_s17 = int_to_ptr.vmem [resolvable:$true] %s34_s17 }
  0x3a   :  { %s2332_s23 = scalar_lea.hbm %s3163_s11, 2048 }
  0x3b   :  { %p2333_p10 = scmp.ne.s32.totalorder %s3163_s11, %s2332_s23  ;;  %p2336_p11 = scmp.lt.u32.totalorder %s2332_s23, %s3163_s11 }
  0x3d   :  { %p2338_p12 = pnand %p2336_p11, %p2333_p10 }
  0x3f   :  { %2341 = shalt.err (!%p2338_p12)
}
  0x40   :  { %s2342_s8 = scalar_lea.vmem %s122_s1, 2048  ;;  %p2347_p0 = scmp.lt.s32.totalorder %s122_s1, %s122_s1 }
  0x41   :  { %p2343_p13 = scmp.ne.s32.totalorder %s122_s1, %s2342_s8  ;;  %p2348_p1 = scmp.lt.s32.totalorder %s2342_s8, %s2342_s8 }
  0x43   :  { %p2349_p2 = por %p2348_p1, %p2347_p0 }
  0x45   :  { %p2350_p3 = pnand %p2349_p2, %p2343_p13 }
  0x47   :  { %2353 = shalt.err (!%p2350_p3)
}
  0x48   :  { %127 = dma.hbm_to_vmem [thread:$0]  %s3163_s11, 2048, %s122_s1, [#allocation16], %s2501_s22, %s2501_s22, %s2502_s30  }
  0x49   :  { %s3171_s29 = sld [smem:[#allocation25_spill]] }
  0x4f   :  { %s2354_s0 = scalar_lea.hbm %s3171_s29, 128 }
  0x50   :  { %p2355_p4 = scmp.ne.s32.totalorder %s3171_s29, %s2354_s0  ;;  %p2358_p5 = scmp.lt.u32.totalorder %s2354_s0, %s3171_s29 }
  0x52   :  { %p2360_p6 = pnand %p2358_p5, %p2355_p4 }
  0x54   :  { %2363 = shalt.err (!%p2360_p6)
}
  0x55   :  { %s2364_s25 = scalar_lea.vmem %s35_s17, 128  ;;  %p2369_p8 = scmp.lt.s32.totalorder %s35_s17, %s35_s17 }
  0x56   :  { %p2365_p7 = scmp.ne.s32.totalorder %s35_s17, %s2364_s25  ;;  %p2370_p9 = scmp.lt.s32.totalorder %s2364_s25, %s2364_s25 }
  0x58   :  { %p2371_p10 = por %p2370_p9, %p2369_p8 }
  0x5a   :  { %p2372_p11 = pnand %p2371_p10, %p2365_p7 }
  0x5c   :  { %2375 = shalt.err (!%p2372_p11)
}
  0x5d   :  { %37 = dma.hbm_to_vmem [thread:$0]  %s3171_s29, 128, %s35_s17, [#allocation4]  }
  0x5e   :  { %s2505_s26 = smov [#allocation8]   ;;  %s2506_s8 = smov [#allocation11]  }
  0x5f   :  { %s53_s27 = sshll.u32 %s2505_s26, 4  ;;  %s81_s21 = sshll.u32 %s2506_s8, 4  ;;  %s54_s27 = int_to_ptr.vmem [resolvable:$true] %s53_s27  ;;  %s82_s21 = int_to_ptr.vmem [resolvable:$true] %s81_s21 }
  0x60   :  { %s2376_s19 = scalar_lea.hbm %s3154_s2, 1024 }
  0x61   :  { %p2377_p12 = scmp.ne.s32.totalorder %s3154_s2, %s2376_s19  ;;  %p2380_p13 = scmp.lt.u32.totalorder %s2376_s19, %s3154_s2 }
  0x63   :  { %p2382_p0 = pnand %p2380_p13, %p2377_p12 }
  0x65   :  { %2385 = shalt.err (!%p2382_p0)
}
  0x66   :  { %s2386_s17 = scalar_lea.vmem %s54_s27, 1024  ;;  %p2391_p2 = scmp.lt.s32.totalorder %s54_s27, %s54_s27 }
  0x67   :  { %p2387_p1 = scmp.ne.s32.totalorder %s54_s27, %s2386_s17  ;;  %p2392_p3 = scmp.lt.s32.totalorder %s2386_s17, %s2386_s17 }
  0x69   :  { %p2393_p4 = por %p2392_p3, %p2391_p2 }
  0x6b   :  { %p2394_p5 = pnand %p2393_p4, %p2387_p1 }
  0x6d   :  { %2397 = shalt.err (!%p2394_p5)
}
  0x6e   :  { %59 = dma.hbm_to_vmem [thread:$0]  %s3154_s2, 1024, %s54_s27, [#allocation7], %s2501_s22, %s2501_s22, %s2502_s30  }
  0x6f   :  { %s2398_s1 = scalar_lea.hbm %s3158_s6, 2048 }
  0x70   :  { %p2399_p6 = scmp.ne.s32.totalorder %s3158_s6, %s2398_s1  ;;  %p2402_p7 = scmp.lt.u32.totalorder %s2398_s1, %s3158_s6 }
  0x72   :  { %p2404_p8 = pnand %p2402_p7, %p2399_p6 }
  0x74   :  { %2407 = shalt.err (!%p2404_p8)
}
  0x75   :  { %s2408_s19 = scalar_lea.vmem %s82_s21, 2048  ;;  %p2413_p10 = scmp.lt.s32.totalorder %s82_s21, %s82_s21 }
  0x76   :  { %p2409_p9 = scmp.ne.s32.totalorder %s82_s21, %s2408_s19  ;;  %p2414_p11 = scmp.lt.s32.totalorder %s2408_s19, %s2408_s19 }
  0x78   :  { %p2415_p12 = por %p2414_p11, %p2413_p10 }
  0x7a   :  { %p2416_p13 = pnand %p2415_p12, %p2409_p9 }
  0x7c   :  { %2419 = shalt.err (!%p2416_p13)
}
  0x7d   :  { %87 = dma.hbm_to_vmem [thread:$0]  %s3158_s6, 2048, %s82_s21, [#allocation10], %s2501_s22, %s2501_s22, %s2502_s30  }
  0x7e   :  { %s2507_s0 = smov [#allocation14]   ;;  %s2508_s20 = smov [#allocation17]  }
  0x7f   :  { %s107_s18 = sshll.u32 %s2507_s0, 4  ;;  %s133_s23 = sshll.u32 %s2508_s20, 4  ;;  %s108_s18 = int_to_ptr.vmem [resolvable:$true] %s107_s18  ;;  %s134_s23 = int_to_ptr.vmem [resolvable:$true] %s133_s23 }
  0x80   :  { %s2420_s24 = scalar_lea.hbm %s3161_s9, 2048 }
  0x81   :  { %p2421_p0 = scmp.ne.s32.totalorder %s3161_s9, %s2420_s24  ;;  %p2424_p1 = scmp.lt.u32.totalorder %s2420_s24, %s3161_s9 }
  0x83   :  { %p2426_p2 = pnand %p2424_p1, %p2421_p0 }
  0x85   :  { %2429 = shalt.err (!%p2426_p2)
}
  0x86   :  { %s2430_s6 = scalar_lea.vmem %s108_s18, 2048  ;;  %p2435_p4 = scmp.lt.s32.totalorder %s108_s18, %s108_s18 }
  0x87   :  { %p2431_p3 = scmp.ne.s32.totalorder %s108_s18, %s2430_s6  ;;  %p2436_p5 = scmp.lt.s32.totalorder %s2430_s6, %s2430_s6 }
  0x89   :  { %p2437_p6 = por %p2436_p5, %p2435_p4 }
  0x8b   :  { %p2438_p7 = pnand %p2437_p6, %p2431_p3 }
  0x8d   :  { %2441 = shalt.err (!%p2438_p7)
}
  0x8e   :  { %113 = dma.hbm_to_vmem [thread:$0]  %s3161_s9, 2048, %s108_s18, [#allocation13], %s2501_s22, %s2501_s22, %s2502_s30  }
  0x8f   :  { %s2442_s19 = scalar_lea.hbm %s3164_s12, 2048 }
  0x90   :  { %p2443_p8 = scmp.ne.s32.totalorder %s3164_s12, %s2442_s19  ;;  %p2446_p9 = scmp.lt.u32.totalorder %s2442_s19, %s3164_s12 }
  0x92   :  { %p2448_p10 = pnand %p2446_p9, %p2443_p8 }
  0x94   :  { %2451 = shalt.err (!%p2448_p10)
}
  0x95   :  { %s2452_s17 = scalar_lea.vmem %s134_s23, 2048  ;;  %p2457_p12 = scmp.lt.s32.totalorder %s134_s23, %s134_s23 }
  0x96   :  { %p2453_p11 = scmp.ne.s32.totalorder %s134_s23, %s2452_s17  ;;  %p2458_p13 = scmp.lt.s32.totalorder %s2452_s17, %s2452_s17 }
  0x98   :  { %p2459_p0 = por %p2458_p13, %p2457_p12 }
  0x9a   :  { %p2460_p1 = pnand %p2459_p0, %p2453_p11 }
  0x9c   :  { %2463 = shalt.err (!%p2460_p1)
}
  0x9d   :  { %139 = dma.hbm_to_vmem [thread:$0]  %s3164_s12, 2048, %s134_s23, [#allocation16], %s2501_s22, %s2501_s22, %s2502_s30  }
  0x9e   :  { %2486 = dma.done.wait [#allocation4], 128  }
  0x9f   :  { %2487 = vsyncadd [#allocation4], 4294967168 }
  0xa0   :  { %2488 = dma.done.wait [#allocation7], 1152  }
  0xa1   :  { %2489 = vsyncadd [#allocation7], 4294966144 }
  0xa2   :  { %2490 = dma.done.wait [#allocation10], 4096  }
  0xa3   :  { %2491 = vsyncadd [#allocation10], 4294963200 }
  0xa4   :  { %2492 = dma.done.wait [#allocation13], 4096  }
  0xa5   :  { %2493 = vsyncadd [#allocation13], 4294963200 }
  0xa6   :  { %2494 = dma.done.wait [#allocation16], 4096  }
  0xa7   :  { %2495 = vsyncadd [#allocation16], 4294963200  ;;  %v2509_v0 = vmov 0.0|0.0   ;;  %vm2510_vm0 = vmmov 0   ;;  %v2511_v1 = vmov 0.0   ;;  %v174_v2 = vld [vmem:[#allocation9] sm:$0xff] }
  0xa8   :  { %2059 = vmatprep.subr.bf16.mxu0 %v2509_v0  ;;  %1872 = vmatprep.mubr.msk.f32.mxu0 %vm2510_vm0, %v2511_v1  ;;  %v175_v3 = vld [vmem:[#allocation9 + $0x8] sm:$0xff]  ;;  %v176_v4 = vld [vmem:[#allocation9 + $0x10] sm:$0xff]  ;;  %v177_v6 = vld [vmem:[#allocation9 + $0x18] sm:$0xff]  ;;  %vm769_vm1 = vcmask 1041409   ;;  %vm771_vm2 = vcmask 1042434   ;;  %vm773_vm3 = vcmask 1043459  }
  0xa9   :  { %2083 = vmatprep.subr.bf16.mxu1 %v2509_v0  ;;  %1907 = vmatprep.mubr.msk.f32.mxu1 %vm2510_vm0, %v2511_v1  ;;  %v2060_v5 = vpack.c.bf16 %v175_v3, %v174_v2  ;;  %v2063_v7 = vpack.c.bf16 %v177_v6, %v176_v4  ;;  %v178_v8 = vld [vmem:[#allocation9 + $0x20] sm:$0xff]  ;;  %v179_v9 = vld [vmem:[#allocation9 + $0x28] sm:$0xff]  ;;  %v180_v11 = vld [vmem:[#allocation9 + $0x30] sm:$0xff]  ;;  %vm775_vm4 = vcmask 1044484   ;;  %vm777_vm5 = vcmask 1045509  }
  0xaa   :  { %v2066_v10 = vpack.c.bf16 %v179_v9, %v178_v8  ;;  %v181_v12 = vld [vmem:[#allocation9 + $0x38] sm:$0xff]  ;;  %v182_v14 = vld [vmem:[#allocation9 + $0x40] sm:$0xff]  ;;  %v183_v15 = vld [vmem:[#allocation9 + $0x48] sm:$0xff]  ;;  %vm779_vm6 = vcmask 1046534   ;;  %vm781_vm7 = vcmask 1047559   ;;  %vm784_vm8 = vcmask 64512  }
  0xab   :  { %2061 = vmatpush3.bf16.msra.mxu0 %v2060_v5  ;;  %v2069_v13 = vpack.c.bf16 %v181_v12, %v180_v11  ;;  %v2072_v16 = vpack.c.bf16 %v183_v15, %v182_v14  ;;  %v184_v17 = vld [vmem:[#allocation9 + $0x50] sm:$0xff]  ;;  %v185_v18 = vld [vmem:[#allocation9 + $0x58] sm:$0xff]  ;;  %v186_v20 = vld [vmem:[#allocation9 + $0x60] sm:$0xff] }
  0xac   :  { %2062 = vmatprep.subr.bf16.mxu0 %v2509_v0  ;;  %v2075_v19 = vpack.c.bf16 %v185_v18, %v184_v17  ;;  %v187_v21 = vld [vmem:[#allocation9 + $0x68] sm:$0xff]  ;;  %v188_v23 = vld [vmem:[#allocation9 + $0x70] sm:$0xff]  ;;  %v189_v24 = vld [vmem:[#allocation9 + $0x78] sm:$0xff] }
  0xad   :  { %v2078_v22 = vpack.c.bf16 %v187_v21, %v186_v20  ;;  %v2081_v25 = vpack.c.bf16 %v189_v24, %v188_v23  ;;  %v173_v26 = vld [vmem:[#allocation3] sm:$0xff]  ;;  %v274_v27 = vld [vmem:[#allocation11] sm:$0xff]  ;;  %v275_v28 = vld [vmem:[#allocation11 + $0x8] sm:$0xff]  ;;  %v468_v23 = vlaneseq }
  0xae   :  { %v2084_v29 = vpack.c.bf16 %v275_v28, %v274_v27  ;;  %v276_v30 = vld [vmem:[#allocation11 + $0x10] sm:$0xff]  ;;  %v277_v31 = vld [vmem:[#allocation11 + $0x18] sm:$0xff]  ;;  %v278_v33 = vld [vmem:[#allocation11 + $0x20] sm:$0xff] }
  0xaf   :  { %2064 = vmatpush3.bf16.msra.mxu0 %v2063_v7  ;;  %v2087_v32 = vpack.c.bf16 %v277_v31, %v276_v30  ;;  %v279_v34 = vld [vmem:[#allocation11 + $0x28] sm:$0xff]  ;;  %v280_v36 = vld [vmem:[#allocation11 + $0x30] sm:$0xff]  ;;  %v281_v37 = vld [vmem:[#allocation11 + $0x38] sm:$0xff]  ;;  %v2767_v24 = vshrl.u32 %v468_v23, 7 }
  0xb0   :  { %2065 = vmatprep.subr.bf16.mxu0 %v2509_v0  ;;  %2085 = vmatpush3.bf16.msra.mxu1 %v2084_v29  ;;  %v2090_v35 = vpack.c.bf16 %v279_v34, %v278_v33  ;;  %v2093_v38 = vpack.c.bf16 %v281_v37, %v280_v36  ;;  %v282_v39 = vld [vmem:[#allocation11 + $0x40] sm:$0xff]  ;;  %v283_v40 = vld [vmem:[#allocation11 + $0x48] sm:$0xff]  ;;  %v284_v42 = vld [vmem:[#allocation11 + $0x50] sm:$0xff] }
  0xb1   :  { %2086 = vmatprep.subr.bf16.mxu1 %v2509_v0  ;;  %v2096_v41 = vpack.c.bf16 %v283_v40, %v282_v39  ;;  %v285_v43 = vld [vmem:[#allocation11 + $0x58] sm:$0xff]  ;;  %v286_v45 = vld [vmem:[#allocation11 + $0x60] sm:$0xff]  ;;  %v287_v46 = vld [vmem:[#allocation11 + $0x68] sm:$0xff]  ;;  %v2778_v27 = vsub.s32 2, %v2767_v24  ;;  %v2781_v28 = vsub.s32 1, %v2767_v24  ;;  %v2784_v29 = vsub.s32 5, %v2767_v24 }
  0xb2   :  { %v2099_v44 = vpack.c.bf16 %v285_v43, %v284_v42  ;;  %v2102_v47 = vpack.c.bf16 %v287_v46, %v286_v45  ;;  %v288_v48 = vld [vmem:[#allocation11 + $0x70] sm:$0xff]  ;;  %v289_v49 = vld [vmem:[#allocation11 + $0x78] sm:$0xff]  ;;  %v369_v51 = vld [vmem:[#allocation12] sm:$0xff]  ;;  %v2793_v33 = vsub.s32 3, %v2767_v24  ;;  %v2800_v36 = vsub.s32 4, %v2767_v24 }
  0xb3   :  { %2067 = vmatpush3.bf16.msra.mxu0 %v2066_v10  ;;  %v2105_v50 = vpack.c.bf16 %v289_v49, %v288_v48  ;;  %v370_v52 = vld [vmem:[#allocation12 + $0x8] sm:$0xff]  ;;  %v371_v53 = vld [vmem:[#allocation12 + $0x10] sm:$0xff]  ;;  %v372_v55 = vld [vmem:[#allocation12 + $0x18] sm:$0xff] }
  0xb4   :  { %2068 = vmatprep.subr.bf16.mxu0 %v2509_v0  ;;  %2088 = vmatpush3.bf16.msra.mxu1 %v2087_v32  ;;  %v2108_v54 = vpack.c.bf16 %v370_v52, %v369_v51  ;;  %v2111_v56 = vpack.c.bf16 %v372_v55, %v371_v53  ;;  %v373_v57 = vld [vmem:[#allocation12 + $0x20] sm:$0xff]  ;;  %v374_v58 = vld [vmem:[#allocation12 + $0x28] sm:$0xff]  ;;  %v375_v60 = vld [vmem:[#allocation12 + $0x30] sm:$0xff] }
  0xb5   :  { %2089 = vmatprep.subr.bf16.mxu1 %v2509_v0  ;;  %v2114_v59 = vpack.c.bf16 %v374_v58, %v373_v57  ;;  %v376_v61 = vld [vmem:[#allocation12 + $0x38] sm:$0xff]  ;;  %v377_v63 = vld [vmem:[#allocation12 + $0x40] sm:$0xff]  ;;  %v378_v2 = vld [vmem:[#allocation12 + $0x48] sm:$0xff] }
  0xb6   :  { %v2117_v62 = vpack.c.bf16 %v376_v61, %v375_v60  ;;  %v2120_v3 = vpack.c.bf16 %v378_v2, %v377_v63  ;;  %v379_v4 = vld [vmem:[#allocation12 + $0x50] sm:$0xff]  ;;  %v380_v5 = vld [vmem:[#allocation12 + $0x58] sm:$0xff]  ;;  %v381_v7 = vld [vmem:[#allocation12 + $0x60] sm:$0xff] }
  0xb7   :  { %2070 = vmatpush3.bf16.msra.mxu0 %v2069_v13  ;;  %v2123_v6 = vpack.c.bf16 %v380_v5, %v379_v4  ;;  %v382_v8 = vld [vmem:[#allocation12 + $0x68] sm:$0xff]  ;;  %v1726_v10 = vld [vmem:[%s3157_s5] ss:$0 sm:$0xff]  ;;  %v384_v21 = vld [vmem:[#allocation12 + $0x78] sm:$0xff] }
  0xb8   :  { %2071 = vmatprep.subr.bf16.mxu0 %v2509_v0  ;;  %2091 = vmatpush3.bf16.msra.mxu1 %v2090_v35  ;;  %v2126_v9 = vpack.c.bf16 %v382_v8, %v381_v7  ;;  %v383_v20 = vld [vmem:[#allocation12 + $0x70] sm:$0xff]  ;;  %v367_v40 = vld [vmem:[#allocation6] sm:$0xff]  ;;  %v2823_v60 = vld [vmem:[#allocation8 + $0x8] sm:$0xff] }
  0xb9   :  { %2092 = vmatprep.subr.bf16.mxu1 %v2509_v0  ;;  %v2827_v2 = vld [vmem:[#allocation8 + $0x18] sm:$0xff]  ;;  %v2834_v8 = vld [vmem:[#allocation8 + $0x10] sm:$0xff] }
  0xbb   :  { %2073 = vmatpush3.bf16.msra.mxu0 %v2072_v16 }
  0xbc   :  { %2074 = vmatprep.subr.bf16.mxu0 %v2509_v0  ;;  %2094 = vmatpush3.bf16.msra.mxu1 %v2093_v38  ;;  %v1727_v38 = vld [vmem:[%s3159_s7] ss:$0 sm:$0xff] }
  0xbd   :  { %2095 = vmatprep.subr.bf16.mxu1 %v2509_v0 }
  0xbf   :  { %2076 = vmatpush3.bf16.msra.mxu0 %v2075_v19 }
  0xc0   :  { %2077 = vmatprep.subr.bf16.mxu0 %v2509_v0  ;;  %2097 = vmatpush3.bf16.msra.mxu1 %v2096_v41 }
  0xc1   :  { %2098 = vmatprep.subr.bf16.mxu1 %v2509_v0 }
  0xc3   :  { %2079 = vmatpush3.bf16.msra.mxu0 %v2078_v22  ;;  %v2129_v22 = vpack.c.bf16 %v384_v21, %v383_v20 }
  0xc4   :  { %2080 = vmatprep.subr.bf16.mxu0 %v2509_v0  ;;  %2100 = vmatpush3.bf16.msra.mxu1 %v2099_v44  ;;  %v2512_v44 = vmov 1966171168  }
  0xc5   :  { %2101 = vmatprep.subr.bf16.mxu1 %v2509_v0  ;;  %v466_v45 = vunpack.c.l.s4 %v2512_v44 }
  0xc7   :  { %2082 = vmatpush3.bf16.msra.mxu0 %v2081_v25  ;;  %v2772_v25 = vld [vmem:[%s3155_s3] sm:$0xff]  ;;  %v467_v46 = vunpack.c.0.s8 %v466_v45 }
  0xc8   :  { %2107 = vmatprep.subr.bf16.mxu0 %v2509_v0  ;;  %2103 = vmatpush3.bf16.msra.mxu1 %v2102_v47  ;;  %v641_v31 = vrot.slane %v2772_v25, %v2781_v28  ;;  %v648_v32 = vrot.slane %v2772_v25, %v2778_v27  ;;  %v669_v34 = vrot.slane %v2772_v25, %v2784_v29 }
  0xc9   :  { %2104 = vmatprep.subr.bf16.mxu1 %v2509_v0  ;;  %v655_v35 = vrot.slane %v2772_v25, %v2793_v33  ;;  %v662_v37 = vrot.slane %v2772_v25, %v2800_v36  ;;  %v2813_v47 = vsub.s32 %v467_v46, %v2767_v24 }
  0xca   :  { %1873 = vmatmul.mubr.f32.vlgmr.msra.gmra.mrb[0].mxu0 %v173_v26  ;;  %v2775_v26 = vsub.s32 0, %v2767_v24  ;;  %643 = vbcast.lane.b32.xlu0 %v641_v31, 256 }
  0xcb   :  { %1942 = vmatprep.mubr.msk.f32.mxu0 %vm2510_vm0, %v2511_v1  ;;  %2109 = vmatpush3.bf16.msra.mxu0 %v2108_v54 }
  0xcc   :  { %2106 = vmatpush3.bf16.msra.mxu1 %v2105_v50  ;;  %2110 = vmatprep.subr.bf16.mxu0 %v2509_v0  ;;  %v634_v30 = vrot.slane %v2772_v25, %v2775_v26 }
  0xcd   :  { %2131 = vmatprep.subr.bf16.mxu1 %v2509_v0 }
  0xce   :  { %636 = vbcast.lane.b32.xlu1 %v634_v30, 256  ;;  %671 = vbcast.lane.b32.xlu0 %v669_v34, 256  ;;  %v2855_v34 = vsub.s32 6, %v2767_v24 }
  0xcf   :  { %2112 = vmatpush3.bf16.msra.mxu0 %v2111_v56 }
  0xd0   :  { %2113 = vmatprep.subr.bf16.mxu0 %v2509_v0 }
  0xd2   :  { %650 = vbcast.lane.b32.xlu1 %v648_v32, 256  ;;  %v2513_v32 = vmov 0  }
  0xd3   :  { %2115 = vmatpush3.bf16.msra.mxu0 %v2114_v59  ;;  %2228 = vset.pattern.permute.xlu1 %v2513_v32 }
  0xd4   :  { %2116 = vmatprep.subr.bf16.mxu0 %v2509_v0  ;;  %2229 = vset.pattern.permute.xlu0 %v2513_v32 }
  0xd6   :  { %657 = vbcast.lane.b32.xlu1 %v655_v35, 256  ;;  %v2858_v35 = vsub.s32 7, %v2767_v24 }
  0xd7   :  { %2118 = vmatpush3.bf16.msra.mxu0 %v2117_v62 }
  0xd8   :  { %2119 = vmatprep.subr.bf16.mxu0 %v2509_v0 }
  0xda   :  { %664 = vbcast.lane.b32.xlu1 %v662_v37, 256  ;;  %v676_v37 = vrot.slane %v2772_v25, %v2855_v34 }
  0xdb   :  { %2121 = vmatpush3.bf16.msra.mxu0 %v2120_v3 }
  0xdc   :  { %2122 = vmatprep.subr.bf16.mxu0 %v2509_v0 }
  0xdf   :  { %2124 = vmatpush3.bf16.msra.mxu0 %v2123_v6 }
  0xe0   :  { %2125 = vmatprep.subr.bf16.mxu0 %v2509_v0 }
  0xe3   :  { %2127 = vmatpush3.bf16.msra.mxu0 %v2126_v9 }
  0xe4   :  { %2128 = vmatprep.subr.bf16.mxu0 %v2509_v0 }
  0xe7   :  { %2130 = vmatpush3.bf16.msra.mxu0 %v2129_v22  ;;  %v2850_v22 = vld [vmem:[#allocation8 + $0x30] sm:$0xff] }
  0xe8   :  { %2155 = vmatprep.subr.bf16.mxu0 %v2509_v0 }
 0x19d   :  { %v263_v11 = vpop.f32.mrb[0].mxu0 }
 0x19e   :  { %v264_v12 = vadd.f32 %v1726_v10, %v263_v11  ;;  %v1874_v13 = vpop.f32.mrb[1].mxu0 }
 0x1a0   :  { %v267_v14 = vsub.f32 0.0, %v264_v12 }
 0x1a2   :  { %v268_v15 = vmul.f32 1.442695, %v267_v14 }
 0x1a4   :  { %2230 = vpow2.f32 %v268_v15 }
 0x1ae   :  { %v2231_v16 = vpop.eup %2230 }
 0x1af   :  { %v270_v17 = vadd.f32 1.0, %v2231_v16  ;;  %v2842_v16 = vld [vmem:[#allocation8 + $0x20] sm:$0xff] }
 0x1b1   :  { %2232 = vrcp.f32 %v270_v17 }
 0x1bb   :  { %v2233_v18 = vpop.eup %2232 }
 0x1bc   :  { %v273_v19 = vmul.f32 %v2233_v18, %v264_v12  ;;  %v2838_v12 = vld [vmem:[#allocation8 + $0x28] sm:$0xff] }
 0x1be   :  { %1908 = vmatmul.mubr.f32.vlgmr.msra.gmra.mrb[0].mxu1 %v273_v19  ;;  %v2846_v19 = vld [vmem:[#allocation8 + $0x38] sm:$0xff] }
 0x1bf   :  { %1977 = vmatprep.mubr.msk.f32.mxu1 %vm2510_vm0, %v2511_v1 }
 0x291   :  { %v363_v39 = vpop.f32.mrb[0].mxu1 }
 0x292   :  { %v2807_v41 = vadd.f32 %v1727_v38, %v363_v39  ;;  %v1909_v42 = vpop.f32.mrb[1].mxu1  ;;  %v683_v38 = vrot.slane %v2772_v25, %v2858_v35  ;;  %v637_v39 = vpop.permute.xlu1 %636 }
 0x293   :  { %v644_v42 = vpop.permute.xlu0 %643 }
 0x294   :  { %v368_v43 = vadd.f32 %v367_v40, %v2807_v41 }
 0x296   :  { %1943 = vmatmul.mubr.f32.vlgmr.msra.gmra.mrb[2].mxu0 %v368_v43  ;;  %v651_v40 = vpop.permute.xlu1 %650 }
 0x297   :  { %2012 = vmatprep.mubr.msk.f32.mxu0 %vm2510_vm0, %v2511_v1  ;;  %v2819_v1 = vld [vmem:[#allocation8] sm:$0xff]  ;;  %v672_v44 = vpop.permute.xlu0 %671 }
 0x29a   :  { %v658_v43 = vpop.permute.xlu1 %657 }
 0x29e   :  { %v665_v46 = vpop.permute.xlu1 %664 }
 0x369   :  { %v451_v48 = vpop.f32.mrb[2].mxu0 }
 0x36a   :  { %v464_v49 = vcombine.high %v451_v48, %v451_v48  ;;  %v471_v50 = vrot.slane %v451_v48, %v2813_v47  ;;  %v1944_v51 = vpop.f32.mrb[3].mxu0  ;;  %v577_v52 = vmul.f32 %v451_v48, %v2807_v41 }
 0x36c   :  { %v478_v53 = vrot.slane %v464_v49, %v2813_v47  ;;  %v479_v54 = vcombine.high %v471_v50, %v471_v50  ;;  %578 = vadd.xlane.f32.xlu0 %v577_v52  ;;  %v487_v55 = vrot.slane %v471_v50, %v2813_v47 }
 0x36e   :  { %v516_v56 = vrot.slane %v487_v55, %v2775_v26  ;;  %v501_v57 = vrot.slane %v479_v54, %v2813_v47  ;;  %v509_v58 = vcombine.high %v487_v55, %v487_v55  ;;  %v480_v59 = vcombine.high %v478_v53, %v478_v53 }
 0x36f   :  { %v494_v7 = vrot.slane %v478_v53, %v2813_v47 }
 0x370   :  { %v553_v61 = vmul.f32 %v516_v56, %v2819_v1  ;;  %v520_v62 = vrot.slane %v501_v57, %v2775_v26  ;;  %v511_v63 = vcombine.high %v501_v57, %v501_v57  ;;  %v508_v3 = vrot.slane %v480_v59, %v2813_v47 }
 0x371   :  { %v524_v6 = vrot.slane %v509_v58, %v2775_v26  ;;  %v532_v14 = vrot.slane %v494_v7, %v2775_v26  ;;  %v510_v15 = vcombine.high %v494_v7, %v494_v7 }
 0x372   :  { %561 = vadd.xlane.f32.xlu0 %v553_v61  ;;  %v554_v4 = vmul.f32 %v520_v62, %v2823_v60  ;;  %v528_v5 = vrot.slane %v511_v63, %v2775_v26  ;;  %v536_v10 = vrot.slane %v508_v3, %v2775_v26  ;;  %v512_v11 = vcombine.high %v508_v3, %v508_v3 }
 0x373   :  { %v555_v13 = vmul.f32 %v524_v6, %v2834_v8  ;;  %v557_v20 = vmul.f32 %v532_v14, %v2842_v16  ;;  %v540_v21 = vrot.slane %v510_v15, %v2775_v26 }
 0x374   :  { %563 = vadd.xlane.f32.xlu1 %v554_v4  ;;  %v556_v9 = vmul.f32 %v528_v5, %v2827_v2  ;;  %v558_v17 = vmul.f32 %v536_v10, %v2838_v12  ;;  %v544_v18 = vrot.slane %v512_v11, %v2775_v26 }
 0x375   :  { %v559_v31 = vmul.f32 %v540_v21, %v2850_v22 }
 0x376   :  { %567 = vadd.xlane.f32.xlu0 %v556_v9  ;;  %v560_v30 = vmul.f32 %v544_v18, %v2846_v19 }
 0x378   :  { %565 = vadd.xlane.f32.xlu1 %v555_v13 }
 0x37a   :  { %571 = vadd.xlane.f32.xlu0 %v558_v17 }
 0x37c   :  { %569 = vadd.xlane.f32.xlu1 %v557_v20 }
 0x37e   :  { %575 = vadd.xlane.f32.xlu0 %v560_v30 }
 0x380   :  { %573 = vadd.xlane.f32.xlu1 %v559_v31 }
 0x391   :  { %678 = vbcast.lane.b32.xlu1 %v676_v37, 256  ;;  %v736_v37 = vand.u32 127, %v468_v23 }
 0x394   :  { %685 = vbcast.lane.b32.xlu0 %v683_v38, 256 }
 0x3f9   :  { %v579_v45 = vpop.xlane.xlu0 %578 }
 0x3fa   :  { %v584_v48 = vrot.slane %v579_v45, %v2775_v26  ;;  %v588_v51 = vrot.slane %v579_v45, %v2781_v28  ;;  %v592_v56 = vrot.slane %v579_v45, %v2778_v27  ;;  %v596_v58 = vrot.slane %v579_v45, %v2793_v33 }
 0x3fb   :  { %v600_v3 = vrot.slane %v579_v45, %v2800_v36  ;;  %v604_v5 = vrot.slane %v579_v45, %v2784_v29  ;;  %v608_v14 = vrot.slane %v579_v45, %v2855_v34  ;;  %v612_v17 = vrot.slane %v579_v45, %v2858_v35 }
 0x3ff   :  { %v562_v49 = vpop.xlane.xlu0 %561 }
 0x400   :  { %v621_v50 = vadd.f32 %v584_v48, %v562_v49 }
 0x401   :  { %v564_v52 = vpop.xlane.xlu1 %563 }
 0x402   :  { %v2866_v53 = vadd.f32 %v637_v39, %v621_v50  ;;  %v622_v54 = vadd.f32 %v588_v51, %v564_v52 }
 0x403   :  { %v568_v25 = vpop.xlane.xlu0 %567 }
 0x404   :  { %v2868_v55 = vadd.f32 %v644_v42, %v622_v54  ;;  %712 = vperm.xlu1 %2228, %v2866_v53   ;;  %v624_v62 = vadd.f32 %v596_v58, %v568_v25 }
 0x405   :  { %v566_v57 = vpop.xlane.xlu1 %565 }
 0x406   :  { %v623_v59 = vadd.f32 %v592_v56, %v566_v57  ;;  %715 = vperm.xlu0 %2229, %v2868_v55   ;;  %v2879_v9 = vadd.f32 %v658_v43, %v624_v62 }
 0x407   :  { %v572_v61 = vpop.xlane.xlu0 %571 }
 0x408   :  { %v2874_v63 = vadd.f32 %v651_v40, %v623_v59  ;;  %v626_v10 = vadd.f32 %v604_v5, %v572_v61  ;;  %v2895_v40 = vsub.s32 %v736_v37, %v2767_v24 }
 0x409   :  { %v570_v4 = vpop.xlane.xlu1 %569 }
 0x40a   :  { %v625_v6 = vadd.f32 %v600_v3, %v570_v4  ;;  %718 = vperm.xlu1 %2228, %v2874_v63   ;;  %v2886_v15 = vadd.f32 %v672_v44, %v626_v10 }
 0x40b   :  { %v576_v7 = vpop.xlane.xlu0 %575 }
 0x40c   :  { %v2881_v11 = vadd.f32 %v665_v46, %v625_v6  ;;  %v628_v30 = vadd.f32 %v612_v17, %v576_v7 }
 0x40d   :  { %v574_v13 = vpop.xlane.xlu1 %573 }
 0x40e   :  { %721 = vperm.xlu1 %2228, %v2879_v9   ;;  %724 = vperm.xlu0 %2229, %v2881_v11   ;;  %v627_v18 = vadd.f32 %v608_v14, %v574_v13 }
 0x40f   :  { %v686_v20 = vpop.permute.xlu0 %685 }
 0x410   :  { %v702_v32 = vadd.f32 %v686_v20, %v628_v30 }
 0x411   :  { %v679_v21 = vpop.permute.xlu1 %678 }
 0x412   :  { %v2889_v31 = vadd.f32 %v679_v21, %v627_v18  ;;  %727 = vperm.xlu1 %2228, %v2886_v15  }
 0x414   :  { %730 = vperm.xlu0 %2229, %v2889_v31  }
 0x416   :  { %733 = vperm.xlu1 %2228, %v702_v32  }
 0x483   :  { %v713_v38 = vpop.permute.xlu1 %712 }
 0x484   :  { %v740_v45 = vrot.slane %v713_v38, %v2895_v40 }
 0x485   :  { %v716_v39 = vpop.permute.xlu0 %715 }
 0x486   :  { %v744_v43 = vrot.slane %v716_v39, %v2895_v40 }
 0x488   :  { %v770_v49 = vsel %vm769_vm1, %v744_v43, %v740_v45 }
 0x489   :  { %v719_v42 = vpop.permute.xlu1 %718 }
 0x48a   :  { %v748_v44 = vrot.slane %v719_v42, %v2895_v40 }
 0x48c   :  { %v772_v50 = vsel %vm771_vm2, %v748_v44, %v770_v49 }
 0x48d   :  { %v722_v46 = vpop.permute.xlu1 %721  ;;  %v725_v48 = vpop.permute.xlu0 %724 }
 0x48e   :  { %v752_v23 = vrot.slane %v722_v46, %v2895_v40  ;;  %v756_v24 = vrot.slane %v725_v48, %v2895_v40 }
 0x490   :  { %v774_v51 = vsel %vm773_vm3, %v752_v23, %v772_v50 }
 0x491   :  { %v728_v52 = vpop.permute.xlu1 %727  ;;  %v776_v25 = vsel %vm775_vm4, %v756_v24, %v774_v51 }
 0x492   :  { %v760_v54 = vrot.slane %v728_v52, %v2895_v40 }
 0x493   :  { %v731_v56 = vpop.permute.xlu0 %730 }
 0x494   :  { %v778_v57 = vsel %vm777_vm5, %v760_v54, %v776_v25  ;;  %v764_v58 = vrot.slane %v731_v56, %v2895_v40 }
 0x495   :  { %v734_v59 = vpop.permute.xlu1 %733 }
 0x496   :  { %v768_v61 = vrot.slane %v734_v59, %v2895_v40  ;;  %v780_v62 = vsel %vm779_vm6, %v764_v58, %v778_v57 }
 0x498   :  { %v782_v3 = vsel %vm781_vm7, %v768_v61, %v780_v62 }
 0x499   :  { %v785_v4 = vsel %vm784_vm8, %v782_v3, -inf }
 0x49a   :  { %786 = vmax.xlane.f32.xlu0 %v785_v4 }
 0x527   :  { %v787_v5 = vpop.xlane.xlu0 %786 }
 0x528   :  { %v792_v6 = vrot.slane %v787_v5, %v2775_v26  ;;  %v796_v7 = vrot.slane %v787_v5, %v2781_v28  ;;  %v820_v10 = vrot.slane %v787_v5, %v2858_v35  ;;  %v800_v13 = vrot.slane %v787_v5, %v2778_v27 }
 0x529   :  { %v804_v21 = vrot.slane %v787_v5, %v2793_v33  ;;  %v808_v39 = vrot.slane %v787_v5, %v2800_v36 }
 0x52a   :  { %v829_v14 = vsub.f32 %v2866_v53, %v792_v6  ;;  %v830_v17 = vsub.f32 %v2868_v55, %v796_v7  ;;  %v836_v20 = vsub.f32 %v702_v32, %v820_v10  ;;  %v831_v30 = vsub.f32 %v2874_v63, %v800_v13 }
 0x52b   :  { %v832_v42 = vsub.f32 %v2879_v9, %v804_v21  ;;  %v812_v53 = vrot.slane %v787_v5, %v2784_v29  ;;  %v833_v55 = vsub.f32 %v2881_v11, %v808_v39  ;;  %v816_v63 = vrot.slane %v787_v5, %v2855_v34 }
 0x52c   :  { %v837_v18 = vmul.f32 1.442695, %v829_v14  ;;  %v839_v37 = vmul.f32 1.442695, %v830_v17  ;;  %v851_v38 = vmul.f32 1.442695, %v836_v20 }
 0x52d   :  { %v841_v43 = vmul.f32 1.442695, %v831_v30  ;;  %v843_v32 = vmul.f32 1.442695, %v832_v42  ;;  %v834_v45 = vsub.f32 %v2886_v15, %v812_v53  ;;  %v845_v46 = vmul.f32 1.442695, %v833_v55 }
 0x52e   :  { %2234 = vpow2.f32 %v837_v18  ;;  %v835_v48 = vsub.f32 %v2889_v31, %v816_v63 }
 0x52f   :  { %2236 = vpow2.f32 %v839_v37  ;;  %v847_v11 = vmul.f32 1.442695, %v834_v45 }
 0x530   :  { %2238 = vpow2.f32 %v851_v38  ;;  %v849_v15 = vmul.f32 1.442695, %v835_v48 }
 0x531   :  { %2240 = vpow2.f32 %v841_v43 }
 0x532   :  { %2242 = vpow2.f32 %v843_v32 }
 0x533   :  { %2244 = vpow2.f32 %v845_v46 }
 0x534   :  { %2246 = vpow2.f32 %v847_v11 }
 0x535   :  { %2248 = vpow2.f32 %v849_v15 }
 0x538   :  { %v2925_v44 = vpop.eup %2234 }
 0x539   :  { %862 = vperm.xlu1 %2228, %v2925_v44   ;;  %v2930_v9 = vpop.eup %2236 }
 0x53a   :  { %v2934_v49 = vpop.eup %2238 }
 0x53b   :  { %v2936_v23 = vpop.eup %2240  ;;  %883 = vperm.xlu0 %2229, %v2934_v49  }
 0x53c   :  { %v2940_v50 = vpop.eup %2242 }
 0x53d   :  { %865 = vperm.xlu1 %2228, %v2930_v9   ;;  %v2245_v24 = vpop.eup %2244 }
 0x53e   :  { %v2247_v31 = vpop.eup %2246 }
 0x53f   :  { %v2943_v51 = vpop.eup %2248 }
 0x541   :  { %868 = vperm.xlu1 %2228, %v2936_v23  }
 0x545   :  { %871 = vperm.xlu1 %2228, %v2940_v50  }
 0x549   :  { %874 = vperm.xlu1 %2228, %v2245_v24  }
 0x54d   :  { %877 = vperm.xlu1 %2228, %v2247_v31  }
 0x551   :  { %880 = vperm.xlu1 %2228, %v2943_v51  }
 0x5b8   :  { %v863_v52 = vpop.permute.xlu1 %862 }
 0x5b9   :  { %v888_v61 = vrot.slane %v863_v52, %v2895_v40 }
 0x5ba   :  { %v884_v7 = vpop.permute.xlu0 %883 }
 0x5bb   :  { %v916_v20 = vrot.slane %v884_v7, %v2895_v40 }
 0x5bc   :  { %v866_v54 = vpop.permute.xlu1 %865 }
 0x5bd   :  { %v892_v58 = vrot.slane %v866_v54, %v2895_v40 }
 0x5bf   :  { %v917_v5 = vsel %vm769_vm1, %v892_v58, %v888_v61 }
 0x5c0   :  { %v869_v25 = vpop.permute.xlu1 %868 }
 0x5c1   :  { %v896_v59 = vrot.slane %v869_v25, %v2895_v40  ;;  %v1150_v25 = vld [vmem:[#allocation14 + $0x8] sm:$0xff] }
 0x5c3   :  { %v918_v10 = vsel %vm771_vm2, %v896_v59, %v917_v5  ;;  %v1153_v59 = vld [vmem:[#allocation14 + $0x20] sm:$0xff] }
 0x5c4   :  { %v872_v56 = vpop.permute.xlu1 %871 }
 0x5c5   :  { %v900_v62 = vrot.slane %v872_v56, %v2895_v40  ;;  %v1151_v56 = vld [vmem:[#allocation14 + $0x10] sm:$0xff] }
 0x5c7   :  { %v919_v13 = vsel %vm773_vm3, %v900_v62, %v918_v10  ;;  %v1155_v62 = vld [vmem:[#allocation14 + $0x30] sm:$0xff] }
 0x5c8   :  { %v875_v57 = vpop.permute.xlu1 %874 }
 0x5c9   :  { %v904_v4 = vrot.slane %v875_v57, %v2895_v40 }
 0x5cb   :  { %v920_v17 = vsel %vm775_vm4, %v904_v4, %v919_v13 }
 0x5cc   :  { %v878_v3 = vpop.permute.xlu1 %877 }
 0x5cd   :  { %v908_v6 = vrot.slane %v878_v3, %v2895_v40 }
 0x5cf   :  { %v921_v21 = vsel %vm777_vm5, %v908_v6, %v920_v17 }
 0x5d0   :  { %v881_v14 = vpop.permute.xlu1 %880 }
 0x5d1   :  { %v912_v18 = vrot.slane %v881_v14, %v2895_v40 }
 0x5d3   :  { %v922_v30 = vsel %vm779_vm6, %v912_v18, %v921_v21 }
 0x5d4   :  { %v923_v37 = vsel %vm781_vm7, %v916_v20, %v922_v30 }
 0x5d5   :  { %v925_v38 = vsel %vm784_vm8, %v923_v37, 0.0 }
 0x5d6   :  { %926 = vadd.xlane.f32.xlu1 %v925_v38 }
 0x663   :  { %v927_v39 = vpop.xlane.xlu1 %926 }
 0x664   :  { %v948_v42 = vrot.slane %v927_v39, %v2800_v36  ;;  %v932_v43 = vrot.slane %v927_v39, %v2775_v26  ;;  %v936_v53 = vrot.slane %v927_v39, %v2781_v28  ;;  %v940_v55 = vrot.slane %v927_v39, %v2778_v27 }
 0x665   :  { %v944_v32 = vrot.slane %v927_v39, %v2793_v33  ;;  %v952_v48 = vrot.slane %v927_v39, %v2784_v29  ;;  %v956_v27 = vrot.slane %v927_v39, %v2855_v34  ;;  %v960_v29 = vrot.slane %v927_v39, %v2858_v35 }
 0x666   :  { %2250 = vrcp.f32 %v948_v42 }
 0x667   :  { %2252 = vrcp.f32 %v932_v43 }
 0x668   :  { %2254 = vrcp.f32 %v936_v53 }
 0x669   :  { %2256 = vrcp.f32 %v940_v55 }
 0x66a   :  { %2258 = vrcp.f32 %v944_v32 }
 0x66b   :  { %2260 = vrcp.f32 %v952_v48 }
 0x66c   :  { %2262 = vrcp.f32 %v956_v27  ;;  %v1157_v27 = vld [vmem:[#allocation14 + $0x40] sm:$0xff] }
 0x66d   :  { %2264 = vrcp.f32 %v960_v29  ;;  %v1159_v29 = vld [vmem:[#allocation14 + $0x50] sm:$0xff] }
 0x670   :  { %v2251_v63 = vpop.eup %2250 }
 0x671   :  { %v2253_v45 = vpop.eup %2252  ;;  %v2967_v46 = vmul.f32 %v2251_v63, %v2245_v24 }
 0x672   :  { %v2971_v36 = vmul.f32 %v2253_v45, %v2925_v44  ;;  %v2255_v11 = vpop.eup %2254 }
 0x673   :  { %1006 = vperm.xlu1 %2228, %v2967_v46   ;;  %v2977_v28 = vmul.f32 %v2255_v11, %v2930_v9  ;;  %v2257_v33 = vpop.eup %2256 }
 0x674   :  { %994 = vperm.xlu0 %2229, %v2971_v36   ;;  %v2982_v44 = vmul.f32 %v2257_v33, %v2936_v23  ;;  %v2259_v15 = vpop.eup %2258  ;;  %v1158_v33 = vld [vmem:[#allocation14 + $0x48] sm:$0xff] }
 0x675   :  { %v2986_v24 = vmul.f32 %v2259_v15, %v2940_v50  ;;  %v2261_v34 = vpop.eup %2260  ;;  %v1149_v50 = vld [vmem:[#allocation14] sm:$0xff]  ;;  %v2144_v15 = vpack.c.bf16 %v1158_v33, %v1157_v27 }
 0x676   :  { %v2989_v9 = vmul.f32 %v2261_v34, %v2247_v31  ;;  %v2263_v52 = vpop.eup %2262  ;;  %v2132_v57 = vpack.c.bf16 %v1150_v25, %v1149_v50  ;;  %v1152_v31 = vld [vmem:[#allocation14 + $0x18] sm:$0xff]  ;;  %v1162_v50 = vld [vmem:[#allocation14 + $0x68] sm:$0xff] }
 0x677   :  { %v2993_v35 = vmul.f32 %v2263_v52, %v2943_v51  ;;  %v2265_v23 = vpop.eup %2264  ;;  %v2135_v58 = vpack.c.bf16 %v1152_v31, %v1151_v56  ;;  %v1154_v51 = vld [vmem:[#allocation14 + $0x28] sm:$0xff]  ;;  %v1160_v34 = vld [vmem:[#allocation14 + $0x58] sm:$0xff]  ;;  %v1163_v56 = vld [vmem:[#allocation14 + $0x70] sm:$0xff] }
 0x678   :  { %997 = vperm.xlu0 %2229, %v2977_v28   ;;  %v2997_v54 = vmul.f32 %v2265_v23, %v2934_v49  ;;  %2133 = vmatpush3.bf16.msra.mxu1 %v2132_v57  ;;  %v2138_v61 = vpack.c.bf16 %v1154_v51, %v1153_v59  ;;  %v1156_v49 = vld [vmem:[#allocation14 + $0x38] sm:$0xff]  ;;  %v2147_v52 = vpack.c.bf16 %v1160_v34, %v1159_v29  ;;  %v1161_v23 = vld [vmem:[#allocation14 + $0x60] sm:$0xff]  ;;  %v1359_v59 = vld [vmem:[#allocation17 + $0x8] sm:$0xff] }
 0x679   :  { %2134 = vmatprep.subr.bf16.mxu1 %v2509_v0  ;;  %v2141_v3 = vpack.c.bf16 %v1156_v49, %v1155_v62  ;;  %v2150_v25 = vpack.c.bf16 %v1162_v50, %v1161_v23  ;;  %v1164_v57 = vld [vmem:[#allocation14 + $0x78] sm:$0xff]  ;;  %v1266_v62 = vld [vmem:[#allocation15 + $0x8] sm:$0xff] }
 0x67a   :  { %v2153_v31 = vpack.c.bf16 %v1164_v57, %v1163_v56 }
 0x67c   :  { %1000 = vperm.xlu0 %2229, %v2982_v44   ;;  %2136 = vmatpush3.bf16.msra.mxu1 %v2135_v58  ;;  %v1358_v58 = vld [vmem:[#allocation17] sm:$0xff] }
 0x67d   :  { %2137 = vmatprep.subr.bf16.mxu1 %v2509_v0  ;;  %v3047_v51 = vpack.c.bf16 %v1359_v59, %v1358_v58 }
 0x680   :  { %1003 = vperm.xlu0 %2229, %v2986_v24   ;;  %2139 = vmatpush3.bf16.msra.mxu1 %v2138_v61  ;;  %v1265_v61 = vld [vmem:[#allocation15] sm:$0xff] }
 0x681   :  { %2140 = vmatprep.subr.bf16.mxu1 %v2509_v0  ;;  %v2156_v49 = vpack.c.bf16 %v1266_v62, %v1265_v61 }
 0x683   :  { %2157 = vmatpush3.bf16.msra.mxu0 %v2156_v49 }
 0x684   :  { %1009 = vperm.xlu0 %2229, %v2989_v9   ;;  %2142 = vmatpush3.bf16.msra.mxu1 %v2141_v3  ;;  %v1267_v3 = vld [vmem:[#allocation15 + $0x10] sm:$0xff] }
 0x685   :  { %2143 = vmatprep.subr.bf16.mxu1 %v2509_v0  ;;  %2158 = vmatprep.subr.bf16.mxu0 %v2509_v0 }
 0x688   :  { %1012 = vperm.xlu0 %2229, %v2993_v35   ;;  %2145 = vmatpush3.bf16.msra.mxu1 %v2144_v15 }
 0x689   :  { %2146 = vmatprep.subr.bf16.mxu1 %v2509_v0 }
 0x68c   :  { %1015 = vperm.xlu0 %2229, %v2997_v54   ;;  %2148 = vmatpush3.bf16.msra.mxu1 %v2147_v52 }
 0x68d   :  { %2149 = vmatprep.subr.bf16.mxu1 %v2509_v0 }
 0x690   :  { %2151 = vmatpush3.bf16.msra.mxu1 %v2150_v25 }
 0x691   :  { %2152 = vmatprep.subr.bf16.mxu1 %v2509_v0 }
 0x694   :  { %2154 = vmatpush3.bf16.msra.mxu1 %v2153_v31 }
 0x695   :  { %2180 = vmatprep.subr.bf16.mxu1 %v3047_v51 }
 0x6f2   :  { %v3022_v20 = vpop.permute.xlu1 %1006 }
 0x6f3   :  { %v3004_v4 = vpop.permute.xlu0 %994  ;;  %v1036_v42 = vrot.slane %v3022_v20, %v2895_v40  ;;  %v1072_v33 = vmul.f32 %v3022_v20, %v2842_v16 }
 0x6f4   :  { %v1020_v17 = vrot.slane %v3004_v4, %v2895_v40  ;;  %v1068_v52 = vmul.f32 %v3004_v4, %v2819_v1 }
 0x6f5   :  { %v1100_v50 = vrot.slane %v1072_v33, 4 }
 0x6f7   :  { %v3006_v5 = vpop.permute.xlu0 %997  ;;  %v1101_v31 = vadd.f32 %v1100_v50, %v1072_v33 }
 0x6f8   :  { %v1024_v10 = vrot.slane %v3006_v5, %v2895_v40  ;;  %v1069_v29 = vmul.f32 %v3006_v5, %v2823_v60 }
 0x6f9   :  { %v1102_v49 = vrot.slane %v1101_v31, 2 }
 0x6fa   :  { %v1049_v21 = vsel %vm769_vm1, %v1024_v10, %v1020_v17  ;;  %v1268_v10 = vld [vmem:[#allocation15 + $0x18] sm:$0xff]  ;;  %v1269_v17 = vld [vmem:[#allocation15 + $0x20] sm:$0xff] }
 0x6fb   :  { %v3008_v6 = vpop.permute.xlu0 %1000 }
 0x6fc   :  { %v1028_v13 = vrot.slane %v3008_v6, %v2895_v40  ;;  %v1070_v15 = vmul.f32 %v3008_v6, %v2834_v8  ;;  %v1076_v6 = vrot.slane %v1068_v52, 4 }
 0x6fe   :  { %v1050_v30 = vsel %vm771_vm2, %v1028_v13, %v1049_v21  ;;  %v2159_v13 = vpack.c.bf16 %v1268_v10, %v1267_v3  ;;  %v1088_v25 = vrot.slane %v1070_v15, 4  ;;  %v1077_v62 = vadd.f32 %v1076_v6, %v1068_v52 }
 0x6ff   :  { %v3010_v7 = vpop.permute.xlu0 %1003 }
 0x700   :  { %v1032_v18 = vrot.slane %v3010_v7, %v2895_v40  ;;  %2160 = vmatpush3.bf16.msra.mxu0 %v2159_v13  ;;  %v1071_v34 = vmul.f32 %v3010_v7, %v2827_v2  ;;  %v1089_v58 = vadd.f32 %v1088_v25, %v1070_v15 }
 0x701   :  { %2161 = vmatprep.subr.bf16.mxu0 %v2509_v0 }
 0x702   :  { %v1051_v38 = vsel %vm773_vm3, %v1032_v18, %v1050_v30  ;;  %v1270_v18 = vld [vmem:[#allocation15 + $0x28] sm:$0xff]  ;;  %v1271_v30 = vld [vmem:[#allocation15 + $0x30] sm:$0xff]  ;;  %v1094_v56 = vrot.slane %v1071_v34, 4  ;;  %v1090_v10 = vrot.slane %v1089_v58, 2 }
 0x703   :  { %v3016_v14 = vpop.permute.xlu0 %1009  ;;  %v1052_v55 = vsel %vm775_vm4, %v1036_v42, %v1051_v38  ;;  %v2162_v21 = vpack.c.bf16 %v1270_v18, %v1269_v17  ;;  %v1272_v38 = vld [vmem:[#allocation15 + $0x38] sm:$0xff]  ;;  %v1273_v42 = vld [vmem:[#allocation15 + $0x40] sm:$0xff] }
 0x704   :  { %v1040_v39 = vrot.slane %v3016_v14, %v2895_v40  ;;  %v1073_v23 = vmul.f32 %v3016_v14, %v2838_v12  ;;  %v1095_v59 = vadd.f32 %v1094_v56, %v1071_v34 }
 0x705   :  { %2163 = vmatpush3.bf16.msra.mxu0 %v2162_v21 }
 0x706   :  { %v1053_v63 = vsel %vm777_vm5, %v1040_v39, %v1052_v55  ;;  %2164 = vmatprep.subr.bf16.mxu0 %v2509_v0  ;;  %v2165_v39 = vpack.c.bf16 %v1272_v38, %v1271_v30  ;;  %v1106_v57 = vrot.slane %v1073_v23, 4  ;;  %v1096_v13 = vrot.slane %v1095_v59, 2 }
 0x707   :  { %v3026_v37 = vpop.permute.xlu0 %1012  ;;  %v1103_v30 = vadd.f32 %v1102_v49, %v1101_v31  ;;  %v1091_v38 = vadd.f32 %v1090_v10, %v1089_v58 }
 0x708   :  { %v1044_v43 = vrot.slane %v3026_v37, %v2895_v40  ;;  %v1074_v20 = vmul.f32 %v3026_v37, %v2850_v22  ;;  %v1107_v14 = vadd.f32 %v1106_v57, %v1073_v23  ;;  %v1078_v37 = vrot.slane %v1077_v62, 2 }
 0x709   :  { %2166 = vmatpush3.bf16.msra.mxu0 %v2165_v39  ;;  %v1097_v39 = vadd.f32 %v1096_v13, %v1095_v59 }
 0x70a   :  { %v1054_v45 = vsel %vm779_vm6, %v1044_v43, %v1053_v63  ;;  %2167 = vmatprep.subr.bf16.mxu0 %v2509_v0  ;;  %v1274_v43 = vld [vmem:[#allocation15 + $0x48] sm:$0xff]  ;;  %v1276_v63 = vld [vmem:[#allocation15 + $0x58] sm:$0xff]  ;;  %v1112_v4 = vrot.slane %v1074_v20, 4  ;;  %v1108_v21 = vrot.slane %v1107_v14, 2 }
 0x70b   :  { %v3035_v53 = vpop.permute.xlu0 %1015  ;;  %v2168_v55 = vpack.c.bf16 %v1274_v43, %v1273_v42 }
 0x70c   :  { %v1048_v32 = vrot.slane %v3035_v53, %v2895_v40  ;;  %v1075_v5 = vmul.f32 %v3035_v53, %v2846_v19  ;;  %v1113_v17 = vadd.f32 %v1112_v4, %v1074_v20 }
 0x70d   :  { %2169 = vmatpush3.bf16.msra.mxu0 %v2168_v55  ;;  %v1079_v55 = vadd.f32 %v1078_v37, %v1077_v62 }
 0x70e   :  { %v1055_v48 = vsel %vm781_vm7, %v1048_v32, %v1054_v45  ;;  %2170 = vmatprep.subr.bf16.mxu0 %v2509_v0  ;;  %v1275_v32 = vld [vmem:[#allocation15 + $0x50] sm:$0xff]  ;;  %v1118_v61 = vrot.slane %v1075_v5, 4  ;;  %v1114_v42 = vrot.slane %v1113_v17, 2 }
 0x70f   :  { %v1057_v11 = vsel %vm784_vm8, %v1055_v48, 0.0  ;;  %v2171_v45 = vpack.c.bf16 %v1276_v63, %v1275_v32  ;;  %v1277_v48 = vld [vmem:[#allocation15 + $0x60] sm:$0xff]  ;;  %v1109_v32 = vadd.f32 %v1108_v21, %v1107_v14  ;;  %v1104_v63 = vrot.slane %v1103_v30, 1 }
 0x710   :  { %1058 = vadd.xlane.f32.xlu0 %v1057_v11  ;;  %v1278_v11 = vld [vmem:[#allocation15 + $0x68] sm:$0xff]  ;;  %v1119_v18 = vadd.f32 %v1118_v61, %v1075_v5 }
 0x711   :  { %2172 = vmatpush3.bf16.msra.mxu0 %v2171_v45  ;;  %v2174_v27 = vpack.c.bf16 %v1278_v11, %v1277_v48  ;;  %v1092_v48 = vrot.slane %v1091_v38, 1  ;;  %v1098_v11 = vrot.slane %v1097_v39, 1  ;;  %v1110_v15 = vrot.slane %v1109_v32, 1 }
 0x712   :  { %2173 = vmatprep.subr.bf16.mxu0 %v2509_v0  ;;  %v1120_v43 = vrot.slane %v1119_v18, 2  ;;  %v1105_v52 = vadd.f32 %v1104_v63, %v1103_v30  ;;  %v1361_v63 = vld [vmem:[#allocation17 + $0x18] sm:$0xff] }
 0x713   :  { %v1099_v25 = vadd.f32 %v1098_v11, %v1097_v39  ;;  %v1111_v58 = vadd.f32 %v1110_v15, %v1109_v32  ;;  %v1360_v32 = vld [vmem:[#allocation17 + $0x10] sm:$0xff] }
 0x714   :  { %v1121_v33 = vadd.f32 %v1120_v43, %v1119_v18 }
 0x715   :  { %2175 = vmatpush3.bf16.msra.mxu0 %v2174_v27  ;;  %v1115_v27 = vadd.f32 %v1114_v42, %v1113_v17 }
 0x716   :  { %2176 = vmatprep.subr.bf16.mxu0 %v2509_v0  ;;  %v1082_v0 = vrot.slane %v1069_v29, 4  ;;  %v1122_v20 = vrot.slane %v1121_v33, 1 }
 0x717   :  { %v1116_v56 = vrot.slane %v1115_v27, 1 }
 0x718   :  { %v1083_v7 = vadd.f32 %v1082_v0, %v1069_v29  ;;  %v1080_v29 = vrot.slane %v1079_v55, 1  ;;  %v1093_v0 = vadd.f32 %v1092_v48, %v1091_v38  ;;  %v1123_v10 = vadd.f32 %v1122_v20, %v1121_v33  ;;  %v1367_v20 = vld [vmem:[#allocation17 + $0x48] sm:$0xff] }
 0x71a   :  { %v1084_v3 = vrot.slane %v1083_v7, 2 }
 0x71c   :  { %v1085_v53 = vadd.f32 %v1084_v3, %v1083_v7  ;;  %v1081_v7 = vadd.f32 %v1080_v29, %v1079_v55  ;;  %v1117_v3 = vadd.f32 %v1116_v56, %v1115_v27  ;;  %v2183_v29 = vpack.c.bf16 %v1361_v63, %v1360_v32  ;;  %v1366_v56 = vld [vmem:[#allocation17 + $0x40] sm:$0xff] }
 0x71e   :  { %v1086_v45 = vrot.slane %v1085_v53, 1 }
 0x720   :  { %v1087_v23 = vadd.f32 %v1086_v45, %v1085_v53 }
 0x79d   :  { %v1059_v34 = vpop.xlane.xlu0 %1058 }
 0x79e   :  { %v1124_v50 = vmul.f32 %v1059_v34, %v2807_v41  ;;  %v1362_v34 = vld [vmem:[#allocation17 + $0x20] sm:$0xff] }
 0x7a0   :  { %v1126_v5 = vrot.slane %v1124_v50, 1  ;;  %v1127_v6 = vrot.slane %v1124_v50, 2  ;;  %v1128_v57 = vrot.slane %v1124_v50, 3  ;;  %v1129_v31 = vrot.slane %v1124_v50, 4 }
 0x7a1   :  { %v1130_v59 = vrot.slane %v1124_v50, 5  ;;  %v1131_v4 = vrot.slane %v1124_v50, 6  ;;  %v1132_v61 = vrot.slane %v1124_v50, 7  ;;  %v1141_v41 = vadd.f32 %v1124_v50, %v1081_v7  ;;  %v1364_v50 = vld [vmem:[#allocation17 + $0x30] sm:$0xff]  ;;  %v1371_v7 = vld [vmem:[#allocation17 + $0x68] sm:$0xff] }
 0x7a2   :  { %v1142_v62 = vadd.f32 %v1126_v5, %v1087_v23  ;;  %v1143_v14 = vadd.f32 %v1127_v6, %v1093_v0  ;;  %v1144_v49 = vadd.f32 %v1128_v57, %v1099_v25  ;;  %v1145_v13 = vadd.f32 %v1129_v31, %v1105_v52  ;;  %v1363_v52 = vld [vmem:[#allocation17 + $0x28] sm:$0xff]  ;;  %v1365_v0 = vld [vmem:[#allocation17 + $0x38] sm:$0xff]  ;;  %v1368_v6 = vld [vmem:[#allocation17 + $0x50] sm:$0xff] }
 0x7a3   :  { %v1146_v17 = vadd.f32 %v1130_v59, %v1111_v58  ;;  %v1147_v21 = vadd.f32 %v1131_v4, %v1117_v3  ;;  %v1148_v30 = vadd.f32 %v1132_v61, %v1123_v10  ;;  %v2187_v23 = vpack.c.bf16 %v1363_v52, %v1362_v34  ;;  %v1369_v57 = vld [vmem:[#allocation17 + $0x58] sm:$0xff]  ;;  %v1372_v58 = vld [vmem:[#allocation17 + $0x70] sm:$0xff] }
 0x7a4   :  { %v1180_v18 = vrot.slane %v1142_v62, 7  ;;  %v1182_v37 = vrot.slane %v1143_v14, 6  ;;  %v1184_v38 = vrot.slane %v1144_v49, 5  ;;  %v1186_v42 = vrot.slane %v1145_v13, 4  ;;  %v1373_v59 = vld [vmem:[#allocation17 + $0x78] sm:$0xff]  ;;  %v1279_v61 = vld [vmem:[#allocation15 + $0x70] sm:$0xff] }
 0x7a5   :  { %v1188_v55 = vrot.slane %v1146_v17, 3  ;;  %v1190_v48 = vrot.slane %v1147_v21, 2  ;;  %v1192_v27 = vrot.slane %v1148_v30, 1  ;;  %v2191_v25 = vpack.c.bf16 %v1365_v0, %v1364_v50  ;;  %v1280_v62 = vld [vmem:[#allocation15 + $0x78] sm:$0xff]  ;;  %v1729_v17 = vld [vmem:[%s3165_s13] ss:$0 sm:$0xff] }
 0x7a6   :  { %v1181_v53 = vsel %vm769_vm1, %v1180_v18, %v1141_v41  ;;  %v2195_v5 = vpack.c.bf16 %v1367_v20, %v1366_v56  ;;  %v2199_v31 = vpack.c.bf16 %v1369_v57, %v1368_v6  ;;  %v2207_v4 = vpack.c.bf16 %v1373_v59, %v1372_v58  ;;  %v1730_v52 = vld [vmem:[%s3166_s14] ss:$0 sm:$0xff] }
 0x7a7   :  { %v1183_v39 = vsel %vm771_vm2, %v1182_v37, %v1181_v53  ;;  %v2177_v14 = vpack.c.bf16 %v1280_v62, %v1279_v61 }
 0x7a8   :  { %v1185_v43 = vsel %vm773_vm3, %v1184_v38, %v1183_v39 }
 0x7a9   :  { %v1187_v45 = vsel %vm775_vm4, %v1186_v42, %v1185_v43  ;;  %2178 = vmatpush3.bf16.msra.mxu0 %v2177_v14 }
 0x7aa   :  { %v1189_v11 = vsel %vm777_vm5, %v1188_v55, %v1187_v45 }
 0x7ab   :  { %v1191_v33 = vsel %vm779_vm6, %v1190_v48, %v1189_v11 }
 0x7ac   :  { %v1193_v15 = vsel %vm781_vm7, %v1192_v27, %v1191_v33 }
 0x7ad   :  { %1978 = vmatmul.mubr.f32.vlgmr.msra.gmra.mrb[2].mxu1 %v1193_v15 }
 0x7ae   :  { %2182 = vmatpush3.bf16.msra.mxu1 %v3047_v51  ;;  %2047 = vmatprep.mubr.f32.mxu1 %v2819_v1  ;;  %v1370_v51 = vld [vmem:[#allocation17 + $0x60] sm:$0xff] }
 0x7af   :  { %2184 = vmatprep.subr.bf16.mxu1 %v2183_v29  ;;  %v2203_v1 = vpack.c.bf16 %v1371_v7, %v1370_v51 }
 0x7b2   :  { %2186 = vmatpush3.bf16.msra.mxu1 %v2183_v29 }
 0x7b3   :  { %2188 = vmatprep.subr.bf16.mxu1 %v2187_v23 }
 0x7b6   :  { %2190 = vmatpush3.bf16.msra.mxu1 %v2187_v23 }
 0x7b7   :  { %2192 = vmatprep.subr.bf16.mxu1 %v2191_v25 }
 0x7ba   :  { %2194 = vmatpush3.bf16.msra.mxu1 %v2191_v25 }
 0x7bb   :  { %2196 = vmatprep.subr.bf16.mxu1 %v2195_v5 }
 0x7be   :  { %2198 = vmatpush3.bf16.msra.mxu1 %v2195_v5 }
 0x7bf   :  { %2200 = vmatprep.subr.bf16.mxu1 %v2199_v31 }
 0x7c2   :  { %2202 = vmatpush3.bf16.msra.mxu1 %v2199_v31 }
 0x7c3   :  { %2204 = vmatprep.subr.bf16.mxu1 %v2203_v1 }
 0x7c6   :  { %2206 = vmatpush3.bf16.msra.mxu1 %v2203_v1 }
 0x7c7   :  { %2208 = vmatprep.subr.bf16.mxu1 %v2207_v4 }
 0x7ca   :  { %2210 = vmatpush3.bf16.msra.mxu1 %v2207_v4 }
 0x7cd   :  { %2048 = vmatmul.mubr.f32.vlgmr.msra.gmra.mrb[4].mxu1 %v2823_v60  ;;  %v1728_v60 = vld [vmem:[%s3162_s10] ss:$0 sm:$0xff] }
 0x7ce   :  { %2050 = vmatprep.mubr.f32.mxu1 %v2834_v8 }
 0x7d1   :  { %2051 = vmatmul.mubr.f32.gmra.mrb[6].mxu1 %v2827_v2 }
 0x7d2   :  { %2053 = vmatprep.mubr.f32.mxu1 %v2842_v16 }
 0x7d5   :  { %2054 = vmatmul.mubr.f32.gmra.mrb[8].mxu1 %v2838_v12 }
 0x7d6   :  { %2056 = vmatprep.mubr.f32.mxu1 %v2850_v22 }
 0x7d9   :  { %2057 = vmatmul.mubr.f32.gmra.mrb[10].mxu1 %v2846_v19 }
 0x880   :  { %v1261_v49 = vpop.f32.mrb[2].mxu1 }
 0x881   :  { %v1262_v8 = vadd.f32 %v1728_v60, %v1261_v49  ;;  %v1979_v3 = vpop.f32.mrb[3].mxu1 }
 0x883   :  { %2013 = vmatmul.mubr.f32.vlgmr.msra.gmra.mrb[4].mxu0 %v1262_v8 }
 0x8a0   :  { %v2049_v2 = vpop.f32.mrb[4].mxu1 }
 0x8a1   :  { %v1440_v16 = vpop.f32.mrb[5].mxu1 }
 0x8a4   :  { %v2052_v10 = vpop.f32.mrb[6].mxu1 }
 0x8a5   :  { %v1450_v12 = vpop.f32.mrb[7].mxu1 }
 0x8a8   :  { %v2055_v13 = vpop.f32.mrb[8].mxu1 }
 0x8a9   :  { %v1460_v22 = vpop.f32.mrb[9].mxu1 }
 0x8ac   :  { %v2058_v41 = vpop.f32.mrb[10].mxu1 }
 0x8ad   :  { %v1470_v19 = vpop.f32.mrb[11].mxu1 }
 0x956   :  { %v1354_v18 = vpop.f32.mrb[4].mxu0 }
 0x957   :  { %v1355_v37 = vadd.f32 %v1729_v17, %v1354_v18  ;;  %v2014_v21 = vpop.f32.mrb[5].mxu0 }
 0x959   :  { %v1480_v30 = vcombine.high %v1355_v37, %v1355_v37  ;;  %v1487_v53 = vrot.slane %v1355_v37, %v2813_v47 }
 0x95b   :  { %v1494_v38 = vrot.slane %v1480_v30, %v2813_v47  ;;  %v1495_v39 = vcombine.high %v1487_v53, %v1487_v53  ;;  %v1503_v42 = vrot.slane %v1487_v53, %v2813_v47 }
 0x95d   :  { %v1517_v43 = vrot.slane %v1495_v39, %v2813_v47  ;;  %v1532_v55 = vrot.slane %v1503_v42, %v2775_v26  ;;  %v1525_v32 = vcombine.high %v1503_v42, %v1503_v42  ;;  %v1496_v63 = vcombine.high %v1494_v38, %v1494_v38 }
 0x95e   :  { %v1510_v45 = vrot.slane %v1494_v38, %v2813_v47 }
 0x95f   :  { %v1536_v48 = vrot.slane %v1517_v43, %v2775_v26  ;;  %v1569_v11 = vadd.f32 %v1532_v55, %v1440_v16  ;;  %v1527_v27 = vcombine.high %v1517_v43, %v1517_v43  ;;  %v1540_v33 = vrot.slane %v1525_v32, %v2775_v26 }
 0x960   :  { %v1524_v29 = vrot.slane %v1496_v63, %v2813_v47  ;;  %v1548_v15 = vrot.slane %v1510_v45, %v2775_v26  ;;  %v1526_v34 = vcombine.high %v1510_v45, %v1510_v45 }
 0x961   :  { %v1570_v23 = vadd.f32 %v2049_v2, %v1536_v48  ;;  %v1577_v50 = vmax.f32 %v1569_v11, 0.0  ;;  %v1544_v0 = vrot.slane %v1527_v27, %v2775_v26  ;;  %v1571_v25 = vadd.f32 %v1540_v33, %v1450_v12 }
 0x962   :  { %v1552_v56 = vrot.slane %v1524_v29, %v2775_v26  ;;  %v1573_v20 = vadd.f32 %v1548_v15, %v1460_v22  ;;  %v1528_v5 = vcombine.high %v1524_v29, %v1524_v29  ;;  %v1556_v6 = vrot.slane %v1526_v34, %v2775_v26 }
 0x963   :  { %v1578_v57 = vmax.f32 %v1570_v23, 0.0  ;;  %v1572_v47 = vadd.f32 %v2052_v10, %v1544_v0  ;;  %v1592_v31 = vmul.f32 %v1730_v52, %v1577_v50  ;;  %v1579_v59 = vmax.f32 %v1571_v25, 0.0 }
 0x964   :  { %v1574_v51 = vadd.f32 %v2055_v13, %v1552_v56  ;;  %v1581_v7 = vmax.f32 %v1573_v20, 0.0  ;;  %v1560_v1 = vrot.slane %v1528_v5, %v2775_v26  ;;  %v1575_v58 = vadd.f32 %v1556_v6, %v1470_v19 }
 0x965   :  { %1600 = vadd.xlane.f32.xlu1 %v1592_v31  ;;  %v1593_v4 = vmul.f32 %v1730_v52, %v1578_v57  ;;  %v1580_v60 = vmax.f32 %v1572_v47, 0.0  ;;  %v1594_v49 = vmul.f32 %v1730_v52, %v1579_v59  ;;  %v1617_v12 = vstv %s3167_s15  ;;  %s2514_s15 = smov [#allocation18]  }
 0x966   :  { %v1576_v61 = vadd.f32 %v2058_v41, %v1560_v1  ;;  %v1583_v62 = vmax.f32 %v1575_v58, 0.0  ;;  %v1596_v14 = vmul.f32 %v1730_v52, %v1581_v7  ;;  %v1582_v3 = vmax.f32 %v1574_v51, 0.0  ;;  %s1713_s1 = sshll.u32 %s2514_s15, 4  ;;  %s1714_s1 = int_to_ptr.vmem [resolvable:$true] %s1713_s1 }
 0x967   :  { %1602 = vadd.xlane.f32.xlu0 %v1593_v4  ;;  %v1595_v2 = vmul.f32 %v1730_v52, %v1580_v60  ;;  %s2464_s26 = scalar_lea.vmem %s1714_s1, 128  ;;  %p2469_p3 = scmp.lt.s32.totalorder %s1714_s1, %s1714_s1 }
 0x968   :  { %v1598_v8 = vmul.f32 %v1730_v52, %v1583_v62  ;;  %v1584_v16 = vmax.f32 %v1576_v61, 0.0  ;;  %v1597_v10 = vmul.f32 %v1730_v52, %v1582_v3  ;;  %p2465_p2 = scmp.ne.s32.totalorder %s1714_s1, %s2464_s26  ;;  %p2470_p4 = scmp.lt.s32.totalorder %s2464_s26, %s2464_s26 }
 0x969   :  { %1608 = vadd.xlane.f32.xlu1 %v1596_v14 }
 0x96a   :  { %v1599_v26 = vmul.f32 %v1730_v52, %v1584_v16  ;;  %p2471_p5 = por %p2470_p4, %p2469_p3 }
 0x96b   :  { %1604 = vadd.xlane.f32.xlu0 %v1594_v49 }
 0x96c   :  { %p2472_p6 = pnand %p2471_p5, %p2465_p2 }
 0x96d   :  { %1612 = vadd.xlane.f32.xlu1 %v1598_v8 }
 0x96f   :  { %1606 = vadd.xlane.f32.xlu0 %v1595_v2 }
 0x973   :  { %1610 = vadd.xlane.f32.xlu0 %v1597_v10 }
 0x977   :  { %1614 = vadd.xlane.f32.xlu0 %v1599_v26 }
 0x9f2   :  { %v1601_v13 = vpop.xlane.xlu1 %1600 }
 0x9f3   :  { %v1618_v22 = vadd.f32 %v1617_v12, %v1601_v13 }
 0x9f4   :  { %v1603_v41 = vpop.xlane.xlu0 %1602 }
 0x9f5   :  { %v1626_v19 = vadd.f32 %v1618_v22, %v2971_v36  ;;  %v1619_v17 = vadd.f32 %v1617_v12, %v1603_v41 }
 0x9f6   :  { %v1609_v37 = vpop.xlane.xlu1 %1608 }
 0x9f7   :  { %v1627_v18 = vadd.f32 %v1619_v17, %v2977_v28  ;;  %1643 = vperm.xlu1 %2228, %v1626_v19   ;;  %v1622_v53 = vadd.f32 %v1617_v12, %v1609_v37 }
 0x9f8   :  { %v1605_v21 = vpop.xlane.xlu0 %1604 }
 0x9f9   :  { %v1620_v30 = vadd.f32 %v1617_v12, %v1605_v21  ;;  %1646 = vperm.xlu0 %2229, %v1627_v18   ;;  %v1630_v42 = vadd.f32 %v1622_v53, %v2967_v46 }
 0x9fa   :  { %v1613_v55 = vpop.xlane.xlu1 %1612 }
 0x9fb   :  { %v1628_v38 = vadd.f32 %v1620_v30, %v2982_v44  ;;  %v1624_v36 = vadd.f32 %v1617_v12, %v1613_v55 }
 0x9fc   :  { %v1607_v39 = vpop.xlane.xlu0 %1606 }
 0x9fd   :  { %1649 = vperm.xlu1 %2228, %v1628_v38   ;;  %v1621_v43 = vadd.f32 %v1617_v12, %v1607_v39  ;;  %v1632_v44 = vadd.f32 %v1624_v36, %v2993_v35 }
 0x9ff   :  { %v1629_v28 = vadd.f32 %v1621_v43, %v2986_v24 }
 0xa00   :  { %v1611_v32 = vpop.xlane.xlu0 %1610 }
 0xa01   :  { %v1623_v63 = vadd.f32 %v1617_v12, %v1611_v32  ;;  %1655 = vperm.xlu1 %2228, %v1630_v42  }
 0xa03   :  { %v1631_v45 = vadd.f32 %v1623_v63, %v2989_v9 }
 0xa04   :  { %v1615_v48 = vpop.xlane.xlu0 %1614 }
 0xa05   :  { %v1625_v11 = vadd.f32 %v1617_v12, %v1615_v48  ;;  %1652 = vperm.xlu1 %2228, %v1629_v28   ;;  %1658 = vperm.xlu0 %2229, %v1631_v45  }
 0xa07   :  { %v1633_v27 = vadd.f32 %v1625_v11, %v2997_v54 }
 0xa09   :  { %1661 = vperm.xlu1 %2228, %v1632_v44   ;;  %1664 = vperm.xlu0 %2229, %v1633_v27  }
 0xa76   :  { %v1644_v46 = vpop.permute.xlu1 %1643 }
 0xa77   :  { %v1669_v9 = vrot.slane %v1644_v46, %v2895_v40 }
 0xa78   :  { %v1647_v29 = vpop.permute.xlu0 %1646 }
 0xa79   :  { %v1673_v34 = vrot.slane %v1647_v29, %v2895_v40 }
 0xa7b   :  { %v1698_v50 = vsel %vm769_vm1, %v1673_v34, %v1669_v9 }
 0xa7c   :  { %v1650_v33 = vpop.permute.xlu1 %1649 }
 0xa7d   :  { %v1677_v24 = vrot.slane %v1650_v33, %v2895_v40 }
 0xa7f   :  { %v1699_v54 = vsel %vm771_vm2, %v1677_v24, %v1698_v50 }
 0xa80   :  { %v1656_v15 = vpop.permute.xlu1 %1655 }
 0xa81   :  { %v1685_v0 = vrot.slane %v1656_v15, %v2895_v40 }
 0xa84   :  { %v1653_v52 = vpop.permute.xlu1 %1652  ;;  %v1659_v23 = vpop.permute.xlu0 %1658 }
 0xa85   :  { %v1681_v35 = vrot.slane %v1653_v52, %v2895_v40  ;;  %v1689_v56 = vrot.slane %v1659_v23, %v2895_v40 }
 0xa87   :  { %v1700_v25 = vsel %vm773_vm3, %v1681_v35, %v1699_v54 }
 0xa88   :  { %v1701_v20 = vsel %vm775_vm4, %v1685_v0, %v1700_v25  ;;  %v1662_v5 = vpop.permute.xlu1 %1661  ;;  %v1665_v6 = vpop.permute.xlu0 %1664 }
 0xa89   :  { %v1702_v57 = vsel %vm777_vm5, %v1689_v56, %v1701_v20  ;;  %v1693_v47 = vrot.slane %v1662_v5, %v2895_v40  ;;  %v1697_v31 = vrot.slane %v1665_v6, %v2895_v40 }
 0xa8b   :  { %v1703_v51 = vsel %vm779_vm6, %v1693_v47, %v1702_v57 }
 0xa8c   :  { %v1704_v7 = vsel %vm781_vm7, %v1697_v31, %v1703_v51 }
 0xa8d   :  { %1706 = vst.msk [vmem:[#allocation18] sm:$0xff] %vm784_vm8, %v1704_v7 }
 0xa8e   :  { %2475 = shalt.err (!%p2472_p6)
}
 0xa8f   :  { %s2476_s8 = scalar_lea.hbm %s3168_s16, 128 }
 0xa90   :  { %p2477_p7 = scmp.ne.s32.totalorder %s3168_s16, %s2476_s8  ;;  %p2480_p8 = scmp.lt.u32.totalorder %s2476_s8, %s3168_s16 }
 0xa92   :  { %p2482_p9 = pnand %p2480_p8, %p2477_p7 }
 0xa94   :  { %2485 = shalt.err (!%p2482_p9)
}
 0xa95   :  { %1716 = dma.vmem_to_hbm [thread:$0]  %s1714_s1, 128, %s3168_s16, [#allocation5]  }
 0xa96   :  { %2496 = dma.done.wait [#allocation5], 128  }
 0xa97   :  { %2497 = vsyncadd [#allocation5], 4294967168 }
 0xa98   :  { %1720 = vsyncpa [#allocation4], 1 }
 0xa99   :  { %1721 = vsyncpa [#allocation7], 1 }
 0xa9a   :  { %1722 = vsyncpa [#allocation10], 1 }
 0xa9b   :  { %1723 = vsyncpa [#allocation13], 1 }
 0xa9c   :  { %1724 = vsyncpa [#allocation16], 1 }
 0xa9d   :  { %1725 = vsyncpa [#allocation5], 1 }

</bundles_post_ra>
